<compile_context>
chip_gen: v5e
topology: v5e:2x2
jax: 0.10.0
libtpu: 0.0.40
codegen_flags: <defaults>
</compile_context>

<pallas_src>
import functools

import jax
import jax.numpy as jnp
from jax import lax
from jax.experimental import pallas as pl
from jax.experimental.pallas import tpu as pltpu

NUM_HEADS = 4          # Global_pred attention heads
LOCAL_DIM = 16         # Local_pred_S feature dim
GLOBAL_DIM = 64        # Global_pred embedding dim
N_QUERY = 10           # learned query tokens (1 gamma + 9 color)

_LN_CF_EPS = 1e-6      # channels_first LayerNorm eps
_LN_CL_EPS = 1e-5      # nn.LayerNorm default eps
TILE_P_MM = 2048       # spatial tile (lanes) for the channel-major 1x1 kernels
TILE_P_ENH = 8192      # spatial tile (lanes) for the fused enhancement kernel
TILE_M_LIN = 1024      # row tile for the generic Linear kernel


def _pick_tile(n, target):
    """Full extent if it fits, else a lane/sublane-aligned tile of `target`."""
    return n if n <= target else target


def _gelu_tanh(x):
    # TODO(synk): exact erf-GELU is approximated with the tanh form inside
    # Pallas kernels (guaranteed Mosaic lowering); max abs error ~1e-3.
    c = 0.7978845608028654  # sqrt(2/pi)
    return 0.5 * x * (1.0 + jnp.tanh(c * (x + 0.044715 * x * x * x)))


# --------------------------------------------------------------------------
# Pallas kernel 1: row-tiled Linear with fused (optional) LayerNorm prologue
#   and bias / activation epilogue.  Used for the global-branch transformer.
# --------------------------------------------------------------------------
def _linear_kernel(x_ref, w_ref, b_ref, lnw_ref, lnb_ref, o_ref, *,
                   act, use_ln, ln_eps):
    x = x_ref[...]
    if use_ln:                                   # token-wise LayerNorm (last dim)
        u = jnp.mean(x, axis=-1, keepdims=True)
        s = jnp.mean((x - u) ** 2, axis=-1, keepdims=True)
        x = (x - u) * lax.rsqrt(s + ln_eps) * lnw_ref[...] + lnb_ref[...]
    y = jnp.dot(x, w_ref[...], preferred_element_type=jnp.float32) + b_ref[...]
    if act == "gelu":
        y = _gelu_tanh(y)
    o_ref[...] = y


def pallas_linear(x, w, b=None, act="none", ln=None, ln_eps=_LN_CL_EPS):
    """nn.Linear: x (..., K) with torch-style w (Cout, K).  Optionally fuses a
    preceding LayerNorm (over the last dim), the bias add and a GELU."""
    shape = x.shape
    K = shape[-1]
    Cout = w.shape[0]
    xf = x.reshape(-1, K)
    M = xf.shape[0]
    wt = w.T                                            # (K, Cout)
    b2 = jnp.zeros((1, Cout), jnp.float32) if b is None else b.reshape(1, Cout)
    use_ln = ln is not None
    if use_ln:
        lnw = ln[0].reshape(1, K)
        lnb = ln[1].reshape(1, K)
    else:
        lnw = jnp.ones((1, K), jnp.float32)
        lnb = jnp.zeros((1, K), jnp.float32)
    TM = _pick_tile(M, TILE_M_LIN)
    out = pl.pallas_call(
        functools.partial(_linear_kernel, act=act, use_ln=use_ln, ln_eps=ln_eps),
        out_shape=jax.ShapeDtypeStruct((M, Cout), jnp.float32),
        grid=(pl.cdiv(M, TM),),
        in_specs=[
            pl.BlockSpec((TM, K), lambda i: (i, 0)),
            pl.BlockSpec((K, Cout), lambda i: (0, 0)),
            pl.BlockSpec((1, Cout), lambda i: (0, 0)),
            pl.BlockSpec((1, K), lambda i: (0, 0)),
            pl.BlockSpec((1, K), lambda i: (0, 0)),
        ],
        out_specs=pl.BlockSpec((TM, Cout), lambda i: (i, 0)),
        compiler_params=pltpu.CompilerParams(dimension_semantics=("parallel",)),
        cost_estimate=pl.CostEstimate(
            flops=2 * M * K * Cout, transcendentals=0,
            bytes_accessed=4 * (M * K + K * Cout + M * Cout)),
    )(xf, wt, b2, lnw, lnb)
    return out.reshape(*shape[:-1], Cout)


# --------------------------------------------------------------------------
# Pallas kernels 2-4: weight-stationary channel-major 1x1 convs (local branch)
#   data layout inside kernels: (C, TILE_P)  -- spatial on lanes, no transposes
# --------------------------------------------------------------------------
def _channel_ln(x, w, b, eps):
    u = jnp.mean(x, axis=0, keepdims=True)
    s = jnp.mean((x - u) ** 2, axis=0, keepdims=True)
    return w * ((x - u) * lax.rsqrt(s + eps)) + b


def _ln_conv1x1_kernel(x_ref, w_ref, b_ref, lnw_ref, lnb_ref, o_ref, *, eps):
    # fused channels-first LayerNorm + 1x1 conv (+bias)
    y = _channel_ln(x_ref[...], lnw_ref[...], lnb_ref[...], eps)       # (Cin, TP)
    o_ref[...] = jnp.dot(w_ref[...], y,
                         preferred_element_type=jnp.float32) + b_ref[...]


def _conv1x1_scale_res_kernel(xres_ref, y_ref, w_ref, b_ref, g_ref, o_ref):
    # fused 1x1 conv + bias + layer-scale + residual add
    z = jnp.dot(w_ref[...], y_ref[...],
                preferred_element_type=jnp.float32) + b_ref[...]
    o_ref[...] = xres_ref[...] + g_ref[...] * z


def _cmlp_kernel(x_ref, lnw_ref, lnb_ref, w1_ref, b1_ref, w2_ref, b2_ref,
                 g_ref, o_ref, *, eps):
    # fused CBlock MLP: LN -> fc1 -> GELU -> fc2 -> layer-scale -> +residual
    x = x_ref[...]
    y = _channel_ln(x, lnw_ref[...], lnb_ref[...], eps)
    h = jnp.dot(w1_ref[...], y, preferred_element_type=jnp.float32) + b1_ref[...]
    h = _gelu_tanh(h)
    z = jnp.dot(w2_ref[...], h, preferred_element_type=jnp.float32) + b2_ref[...]
    o_ref[...] = x + g_ref[...] * z


def _cm_call(kernel, x_list, w_list, Cout, tile_p, *, flops, transcendentals=0):
    """Run a channel-major kernel over grid (batch, spatial tiles).

    x_list: (B, C_i, P) tensors, blocked over batch & spatial.
    w_list: small 2-D params, resident in VMEM for the whole grid.
    """
    B, _, P = x_list[0].shape
    TP = _pick_tile(P, tile_p)
    in_specs = (
        [pl.BlockSpec((None, x.shape[1], TP), lambda b, p: (b, 0, p))
         for x in x_list]
        + [pl.BlockSpec(w.shape, lambda b, p: (0, 0)) for w in w_list])
    return pl.pallas_call(
        kernel,
        out_shape=jax.ShapeDtypeStruct((B, Cout, P), jnp.float32),
        grid=(B, pl.cdiv(P, TP)),
        in_specs=in_specs,
        out_specs=pl.BlockSpec((None, Cout, TP), lambda b, p: (b, 0, p)),
        compiler_params=pltpu.CompilerParams(
            dimension_semantics=("parallel", "parallel")),
        cost_estimate=pl.CostEstimate(
            flops=flops, transcendentals=transcendentals,
            bytes_accessed=4 * (sum(x.size for x in x_list) + B * Cout * P)),
    )(*x_list, *w_list)


def fused_ln_conv1x1(x, ln_w, ln_b, w, b, eps=_LN_CF_EPS):
    """channels_first LayerNorm + 1x1 conv (NCHW in/out).  w: (Cout, Cin)."""
    B, C, H, W = x.shape
    P = H * W
    Cout = w.shape[0]
    out = _cm_call(
        functools.partial(_ln_conv1x1_kernel, eps=eps),
        [x.reshape(B, C, P)],
        [w, b.reshape(Cout, 1), ln_w.reshape(C, 1), ln_b.reshape(C, 1)],
        Cout, TILE_P_MM, flops=2 * B * P * C * Cout)
    return out.reshape(B, Cout, H, W)


def fused_conv1x1_scale_res(x_res, y, w, b, g):
    """x_res + g * (1x1conv(y) + b)  (NCHW).  w: (C, Cin) with C == x_res C."""
    B, C, H, W = x_res.shape
    P = H * W
    Cin = y.shape[1]
    out = _cm_call(
        _conv1x1_scale_res_kernel,
        [x_res.reshape(B, C, P), y.reshape(B, Cin, P)],
        [w, b.reshape(C, 1), g.reshape(C, 1)],
        C, TILE_P_MM, flops=2 * B * P * Cin * C)
    return out.reshape(B, C, H, W)


def fused_cblock_mlp(x, ln_w, ln_b, w1, b1, w2, b2, g, eps=_LN_CF_EPS):
    """x + g * fc2(GELU(fc1(LN_cf(x))))  (NCHW).  w1: (hid, C), w2: (C, hid)."""
    B, C, H, W = x.shape
    P = H * W
    hid = w1.shape[0]
    out = _cm_call(
        functools.partial(_cmlp_kernel, eps=eps),
        [x.reshape(B, C, P)],
        [ln_w.reshape(C, 1), ln_b.reshape(C, 1), w1, b1.reshape(hid, 1),
         w2, b2.reshape(C, 1), g.reshape(C, 1)],
        C, TILE_P_MM,
        flops=4 * B * P * C * hid, transcendentals=B * P * hid)
    return out.reshape(B, C, H, W)


# --------------------------------------------------------------------------
# Pallas kernel 5: fused enhancement, spatially tiled
#   img_high = clamp(CCM @ (img*mul + add), 1e-8, 1) ** gamma
# --------------------------------------------------------------------------
def _enhance_kernel(img_ref, mul_ref, add_ref, ccm_ref, gamma_ref, out_ref):
    b = pl.program_id(0)
    ih = img_ref[...] * mul_ref[...] + add_ref[...]          # (3, TP)
    g = gamma_ref[b, 0]
    r0, r1, r2 = ih[0:1, :], ih[1:2, :], ih[2:3, :]
    for i in range(3):                                       # out[i] = sum_k ccm[i,k]*ih[k]
        y = (ccm_ref[b, i, 0] * r0 + ccm_ref[b, i, 1] * r1
             + ccm_ref[b, i, 2] * r2)
        y = jnp.clip(y, 1e-8, 1.0)
        out_ref[i:i + 1, :] = jnp.exp(g * jnp.log(y))        # y ** gamma  (y > 0)


def pallas_enhance(img_low, mul, add, color, gamma):
    B, C, H, W = img_low.shape
    P = H * W
    TP = _pick_tile(P, TILE_P_ENH)
    out = pl.pallas_call(
        _enhance_kernel,
        out_shape=jax.ShapeDtypeStruct((B, C, P), jnp.float32),
        grid=(B, pl.cdiv(P, TP)),
        in_specs=[
            pl.BlockSpec((None, C, TP), lambda b, p: (b, 0, p)),
            pl.BlockSpec((None, C, TP), lambda b, p: (b, 0, p)),
            pl.BlockSpec((None, C, TP), lambda b, p: (b, 0, p)),
            pl.BlockSpec(memory_space=pltpu.MemorySpace.SMEM),   # (B,3,3) CCM
            pl.BlockSpec(memory_space=pltpu.MemorySpace.SMEM),   # (B,1) gamma
        ],
        out_specs=pl.BlockSpec((None, C, TP), lambda b, p: (b, 0, p)),
        compiler_params=pltpu.CompilerParams(
            dimension_semantics=("parallel", "parallel")),
        cost_estimate=pl.CostEstimate(
            flops=14 * B * C * P, transcendentals=2 * B * C * P,
            bytes_accessed=4 * 4 * B * C * P),
    )(img_low.reshape(B, C, P), mul.reshape(B, C, P), add.reshape(B, C, P),
      color, gamma)
    return out.reshape(B, C, H, W)


# --------------------------------------------------------------------------
# Plain-JAX building blocks (spatial convs + small glue)
# --------------------------------------------------------------------------
def conv2d(x, w, b=None, stride=1, padding=0, groups=1):
    # TODO(synk): spatial (3x3/5x5, strided, depthwise) convs are left to XLA.
    out = lax.conv_general_dilated(
        x, w, window_strides=(stride, stride),
        padding=[(padding, padding), (padding, padding)],
        dimension_numbers=("NCHW", "OIHW", "NCHW"),
        feature_group_count=groups)
    if b is not None:
        out = out + b[None, :, None, None]
    return out


def leaky_relu(x, slope=0.2):
    return jnp.where(x >= 0, x, slope * x)


def gelu(x):
    return jax.nn.gelu(x, approximate=False)


def batchnorm_eval(x, p, eps=1e-5):
    # TODO(synk): BatchNorm2d uses eval-mode running statistics.
    inv = 1.0 / jnp.sqrt(p["v"] + eps)
    return (x - p["m"][None, :, None, None]) * (p["w"] * inv)[None, :, None, None] \
        + p["b"][None, :, None, None]


# --------------------------------------------------------------------------
# Parameter init (deterministic, synthetic)
# --------------------------------------------------------------------------
class KeyGen:
    def __init__(self, key):
        self.key = key

    def __call__(self):
        self.key, k = jax.random.split(self.key)
        return k


def _w(key, shape, scale=0.05):
    return scale * jax.random.normal(key, shape, dtype=jnp.float32)


def init_cblock(kg, dim=LOCAL_DIM, mlp_ratio=4, init_values=1e-4):
    hid = dim * mlp_ratio
    return dict(
        pos_w=_w(kg(), (dim, 1, 3, 3)), pos_b=jnp.zeros((dim,), jnp.float32),
        n1_w=jnp.ones((dim,), jnp.float32), n1_b=jnp.zeros((dim,), jnp.float32),
        c1_w=_w(kg(), (dim, dim)), c1_b=jnp.zeros((dim,), jnp.float32),
        attn_w=_w(kg(), (dim, 1, 5, 5)), attn_b=jnp.zeros((dim,), jnp.float32),
        c2_w=_w(kg(), (dim, dim)), c2_b=jnp.zeros((dim,), jnp.float32),
        g1=jnp.full((dim,), init_values, jnp.float32),
        n2_w=jnp.ones((dim,), jnp.float32), n2_b=jnp.zeros((dim,), jnp.float32),
        fc1_w=_w(kg(), (hid, dim)), fc1_b=jnp.zeros((hid,), jnp.float32),
        fc2_w=_w(kg(), (dim, hid)), fc2_b=jnp.zeros((dim,), jnp.float32),
        g2=jnp.full((dim,), init_values, jnp.float32),
    )


def init_local(kg, in_dim=3, dim=LOCAL_DIM):
    return dict(
        conv1_w=_w(kg(), (dim, in_dim, 3, 3)), conv1_b=jnp.zeros((dim,), jnp.float32),
        mul_blocks=[init_cblock(kg, dim) for _ in range(3)],
        add_blocks=[init_cblock(kg, dim) for _ in range(3)],
        mul_end_w=_w(kg(), (3, dim, 3, 3)), mul_end_b=jnp.zeros((3,), jnp.float32),
        add_end_w=_w(kg(), (3, dim, 3, 3)), add_end_b=jnp.zeros((3,), jnp.float32),
    )


def init_global(kg, in_ch=3, dim=GLOBAL_DIM):
    half = dim // 2
    return dict(
        gamma_base=jnp.ones((1,), jnp.float32),           # type='lol'
        color_base=jnp.eye(3, dtype=jnp.float32),
        ce_w1=_w(kg(), (half, in_ch, 3, 3)), ce_b1=jnp.zeros((half,), jnp.float32),
        bn1=dict(w=jnp.ones((half,), jnp.float32), b=jnp.zeros((half,), jnp.float32),
                 m=jnp.zeros((half,), jnp.float32), v=jnp.ones((half,), jnp.float32)),
        ce_w2=_w(kg(), (dim, half, 3, 3)), ce_b2=jnp.zeros((dim,), jnp.float32),
        bn2=dict(w=jnp.ones((dim,), jnp.float32), b=jnp.zeros((dim,), jnp.float32),
                 m=jnp.zeros((dim,), jnp.float32), v=jnp.ones((dim,), jnp.float32)),
        pos_w=_w(kg(), (dim, 1, 3, 3)), pos_b=jnp.zeros((dim,), jnp.float32),
        n1_w=jnp.ones((dim,), jnp.float32), n1_b=jnp.zeros((dim,), jnp.float32),
        q=jnp.ones((1, N_QUERY, dim), jnp.float32),        # torch init: ones
        k_w=_w(kg(), (dim, dim)),                          # bias=False
        v_w=_w(kg(), (dim, dim)),                          # bias=False
        proj_w=_w(kg(), (dim, dim)), proj_b=jnp.zeros((dim,), jnp.float32),
        n2_w=jnp.ones((dim,), jnp.float32), n2_b=jnp.zeros((dim,), jnp.float32),
        fc1_w=_w(kg(), (dim * 4, dim)), fc1_b=jnp.zeros((dim * 4,), jnp.float32),
        fc2_w=_w(kg(), (dim, dim * 4)), fc2_b=jnp.zeros((dim,), jnp.float32),
        gamma_lin_w=_w(kg(), (1, dim)), gamma_lin_b=jnp.zeros((1,), jnp.float32),
        color_lin_w=_w(kg(), (1, dim)), color_lin_b=jnp.zeros((1,), jnp.float32),
    )


def init_iat(key, in_dim=3):
    kg = KeyGen(key)
    return dict(local=init_local(kg, in_dim), glob=init_global(kg, in_dim))


# --------------------------------------------------------------------------
# Forward passes
# --------------------------------------------------------------------------
def cblock_forward(p, x):
    # DropPath -> identity (inference)
    C = x.shape[1]
    x = x + conv2d(x, p["pos_w"], p["pos_b"], stride=1, padding=1, groups=C)
    # fused LN + 1x1 conv
    y = fused_ln_conv1x1(x, p["n1_w"], p["n1_b"], p["c1_w"], p["c1_b"])
    # depthwise 5x5 "attention" conv (XLA)
    y = conv2d(y, p["attn_w"], p["attn_b"], stride=1, padding=2, groups=C)
    # fused 1x1 conv + layer-scale + residual
    x = fused_conv1x1_scale_res(x, y, p["c2_w"], p["c2_b"], p["g1"])
    # fused MLP (LN + 16->64 + GELU + 64->16 + layer-scale + residual)
    x = fused_cblock_mlp(x, p["n2_w"], p["n2_b"], p["fc1_w"], p["fc1_b"],
                         p["fc2_w"], p["fc2_b"], p["g2"])
    return x


def local_forward(p, img):
    img1 = leaky_relu(conv2d(img, p["conv1_w"], p["conv1_b"], stride=1, padding=1), 0.2)
    m = img1
    for bp in p["mul_blocks"]:
        m = cblock_forward(bp, m)
    m = m + img1
    a = img1
    for bp in p["add_blocks"]:
        a = cblock_forward(bp, a)
    a = a + img1
    mul = jax.nn.relu(conv2d(m, p["mul_end_w"], p["mul_end_b"], stride=1, padding=1))
    add = jnp.tanh(conv2d(a, p["add_end_w"], p["add_end_b"], stride=1, padding=1))
    return mul, add


def global_forward(p, x):
    B = x.shape[0]
    # conv_embedding (stride-2 conv + BN + GELU, twice)
    y = conv2d(x, p["ce_w1"], p["ce_b1"], stride=2, padding=1)
    y = gelu(batchnorm_eval(y, p["bn1"]))
    y = conv2d(y, p["ce_w2"], p["ce_b2"], stride=2, padding=1)
    y = batchnorm_eval(y, p["bn2"])

    # query_SABlock
    C = y.shape[1]
    y = y + conv2d(y, p["pos_w"], p["pos_b"], stride=1, padding=1, groups=C)
    Bh, Ch, Hh, Wh = y.shape
    t = y.reshape(Bh, Ch, Hh * Wh).transpose(0, 2, 1)          # (B, N, C)
    N = t.shape[1]
    hd = C // NUM_HEADS
    scale = hd ** -0.5

    # fused LayerNorm + merged K/V projection (bias=False) in one Pallas matmul
    kv_w = jnp.concatenate([p["k_w"], p["v_w"]], axis=0)       # (2C, C)
    kv = pallas_linear(t, kv_w, None, ln=(p["n1_w"], p["n1_b"]))   # (B, N, 2C)
    k = kv[..., :C].reshape(B, N, NUM_HEADS, hd).transpose(0, 2, 1, 3)
    v = kv[..., C:].reshape(B, N, NUM_HEADS, hd).transpose(0, 2, 1, 3)
    q = jnp.broadcast_to(p["q"], (B, N_QUERY, C)).reshape(
        B, N_QUERY, NUM_HEADS, hd).transpose(0, 2, 1, 3)
    # TODO(synk): tiny 10-query cross-attention stays on XLA einsum/softmax.
    attn = jax.nn.softmax(jnp.einsum("bhqd,bhkd->bhqk", q, k) * scale, axis=-1)
    o = jnp.einsum("bhqk,bhkd->bhqd", attn, v)
    o = o.transpose(0, 2, 1, 3).reshape(B, N_QUERY, C)
    t = pallas_linear(o, p["proj_w"], p["proj_b"])             # (B, 10, C)

    # fused LayerNorm + fc1 + GELU, then fc2, then residual
    t2 = pallas_linear(t, p["fc1_w"], p["fc1_b"], act="gelu",
                       ln=(p["n2_w"], p["n2_b"]))
    t2 = pallas_linear(t2, p["fc2_w"], p["fc2_b"])
    t = t + t2

    # heads (64->1 projections: negligible glue, plain JAX)
    gamma = jnp.einsum("bnc,oc->bno", t[:, 0:1], p["gamma_lin_w"]) + p["gamma_lin_b"]
    gamma = gamma.squeeze(-1) + p["gamma_base"]                # (B, 1)
    color = jnp.einsum("bnc,oc->bno", t[:, 1:], p["color_lin_w"]) + p["color_lin_b"]
    color = color.squeeze(-1).reshape(-1, 3, 3) + p["color_base"]  # (B, 3, 3)
    return gamma, color


def iat_forward(params, img_low, with_global=True):
    mul, add = local_forward(params["local"], img_low)
    if not with_global:
        return mul, add, img_low * mul + add
    gamma, color = global_forward(params["glob"], img_low)
    img_high = pallas_enhance(img_low, mul, add, color, gamma)   # fused Pallas kernel
    return mul, add, img_high


# --------------------------------------------------------------------------
if __name__ == "__main__":
    key = jax.random.PRNGKey(0)
    pkey, xkey = jax.random.split(key)
    params = init_iat(pkey, in_dim=3)
    # low-light image in [0, 1], NCHW
    img_low = jax.random.uniform(xkey, (2, 3, 16, 16), dtype=jnp.float32)

    fwd = jax.jit(functools.partial(iat_forward, with_global=True))
    mul, add, img_high = fwd(params, img_low)
    jax.block_until_ready((mul, add, img_high))

    assert mul.shape == img_low.shape
    assert add.shape == img_low.shape
    assert img_high.shape == img_low.shape
    assert jnp.all(jnp.isfinite(img_high))
    print("KERNEL_OK")
</pallas_src>

<mosaic_0001>
module attributes {stable_mosaic.version = 11 : i64} {
  func.func @_ln_conv1x1_kernel(%arg0: i32, %arg1: i32, %arg2: memref<1x16x256xf32, #tpu.memory_space<vmem>>, %arg3: memref<16x16xf32, #tpu.memory_space<vmem>>, %arg4: memref<16x1xf32, #tpu.memory_space<vmem>>, %arg5: memref<16x1xf32, #tpu.memory_space<vmem>>, %arg6: memref<16x1xf32, #tpu.memory_space<vmem>>, %arg7: memref<1x16x256xf32, #tpu.memory_space<vmem>>) attributes {dimension_semantics = [#tpu.dimension_semantics<parallel>, #tpu.dimension_semantics<parallel>], iteration_bounds = array<i64: 2, 1>, scalar_prefetch = 0 : i64, scratch_operands = 0 : i64, tpu.core_type = #tpu.core_type<tc>, window_params = [{transform_indices = @transform_0, window_bounds = array<i64: 1, 16, 256>}, {pipeline_mode = #tpu.pipeline_mode<synchronous>, transform_indices = @transform_1, window_bounds = array<i64: 16, 16>}, {pipeline_mode = #tpu.pipeline_mode<synchronous>, transform_indices = @transform_2, window_bounds = array<i64: 16, 1>}, {pipeline_mode = #tpu.pipeline_mode<synchronous>, transform_indices = @transform_3, window_bounds = array<i64: 16, 1>}, {pipeline_mode = #tpu.pipeline_mode<synchronous>, transform_indices = @transform_4, window_bounds = array<i64: 16, 1>}, {transform_indices = @transform_5, window_bounds = array<i64: 1, 16, 256>}]} {
    %c0 = arith.constant 0 : index
    %c0_0 = arith.constant 0 : index
    %c0_1 = arith.constant 0 : index
    %0 = vector.load %arg2[%c0, %c0_0, %c0_1] : memref<1x16x256xf32, #tpu.memory_space<vmem>>, vector<1x16x256xf32>
    %1 = vector.shape_cast %0 : vector<1x16x256xf32> to vector<16x256xf32>
    %c0_2 = arith.constant 0 : index
    %c0_3 = arith.constant 0 : index
    %2 = vector.load %arg5[%c0_2, %c0_3] : memref<16x1xf32, #tpu.memory_space<vmem>>, vector<16x1xf32>
    %c0_4 = arith.constant 0 : index
    %c0_5 = arith.constant 0 : index
    %3 = vector.load %arg6[%c0_4, %c0_5] : memref<16x1xf32, #tpu.memory_space<vmem>>, vector<16x1xf32>
    %cst = arith.constant dense<0.000000e+00> : vector<256xf32>
    %4 = vector.multi_reduction <add>, %1, %cst [0] : vector<16x256xf32> to vector<256xf32>
    %5 = vector.shape_cast %4 : vector<256xf32> to vector<1x256xf32>
    %cst_6 = arith.constant 1.600000e+01 : f32
    %6 = vector.broadcast %cst_6 : f32 to vector<1x256xf32>
    %7 = arith.divf %5, %6 : vector<1x256xf32>
    %8 = vector.broadcast %7 : vector<1x256xf32> to vector<16x256xf32>
    %9 = arith.subf %1, %8 : vector<16x256xf32>
    %10 = arith.mulf %9, %9 : vector<16x256xf32>
    %cst_7 = arith.constant dense<0.000000e+00> : vector<256xf32>
    %11 = vector.multi_reduction <add>, %10, %cst_7 [0] : vector<16x256xf32> to vector<256xf32>
    %12 = vector.shape_cast %11 : vector<256xf32> to vector<1x256xf32>
    %cst_8 = arith.constant 1.600000e+01 : f32
    %13 = vector.broadcast %cst_8 : f32 to vector<1x256xf32>
    %14 = arith.divf %12, %13 : vector<1x256xf32>
    %15 = vector.broadcast %7 : vector<1x256xf32> to vector<16x256xf32>
    %16 = arith.subf %1, %15 : vector<16x256xf32>
    %cst_9 = arith.constant 9.99999997E-7 : f32
    %17 = vector.broadcast %cst_9 : f32 to vector<1x256xf32>
    %18 = arith.addf %14, %17 : vector<1x256xf32>
    %19 = math.rsqrt %18 : vector<1x256xf32>
    %20 = vector.broadcast %19 : vector<1x256xf32> to vector<16x256xf32>
    %21 = arith.mulf %16, %20 : vector<16x256xf32>
    %22 = vector.broadcast %2 : vector<16x1xf32> to vector<16x256xf32>
    %23 = arith.mulf %22, %21 : vector<16x256xf32>
    %24 = vector.broadcast %3 : vector<16x1xf32> to vector<16x256xf32>
    %25 = arith.addf %23, %24 : vector<16x256xf32>
    %c0_10 = arith.constant 0 : index
    %c0_11 = arith.constant 0 : index
    %26 = vector.load %arg3[%c0_10, %c0_11] : memref<16x16xf32, #tpu.memory_space<vmem>>, vector<16x16xf32>
    %cst_12 = arith.constant dense<0.000000e+00> : vector<16x256xf32>
    %27 = tpu.matmul %26, %25, %cst_12 {dimension_numbers = #tpu.dot_dimension_numbers<[1], [0], [0], [1], [0, 0, 1, 1], [], []>} : vector<16x16xf32>, vector<16x256xf32>, vector<16x256xf32> -> vector<16x256xf32>
    %c0_13 = arith.constant 0 : index
    %c0_14 = arith.constant 0 : index
    %28 = vector.load %arg4[%c0_13, %c0_14] : memref<16x1xf32, #tpu.memory_space<vmem>>, vector<16x1xf32>
    %29 = vector.broadcast %28 : vector<16x1xf32> to vector<16x256xf32>
    %30 = arith.addf %27, %29 : vector<16x256xf32>
    %c0_15 = arith.constant 0 : index
    %c0_16 = arith.constant 0 : index
    %c0_17 = arith.constant 0 : index
    %31 = vector.load %arg7[%c0_15, %c0_16, %c0_17] : memref<1x16x256xf32, #tpu.memory_space<vmem>>, vector<1x16x256xf32>
    %32 = vector.shape_cast %31 : vector<1x16x256xf32> to vector<16x256xf32>
    %33 = vector.shape_cast %30 : vector<16x256xf32> to vector<1x16x256xf32>
    tpu.vector_store %arg7[%c0_15, %c0_16, %c0_17], %33 {strides = array<i32>} : memref<1x16x256xf32, #tpu.memory_space<vmem>>, vector<1x16x256xf32>,
    return
  }
  func.func @transform_0(%arg0: i32, %arg1: i32) -> (i32, i32, i32) {
    %c0_i32 = arith.constant 0 : i32
    %c0_i32_0 = arith.constant 0 : i32
    return %arg0, %c0_i32, %arg1 : i32, i32, i32
  }
  func.func @transform_1(%arg0: i32, %arg1: i32) -> (i32, i32) {
    %c0_i32 = arith.constant 0 : i32
    %c0_i32_0 = arith.constant 0 : i32
    %c0_i32_1 = arith.constant 0 : i32
    return %c0_i32, %c0_i32_0 : i32, i32
  }
  func.func @transform_2(%arg0: i32, %arg1: i32) -> (i32, i32) {
    %c0_i32 = arith.constant 0 : i32
    %c0_i32_0 = arith.constant 0 : i32
    %c0_i32_1 = arith.constant 0 : i32
    return %c0_i32, %c0_i32_0 : i32, i32
  }
  func.func @transform_3(%arg0: i32, %arg1: i32) -> (i32, i32) {
    %c0_i32 = arith.constant 0 : i32
    %c0_i32_0 = arith.constant 0 : i32
    %c0_i32_1 = arith.constant 0 : i32
    return %c0_i32, %c0_i32_0 : i32, i32
  }
  func.func @transform_4(%arg0: i32, %arg1: i32) -> (i32, i32) {
    %c0_i32 = arith.constant 0 : i32
    %c0_i32_0 = arith.constant 0 : i32
    %c0_i32_1 = arith.constant 0 : i32
    return %c0_i32, %c0_i32_0 : i32, i32
  }
  func.func @transform_5(%arg0: i32, %arg1: i32) -> (i32, i32, i32) {
    %c0_i32 = arith.constant 0 : i32
    %c0_i32_0 = arith.constant 0 : i32
    return %arg0, %c0_i32, %arg1 : i32, i32, i32
  }
}

module attributes {stable_mosaic.version = 11 : i64} {
  func.func @_conv1x1_scale_res_kernel(%arg0: i32, %arg1: i32, %arg2: memref<1x16x256xf32, #tpu.memory_space<vmem>>, %arg3: memref<1x16x256xf32, #tpu.memory_space<vmem>>, %arg4: memref<16x16xf32, #tpu.memory_space<vmem>>, %arg5: memref<16x1xf32, #tpu.memory_space<vmem>>, %arg6: memref<16x1xf32, #tpu.memory_space<vmem>>, %arg7: memref<1x16x256xf32, #tpu.memory_space<vmem>>) attributes {dimension_semantics = [#tpu.dimension_semantics<parallel>, #tpu.dimension_semantics<parallel>], iteration_bounds = array<i64: 2, 1>, scalar_prefetch = 0 : i64, scratch_operands = 0 : i64, tpu.core_type = #tpu.core_type<tc>, window_params = [{transform_indices = @transform_0, window_bounds = array<i64: 1, 16, 256>}, {transform_indices = @transform_1, window_bounds = array<i64: 1, 16, 256>}, {pipeline_mode = #tpu.pipeline_mode<synchronous>, transform_indices = @transform_2, window_bounds = array<i64: 16, 16>}, {pipeline_mode = #tpu.pipeline_mode<synchronous>, transform_indices = @transform_3, window_bounds = array<i64: 16, 1>}, {pipeline_mode = #tpu.pipeline_mode<synchronous>, transform_indices = @transform_4, window_bounds = array<i64: 16, 1>}, {transform_indices = @transform_5, window_bounds = array<i64: 1, 16, 256>}]} {
    %c0 = arith.constant 0 : index
    %c0_0 = arith.constant 0 : index
    %0 = vector.load %arg4[%c0, %c0_0] : memref<16x16xf32, #tpu.memory_space<vmem>>, vector<16x16xf32>
    %c0_1 = arith.constant 0 : index
    %c0_2 = arith.constant 0 : index
    %c0_3 = arith.constant 0 : index
    %1 = vector.load %arg3[%c0_1, %c0_2, %c0_3] : memref<1x16x256xf32, #tpu.memory_space<vmem>>, vector<1x16x256xf32>
    %2 = vector.shape_cast %1 : vector<1x16x256xf32> to vector<16x256xf32>
    %cst = arith.constant dense<0.000000e+00> : vector<16x256xf32>
    %3 = tpu.matmul %0, %2, %cst {dimension_numbers = #tpu.dot_dimension_numbers<[1], [0], [0], [1], [0, 0, 1, 1], [], []>} : vector<16x16xf32>, vector<16x256xf32>, vector<16x256xf32> -> vector<16x256xf32>
    %c0_4 = arith.constant 0 : index
    %c0_5 = arith.constant 0 : index
    %4 = vector.load %arg5[%c0_4, %c0_5] : memref<16x1xf32, #tpu.memory_space<vmem>>, vector<16x1xf32>
    %5 = vector.broadcast %4 : vector<16x1xf32> to vector<16x256xf32>
    %6 = arith.addf %3, %5 : vector<16x256xf32>
    %c0_6 = arith.constant 0 : index
    %c0_7 = arith.constant 0 : index
    %c0_8 = arith.constant 0 : index
    %7 = vector.load %arg2[%c0_6, %c0_7, %c0_8] : memref<1x16x256xf32, #tpu.memory_space<vmem>>, vector<1x16x256xf32>
    %8 = vector.shape_cast %7 : vector<1x16x256xf32> to vector<16x256xf32>
    %c0_9 = arith.constant 0 : index
    %c0_10 = arith.constant 0 : index
    %9 = vector.load %arg6[%c0_9, %c0_10] : memref<16x1xf32, #tpu.memory_space<vmem>>, vector<16x1xf32>
    %10 = vector.broadcast %9 : vector<16x1xf32> to vector<16x256xf32>
    %11 = arith.mulf %10, %6 : vector<16x256xf32>
    %12 = arith.addf %8, %11 : vector<16x256xf32>
    %c0_11 = arith.constant 0 : index
    %c0_12 = arith.constant 0 : index
    %c0_13 = arith.constant 0 : index
    %13 = vector.load %arg7[%c0_11, %c0_12, %c0_13] : memref<1x16x256xf32, #tpu.memory_space<vmem>>, vector<1x16x256xf32>
    %14 = vector.shape_cast %13 : vector<1x16x256xf32> to vector<16x256xf32>
    %15 = vector.shape_cast %12 : vector<16x256xf32> to vector<1x16x256xf32>
    tpu.vector_store %arg7[%c0_11, %c0_12, %c0_13], %15 {strides = array<i32>} : memref<1x16x256xf32, #tpu.memory_space<vmem>>, vector<1x16x256xf32>,
    return
  }
  func.func @transform_0(%arg0: i32, %arg1: i32) -> (i32, i32, i32) {
    %c0_i32 = arith.constant 0 : i32
    %c0_i32_0 = arith.constant 0 : i32
    return %arg0, %c0_i32, %arg1 : i32, i32, i32
  }
  func.func @transform_1(%arg0: i32, %arg1: i32) -> (i32, i32, i32) {
    %c0_i32 = arith.constant 0 : i32
    %c0_i32_0 = arith.constant 0 : i32
    return %arg0, %c0_i32, %arg1 : i32, i32, i32
  }
  func.func @transform_2(%arg0: i32, %arg1: i32) -> (i32, i32) {
    %c0_i32 = arith.constant 0 : i32
    %c0_i32_0 = arith.constant 0 : i32
    %c0_i32_1 = arith.constant 0 : i32
    return %c0_i32, %c0_i32_0 : i32, i32
  }
  func.func @transform_3(%arg0: i32, %arg1: i32) -> (i32, i32) {
    %c0_i32 = arith.constant 0 : i32
    %c0_i32_0 = arith.constant 0 : i32
    %c0_i32_1 = arith.constant 0 : i32
    return %c0_i32, %c0_i32_0 : i32, i32
  }
  func.func @transform_4(%arg0: i32, %arg1: i32) -> (i32, i32) {
    %c0_i32 = arith.constant 0 : i32
    %c0_i32_0 = arith.constant 0 : i32
    %c0_i32_1 = arith.constant 0 : i32
    return %c0_i32, %c0_i32_0 : i32, i32
  }
  func.func @transform_5(%arg0: i32, %arg1: i32) -> (i32, i32, i32) {
    %c0_i32 = arith.constant 0 : i32
    %c0_i32_0 = arith.constant 0 : i32
    return %arg0, %c0_i32, %arg1 : i32, i32, i32
  }
}

module attributes {stable_mosaic.version = 11 : i64} {
  func.func @_cmlp_kernel(%arg0: i32, %arg1: i32, %arg2: memref<1x16x256xf32, #tpu.memory_space<vmem>>, %arg3: memref<16x1xf32, #tpu.memory_space<vmem>>, %arg4: memref<16x1xf32, #tpu.memory_space<vmem>>, %arg5: memref<64x16xf32, #tpu.memory_space<vmem>>, %arg6: memref<64x1xf32, #tpu.memory_space<vmem>>, %arg7: memref<16x64xf32, #tpu.memory_space<vmem>>, %arg8: memref<16x1xf32, #tpu.memory_space<vmem>>, %arg9: memref<16x1xf32, #tpu.memory_space<vmem>>, %arg10: memref<1x16x256xf32, #tpu.memory_space<vmem>>) attributes {dimension_semantics = [#tpu.dimension_semantics<parallel>, #tpu.dimension_semantics<parallel>], iteration_bounds = array<i64: 2, 1>, scalar_prefetch = 0 : i64, scratch_operands = 0 : i64, tpu.core_type = #tpu.core_type<tc>, window_params = [{transform_indices = @transform_0, window_bounds = array<i64: 1, 16, 256>}, {pipeline_mode = #tpu.pipeline_mode<synchronous>, transform_indices = @transform_1, window_bounds = array<i64: 16, 1>}, {pipeline_mode = #tpu.pipeline_mode<synchronous>, transform_indices = @transform_2, window_bounds = array<i64: 16, 1>}, {pipeline_mode = #tpu.pipeline_mode<synchronous>, transform_indices = @transform_3, window_bounds = array<i64: 64, 16>}, {pipeline_mode = #tpu.pipeline_mode<synchronous>, transform_indices = @transform_4, window_bounds = array<i64: 64, 1>}, {pipeline_mode = #tpu.pipeline_mode<synchronous>, transform_indices = @transform_5, window_bounds = array<i64: 16, 64>}, {pipeline_mode = #tpu.pipeline_mode<synchronous>, transform_indices = @transform_6, window_bounds = array<i64: 16, 1>}, {pipeline_mode = #tpu.pipeline_mode<synchronous>, transform_indices = @transform_7, window_bounds = array<i64: 16, 1>}, {transform_indices = @transform_8, window_bounds = array<i64: 1, 16, 256>}]} {
    %c0 = arith.constant 0 : index
    %c0_0 = arith.constant 0 : index
    %c0_1 = arith.constant 0 : index
    %0 = vector.load %arg2[%c0, %c0_0, %c0_1] : memref<1x16x256xf32, #tpu.memory_space<vmem>>, vector<1x16x256xf32>
    %1 = vector.shape_cast %0 : vector<1x16x256xf32> to vector<16x256xf32>
    %c0_2 = arith.constant 0 : index
    %c0_3 = arith.constant 0 : index
    %2 = vector.load %arg3[%c0_2, %c0_3] : memref<16x1xf32, #tpu.memory_space<vmem>>, vector<16x1xf32>
    %c0_4 = arith.constant 0 : index
    %c0_5 = arith.constant 0 : index
    %3 = vector.load %arg4[%c0_4, %c0_5] : memref<16x1xf32, #tpu.memory_space<vmem>>, vector<16x1xf32>
    %cst = arith.constant dense<0.000000e+00> : vector<256xf32>
    %4 = vector.multi_reduction <add>, %1, %cst [0] : vector<16x256xf32> to vector<256xf32>
    %5 = vector.shape_cast %4 : vector<256xf32> to vector<1x256xf32>
    %cst_6 = arith.constant 1.600000e+01 : f32
    %6 = vector.broadcast %cst_6 : f32 to vector<1x256xf32>
    %7 = arith.divf %5, %6 : vector<1x256xf32>
    %8 = vector.broadcast %7 : vector<1x256xf32> to vector<16x256xf32>
    %9 = arith.subf %1, %8 : vector<16x256xf32>
    %10 = arith.mulf %9, %9 : vector<16x256xf32>
    %cst_7 = arith.constant dense<0.000000e+00> : vector<256xf32>
    %11 = vector.multi_reduction <add>, %10, %cst_7 [0] : vector<16x256xf32> to vector<256xf32>
    %12 = vector.shape_cast %11 : vector<256xf32> to vector<1x256xf32>
    %cst_8 = arith.constant 1.600000e+01 : f32
    %13 = vector.broadcast %cst_8 : f32 to vector<1x256xf32>
    %14 = arith.divf %12, %13 : vector<1x256xf32>
    %15 = vector.broadcast %7 : vector<1x256xf32> to vector<16x256xf32>
    %16 = arith.subf %1, %15 : vector<16x256xf32>
    %cst_9 = arith.constant 9.99999997E-7 : f32
    %17 = vector.broadcast %cst_9 : f32 to vector<1x256xf32>
    %18 = arith.addf %14, %17 : vector<1x256xf32>
    %19 = math.rsqrt %18 : vector<1x256xf32>
    %20 = vector.broadcast %19 : vector<1x256xf32> to vector<16x256xf32>
    %21 = arith.mulf %16, %20 : vector<16x256xf32>
    %22 = vector.broadcast %2 : vector<16x1xf32> to vector<16x256xf32>
    %23 = arith.mulf %22, %21 : vector<16x256xf32>
    %24 = vector.broadcast %3 : vector<16x1xf32> to vector<16x256xf32>
    %25 = arith.addf %23, %24 : vector<16x256xf32>
    %c0_10 = arith.constant 0 : index
    %c0_11 = arith.constant 0 : index
    %26 = vector.load %arg5[%c0_10, %c0_11] : memref<64x16xf32, #tpu.memory_space<vmem>>, vector<64x16xf32>
    %cst_12 = arith.constant dense<0.000000e+00> : vector<64x256xf32>
    %27 = tpu.matmul %26, %25, %cst_12 {dimension_numbers = #tpu.dot_dimension_numbers<[1], [0], [0], [1], [0, 0, 1, 1], [], []>} : vector<64x16xf32>, vector<16x256xf32>, vector<64x256xf32> -> vector<64x256xf32>
    %c0_13 = arith.constant 0 : index
    %c0_14 = arith.constant 0 : index
    %28 = vector.load %arg6[%c0_13, %c0_14] : memref<64x1xf32, #tpu.memory_space<vmem>>, vector<64x1xf32>
    %29 = vector.broadcast %28 : vector<64x1xf32> to vector<64x256xf32>
    %30 = arith.addf %27, %29 : vector<64x256xf32>
    %cst_15 = arith.constant 5.000000e-01 : f32
    %31 = vector.broadcast %cst_15 : f32 to vector<64x256xf32>
    %32 = arith.mulf %31, %30 : vector<64x256xf32>
    %cst_16 = arith.constant 4.471500e-02 : f32
    %33 = vector.broadcast %cst_16 : f32 to vector<64x256xf32>
    %34 = arith.mulf %33, %30 : vector<64x256xf32>
    %35 = arith.mulf %34, %30 : vector<64x256xf32>
    %36 = arith.mulf %35, %30 : vector<64x256xf32>
    %37 = arith.addf %30, %36 : vector<64x256xf32>
    %cst_17 = arith.constant 0.797884583 : f32
    %38 = vector.broadcast %cst_17 : f32 to vector<64x256xf32>
    %39 = arith.mulf %38, %37 : vector<64x256xf32>
    %40 = math.tanh %39 : vector<64x256xf32>
    %cst_18 = arith.constant 1.000000e+00 : f32
    %41 = vector.broadcast %cst_18 : f32 to vector<64x256xf32>
    %42 = arith.addf %41, %40 : vector<64x256xf32>
    %43 = arith.mulf %32, %42 : vector<64x256xf32>
    %c0_19 = arith.constant 0 : index
    %c0_20 = arith.constant 0 : index
    %44 = vector.load %arg7[%c0_19, %c0_20] : memref<16x64xf32, #tpu.memory_space<vmem>>, vector<16x64xf32>
    %cst_21 = arith.constant dense<0.000000e+00> : vector<16x256xf32>
    %45 = tpu.matmul %44, %43, %cst_21 {dimension_numbers = #tpu.dot_dimension_numbers<[1], [0], [0], [1], [0, 0, 1, 1], [], []>} : vector<16x64xf32>, vector<64x256xf32>, vector<16x256xf32> -> vector<16x256xf32>
    %c0_22 = arith.constant 0 : index
    %c0_23 = arith.constant 0 : index
    %46 = vector.load %arg8[%c0_22, %c0_23] : memref<16x1xf32, #tpu.memory_space<vmem>>, vector<16x1xf32>
    %47 = vector.broadcast %46 : vector<16x1xf32> to vector<16x256xf32>
    %48 = arith.addf %45, %47 : vector<16x256xf32>
    %c0_24 = arith.constant 0 : index
    %c0_25 = arith.constant 0 : index
    %49 = vector.load %arg9[%c0_24, %c0_25] : memref<16x1xf32, #tpu.memory_space<vmem>>, vector<16x1xf32>
    %50 = vector.broadcast %49 : vector<16x1xf32> to vector<16x256xf32>
    %51 = arith.mulf %50, %48 : vector<16x256xf32>
    %52 = arith.addf %1, %51 : vector<16x256xf32>
    %c0_26 = arith.constant 0 : index
    %c0_27 = arith.constant 0 : index
    %c0_28 = arith.constant 0 : index
    %53 = vector.load %arg10[%c0_26, %c0_27, %c0_28] : memref<1x16x256xf32, #tpu.memory_space<vmem>>, vector<1x16x256xf32>
    %54 = vector.shape_cast %53 : vector<1x16x256xf32> to vector<16x256xf32>
    %55 = vector.shape_cast %52 : vector<16x256xf32> to vector<1x16x256xf32>
    tpu.vector_store %arg10[%c0_26, %c0_27, %c0_28], %55 {strides = array<i32>} : memref<1x16x256xf32, #tpu.memory_space<vmem>>, vector<1x16x256xf32>,
    return
  }
  func.func @transform_0(%arg0: i32, %arg1: i32) -> (i32, i32, i32) {
    %c0_i32 = arith.constant 0 : i32
    %c0_i32_0 = arith.constant 0 : i32
    return %arg0, %c0_i32, %arg1 : i32, i32, i32
  }
  func.func @transform_1(%arg0: i32, %arg1: i32) -> (i32, i32) {
    %c0_i32 = arith.constant 0 : i32
    %c0_i32_0 = arith.constant 0 : i32
    %c0_i32_1 = arith.constant 0 : i32
    return %c0_i32, %c0_i32_0 : i32, i32
  }
  func.func @transform_2(%arg0: i32, %arg1: i32) -> (i32, i32) {
    %c0_i32 = arith.constant 0 : i32
    %c0_i32_0 = arith.constant 0 : i32
    %c0_i32_1 = arith.constant 0 : i32
    return %c0_i32, %c0_i32_0 : i32, i32
  }
  func.func @transform_3(%arg0: i32, %arg1: i32) -> (i32, i32) {
    %c0_i32 = arith.constant 0 : i32
    %c0_i32_0 = arith.constant 0 : i32
    %c0_i32_1 = arith.constant 0 : i32
    return %c0_i32, %c0_i32_0 : i32, i32
  }
  func.func @transform_4(%arg0: i32, %arg1: i32) -> (i32, i32) {
    %c0_i32 = arith.constant 0 : i32
    %c0_i32_0 = arith.constant 0 : i32
    %c0_i32_1 = arith.constant 0 : i32
    return %c0_i32, %c0_i32_0 : i32, i32
  }
  func.func @transform_5(%arg0: i32, %arg1: i32) -> (i32, i32) {
    %c0_i32 = arith.constant 0 : i32
    %c0_i32_0 = arith.constant 0 : i32
    %c0_i32_1 = arith.constant 0 : i32
    return %c0_i32, %c0_i32_0 : i32, i32
  }
  func.func @transform_6(%arg0: i32, %arg1: i32) -> (i32, i32) {
    %c0_i32 = arith.constant 0 : i32
    %c0_i32_0 = arith.constant 0 : i32
    %c0_i32_1 = arith.constant 0 : i32
    return %c0_i32, %c0_i32_0 : i32, i32
  }
  func.func @transform_7(%arg0: i32, %arg1: i32) -> (i32, i32) {
    %c0_i32 = arith.constant 0 : i32
    %c0_i32_0 = arith.constant 0 : i32
    %c0_i32_1 = arith.constant 0 : i32
    return %c0_i32, %c0_i32_0 : i32, i32
  }
  func.func @transform_8(%arg0: i32, %arg1: i32) -> (i32, i32, i32) {
    %c0_i32 = arith.constant 0 : i32
    %c0_i32_0 = arith.constant 0 : i32
    return %arg0, %c0_i32, %arg1 : i32, i32, i32
  }
}

module attributes {stable_mosaic.version = 11 : i64} {
  func.func @_linear_kernel(%arg0: i32, %arg1: memref<32x64xf32, #tpu.memory_space<vmem>>, %arg2: memref<64x128xf32, #tpu.memory_space<vmem>>, %arg3: memref<1x128xf32, #tpu.memory_space<vmem>>, %arg4: memref<1x64xf32, #tpu.memory_space<vmem>>, %arg5: memref<1x64xf32, #tpu.memory_space<vmem>>, %arg6: memref<32x128xf32, #tpu.memory_space<vmem>>) attributes {dimension_semantics = [#tpu.dimension_semantics<parallel>], iteration_bounds = array<i64: 1>, scalar_prefetch = 0 : i64, scratch_operands = 0 : i64, tpu.core_type = #tpu.core_type<tc>, window_params = [{transform_indices = @transform_0, window_bounds = array<i64: 32, 64>}, {pipeline_mode = #tpu.pipeline_mode<synchronous>, transform_indices = @transform_1, window_bounds = array<i64: 64, 128>}, {pipeline_mode = #tpu.pipeline_mode<synchronous>, transform_indices = @transform_2, window_bounds = array<i64: 1, 128>}, {pipeline_mode = #tpu.pipeline_mode<synchronous>, transform_indices = @transform_3, window_bounds = array<i64: 1, 64>}, {pipeline_mode = #tpu.pipeline_mode<synchronous>, transform_indices = @transform_4, window_bounds = array<i64: 1, 64>}, {transform_indices = @transform_5, window_bounds = array<i64: 32, 128>}]} {
    %c0 = arith.constant 0 : index
    %c0_0 = arith.constant 0 : index
    %0 = vector.load %arg1[%c0, %c0_0] : memref<32x64xf32, #tpu.memory_space<vmem>>, vector<32x64xf32>
    %cst = arith.constant dense<0.000000e+00> : vector<32xf32>
    %1 = vector.multi_reduction <add>, %0, %cst [1] : vector<32x64xf32> to vector<32xf32>
    %2 = vector.shape_cast %1 : vector<32xf32> to vector<32x1xf32>
    %cst_1 = arith.constant 6.400000e+01 : f32
    %3 = vector.broadcast %cst_1 : f32 to vector<32x1xf32>
    %4 = arith.divf %2, %3 : vector<32x1xf32>
    %5 = vector.broadcast %4 : vector<32x1xf32> to vector<32x64xf32>
    %6 = arith.subf %0, %5 : vector<32x64xf32>
    %7 = arith.mulf %6, %6 : vector<32x64xf32>
    %cst_2 = arith.constant dense<0.000000e+00> : vector<32xf32>
    %8 = vector.multi_reduction <add>, %7, %cst_2 [1] : vector<32x64xf32> to vector<32xf32>
    %9 = vector.shape_cast %8 : vector<32xf32> to vector<32x1xf32>
    %cst_3 = arith.constant 6.400000e+01 : f32
    %10 = vector.broadcast %cst_3 : f32 to vector<32x1xf32>
    %11 = arith.divf %9, %10 : vector<32x1xf32>
    %12 = vector.broadcast %4 : vector<32x1xf32> to vector<32x64xf32>
    %13 = arith.subf %0, %12 : vector<32x64xf32>
    %cst_4 = arith.constant 9.99999974E-6 : f32
    %14 = vector.broadcast %cst_4 : f32 to vector<32x1xf32>
    %15 = arith.addf %11, %14 : vector<32x1xf32>
    %16 = math.rsqrt %15 : vector<32x1xf32>
    %17 = vector.broadcast %16 : vector<32x1xf32> to vector<32x64xf32>
    %18 = arith.mulf %13, %17 : vector<32x64xf32>
    %c0_5 = arith.constant 0 : index
    %c0_6 = arith.constant 0 : index
    %19 = vector.load %arg4[%c0_5, %c0_6] : memref<1x64xf32, #tpu.memory_space<vmem>>, vector<1x64xf32>
    %20 = vector.broadcast %19 : vector<1x64xf32> to vector<32x64xf32>
    %21 = arith.mulf %18, %20 : vector<32x64xf32>
    %c0_7 = arith.constant 0 : index
    %c0_8 = arith.constant 0 : index
    %22 = vector.load %arg5[%c0_7, %c0_8] : memref<1x64xf32, #tpu.memory_space<vmem>>, vector<1x64xf32>
    %23 = vector.broadcast %22 : vector<1x64xf32> to vector<32x64xf32>
    %24 = arith.addf %21, %23 : vector<32x64xf32>
    %c0_9 = arith.constant 0 : index
    %c0_10 = arith.constant 0 : index
    %25 = vector.load %arg2[%c0_9, %c0_10] : memref<64x128xf32, #tpu.memory_space<vmem>>, vector<64x128xf32>
    %cst_11 = arith.constant dense<0.000000e+00> : vector<32x128xf32>
    %26 = tpu.matmul %24, %25, %cst_11 {dimension_numbers = #tpu.dot_dimension_numbers<[1], [0], [0], [1], [0, 0, 1, 1], [], []>} : vector<32x64xf32>, vector<64x128xf32>, vector<32x128xf32> -> vector<32x128xf32>
    %c0_12 = arith.constant 0 : index
    %c0_13 = arith.constant 0 : index
    %27 = vector.load %arg3[%c0_12, %c0_13] : memref<1x128xf32, #tpu.memory_space<vmem>>, vector<1x128xf32>
    %28 = vector.broadcast %27 : vector<1x128xf32> to vector<32x128xf32>
    %29 = arith.addf %26, %28 : vector<32x128xf32>
    %c0_14 = arith.constant 0 : index
    %c0_15 = arith.constant 0 : index
    %30 = vector.load %arg6[%c0_14, %c0_15] : memref<32x128xf32, #tpu.memory_space<vmem>>, vector<32x128xf32>
    tpu.vector_store %arg6[%c0_14, %c0_15], %29 {strides = array<i32>} : memref<32x128xf32, #tpu.memory_space<vmem>>, vector<32x128xf32>,
    return
  }
  func.func @transform_0(%arg0: i32) -> (i32, i32) {
    %c0_i32 = arith.constant 0 : i32
    %c0_i32_0 = arith.constant 0 : i32
    return %arg0, %c0_i32 : i32, i32
  }
  func.func @transform_1(%arg0: i32) -> (i32, i32) {
    %c0_i32 = arith.constant 0 : i32
    %c0_i32_0 = arith.constant 0 : i32
    %c0_i32_1 = arith.constant 0 : i32
    return %c0_i32, %c0_i32_0 : i32, i32
  }
  func.func @transform_2(%arg0: i32) -> (i32, i32) {
    %c0_i32 = arith.constant 0 : i32
    %c0_i32_0 = arith.constant 0 : i32
    %c0_i32_1 = arith.constant 0 : i32
    return %c0_i32, %c0_i32_0 : i32, i32
  }
  func.func @transform_3(%arg0: i32) -> (i32, i32) {
    %c0_i32 = arith.constant 0 : i32
    %c0_i32_0 = arith.constant 0 : i32
    %c0_i32_1 = arith.constant 0 : i32
    return %c0_i32, %c0_i32_0 : i32, i32
  }
  func.func @transform_4(%arg0: i32) -> (i32, i32) {
    %c0_i32 = arith.constant 0 : i32
    %c0_i32_0 = arith.constant 0 : i32
    %c0_i32_1 = arith.constant 0 : i32
    return %c0_i32, %c0_i32_0 : i32, i32
  }
  func.func @transform_5(%arg0: i32) -> (i32, i32) {
    %c0_i32 = arith.constant 0 : i32
    %c0_i32_0 = arith.constant 0 : i32
    return %arg0, %c0_i32 : i32, i32
  }
}

module attributes {stable_mosaic.version = 11 : i64} {
  func.func @_linear_kernel(%arg0: i32, %arg1: memref<20x64xf32, #tpu.memory_space<vmem>>, %arg2: memref<64x64xf32, #tpu.memory_space<vmem>>, %arg3: memref<1x64xf32, #tpu.memory_space<vmem>>, %arg4: memref<1x64xf32, #tpu.memory_space<vmem>>, %arg5: memref<1x64xf32, #tpu.memory_space<vmem>>, %arg6: memref<20x64xf32, #tpu.memory_space<vmem>>) attributes {dimension_semantics = [#tpu.dimension_semantics<parallel>], iteration_bounds = array<i64: 1>, scalar_prefetch = 0 : i64, scratch_operands = 0 : i64, tpu.core_type = #tpu.core_type<tc>, window_params = [{transform_indices = @transform_0, window_bounds = array<i64: 20, 64>}, {pipeline_mode = #tpu.pipeline_mode<synchronous>, transform_indices = @transform_1, window_bounds = array<i64: 64, 64>}, {pipeline_mode = #tpu.pipeline_mode<synchronous>, transform_indices = @transform_2, window_bounds = array<i64: 1, 64>}, {pipeline_mode = #tpu.pipeline_mode<synchronous>, transform_indices = @transform_3, window_bounds = array<i64: 1, 64>}, {pipeline_mode = #tpu.pipeline_mode<synchronous>, transform_indices = @transform_4, window_bounds = array<i64: 1, 64>}, {transform_indices = @transform_5, window_bounds = array<i64: 20, 64>}]} {
    %c0 = arith.constant 0 : index
    %c0_0 = arith.constant 0 : index
    %0 = vector.load %arg1[%c0, %c0_0] : memref<20x64xf32, #tpu.memory_space<vmem>>, vector<20x64xf32>
    %c0_1 = arith.constant 0 : index
    %c0_2 = arith.constant 0 : index
    %1 = vector.load %arg2[%c0_1, %c0_2] : memref<64x64xf32, #tpu.memory_space<vmem>>, vector<64x64xf32>
    %cst = arith.constant dense<0.000000e+00> : vector<20x64xf32>
    %2 = tpu.matmul %0, %1, %cst {dimension_numbers = #tpu.dot_dimension_numbers<[1], [0], [0], [1], [0, 0, 1, 1], [], []>} : vector<20x64xf32>, vector<64x64xf32>, vector<20x64xf32> -> vector<20x64xf32>
    %c0_3 = arith.constant 0 : index
    %c0_4 = arith.constant 0 : index
    %3 = vector.load %arg3[%c0_3, %c0_4] : memref<1x64xf32, #tpu.memory_space<vmem>>, vector<1x64xf32>
    %4 = vector.broadcast %3 : vector<1x64xf32> to vector<20x64xf32>
    %5 = arith.addf %2, %4 : vector<20x64xf32>
    %c0_5 = arith.constant 0 : index
    %c0_6 = arith.constant 0 : index
    %6 = vector.load %arg6[%c0_5, %c0_6] : memref<20x64xf32, #tpu.memory_space<vmem>>, vector<20x64xf32>
    tpu.vector_store %arg6[%c0_5, %c0_6], %5 {strides = array<i32>} : memref<20x64xf32, #tpu.memory_space<vmem>>, vector<20x64xf32>,
    return
  }
  func.func @transform_0(%arg0: i32) -> (i32, i32) {
    %c0_i32 = arith.constant 0 : i32
    %c0_i32_0 = arith.constant 0 : i32
    return %arg0, %c0_i32 : i32, i32
  }
  func.func @transform_1(%arg0: i32) -> (i32, i32) {
    %c0_i32 = arith.constant 0 : i32
    %c0_i32_0 = arith.constant 0 : i32
    %c0_i32_1 = arith.constant 0 : i32
    return %c0_i32, %c0_i32_0 : i32, i32
  }
  func.func @transform_2(%arg0: i32) -> (i32, i32) {
    %c0_i32 = arith.constant 0 : i32
    %c0_i32_0 = arith.constant 0 : i32
    %c0_i32_1 = arith.constant 0 : i32
    return %c0_i32, %c0_i32_0 : i32, i32
  }
  func.func @transform_3(%arg0: i32) -> (i32, i32) {
    %c0_i32 = arith.constant 0 : i32
    %c0_i32_0 = arith.constant 0 : i32
    %c0_i32_1 = arith.constant 0 : i32
    return %c0_i32, %c0_i32_0 : i32, i32
  }
  func.func @transform_4(%arg0: i32) -> (i32, i32) {
    %c0_i32 = arith.constant 0 : i32
    %c0_i32_0 = arith.constant 0 : i32
    %c0_i32_1 = arith.constant 0 : i32
    return %c0_i32, %c0_i32_0 : i32, i32
  }
  func.func @transform_5(%arg0: i32) -> (i32, i32) {
    %c0_i32 = arith.constant 0 : i32
    %c0_i32_0 = arith.constant 0 : i32
    return %arg0, %c0_i32 : i32, i32
  }
}

module attributes {stable_mosaic.version = 11 : i64} {
  func.func @_linear_kernel(%arg0: i32, %arg1: memref<20x64xf32, #tpu.memory_space<vmem>>, %arg2: memref<64x256xf32, #tpu.memory_space<vmem>>, %arg3: memref<1x256xf32, #tpu.memory_space<vmem>>, %arg4: memref<1x64xf32, #tpu.memory_space<vmem>>, %arg5: memref<1x64xf32, #tpu.memory_space<vmem>>, %arg6: memref<20x256xf32, #tpu.memory_space<vmem>>) attributes {dimension_semantics = [#tpu.dimension_semantics<parallel>], iteration_bounds = array<i64: 1>, scalar_prefetch = 0 : i64, scratch_operands = 0 : i64, tpu.core_type = #tpu.core_type<tc>, window_params = [{transform_indices = @transform_0, window_bounds = array<i64: 20, 64>}, {pipeline_mode = #tpu.pipeline_mode<synchronous>, transform_indices = @transform_1, window_bounds = array<i64: 64, 256>}, {pipeline_mode = #tpu.pipeline_mode<synchronous>, transform_indices = @transform_2, window_bounds = array<i64: 1, 256>}, {pipeline_mode = #tpu.pipeline_mode<synchronous>, transform_indices = @transform_3, window_bounds = array<i64: 1, 64>}, {pipeline_mode = #tpu.pipeline_mode<synchronous>, transform_indices = @transform_4, window_bounds = array<i64: 1, 64>}, {transform_indices = @transform_5, window_bounds = array<i64: 20, 256>}]} {
    %c0 = arith.constant 0 : index
    %c0_0 = arith.constant 0 : index
    %0 = vector.load %arg1[%c0, %c0_0] : memref<20x64xf32, #tpu.memory_space<vmem>>, vector<20x64xf32>
    %cst = arith.constant dense<0.000000e+00> : vector<20xf32>
    %1 = vector.multi_reduction <add>, %0, %cst [1] : vector<20x64xf32> to vector<20xf32>
    %2 = vector.shape_cast %1 : vector<20xf32> to vector<20x1xf32>
    %cst_1 = arith.constant 6.400000e+01 : f32
    %3 = vector.broadcast %cst_1 : f32 to vector<20x1xf32>
    %4 = arith.divf %2, %3 : vector<20x1xf32>
    %5 = vector.broadcast %4 : vector<20x1xf32> to vector<20x64xf32>
    %6 = arith.subf %0, %5 : vector<20x64xf32>
    %7 = arith.mulf %6, %6 : vector<20x64xf32>
    %cst_2 = arith.constant dense<0.000000e+00> : vector<20xf32>
    %8 = vector.multi_reduction <add>, %7, %cst_2 [1] : vector<20x64xf32> to vector<20xf32>
    %9 = vector.shape_cast %8 : vector<20xf32> to vector<20x1xf32>
    %cst_3 = arith.constant 6.400000e+01 : f32
    %10 = vector.broadcast %cst_3 : f32 to vector<20x1xf32>
    %11 = arith.divf %9, %10 : vector<20x1xf32>
    %12 = vector.broadcast %4 : vector<20x1xf32> to vector<20x64xf32>
    %13 = arith.subf %0, %12 : vector<20x64xf32>
    %cst_4 = arith.constant 9.99999974E-6 : f32
    %14 = vector.broadcast %cst_4 : f32 to vector<20x1xf32>
    %15 = arith.addf %11, %14 : vector<20x1xf32>
    %16 = math.rsqrt %15 : vector<20x1xf32>
    %17 = vector.broadcast %16 : vector<20x1xf32> to vector<20x64xf32>
    %18 = arith.mulf %13, %17 : vector<20x64xf32>
    %c0_5 = arith.constant 0 : index
    %c0_6 = arith.constant 0 : index
    %19 = vector.load %arg4[%c0_5, %c0_6] : memref<1x64xf32, #tpu.memory_space<vmem>>, vector<1x64xf32>
    %20 = vector.broadcast %19 : vector<1x64xf32> to vector<20x64xf32>
    %21 = arith.mulf %18, %20 : vector<20x64xf32>
    %c0_7 = arith.constant 0 : index
    %c0_8 = arith.constant 0 : index
    %22 = vector.load %arg5[%c0_7, %c0_8] : memref<1x64xf32, #tpu.memory_space<vmem>>, vector<1x64xf32>
    %23 = vector.broadcast %22 : vector<1x64xf32> to vector<20x64xf32>
    %24 = arith.addf %21, %23 : vector<20x64xf32>
    %c0_9 = arith.constant 0 : index
    %c0_10 = arith.constant 0 : index
    %25 = vector.load %arg2[%c0_9, %c0_10] : memref<64x256xf32, #tpu.memory_space<vmem>>, vector<64x256xf32>
    %cst_11 = arith.constant dense<0.000000e+00> : vector<20x256xf32>
    %26 = tpu.matmul %24, %25, %cst_11 {dimension_numbers = #tpu.dot_dimension_numbers<[1], [0], [0], [1], [0, 0, 1, 1], [], []>} : vector<20x64xf32>, vector<64x256xf32>, vector<20x256xf32> -> vector<20x256xf32>
    %c0_12 = arith.constant 0 : index
    %c0_13 = arith.constant 0 : index
    %27 = vector.load %arg3[%c0_12, %c0_13] : memref<1x256xf32, #tpu.memory_space<vmem>>, vector<1x256xf32>
    %28 = vector.broadcast %27 : vector<1x256xf32> to vector<20x256xf32>
    %29 = arith.addf %26, %28 : vector<20x256xf32>
    %cst_14 = arith.constant 5.000000e-01 : f32
    %30 = vector.broadcast %cst_14 : f32 to vector<20x256xf32>
    %31 = arith.mulf %30, %29 : vector<20x256xf32>
    %cst_15 = arith.constant 4.471500e-02 : f32
    %32 = vector.broadcast %cst_15 : f32 to vector<20x256xf32>
    %33 = arith.mulf %32, %29 : vector<20x256xf32>
    %34 = arith.mulf %33, %29 : vector<20x256xf32>
    %35 = arith.mulf %34, %29 : vector<20x256xf32>
    %36 = arith.addf %29, %35 : vector<20x256xf32>
    %cst_16 = arith.constant 0.797884583 : f32
    %37 = vector.broadcast %cst_16 : f32 to vector<20x256xf32>
    %38 = arith.mulf %37, %36 : vector<20x256xf32>
    %39 = math.tanh %38 : vector<20x256xf32>
    %cst_17 = arith.constant 1.000000e+00 : f32
    %40 = vector.broadcast %cst_17 : f32 to vector<20x256xf32>
    %41 = arith.addf %40, %39 : vector<20x256xf32>
    %42 = arith.mulf %31, %41 : vector<20x256xf32>
    %c0_18 = arith.constant 0 : index
    %c0_19 = arith.constant 0 : index
    %43 = vector.load %arg6[%c0_18, %c0_19] : memref<20x256xf32, #tpu.memory_space<vmem>>, vector<20x256xf32>
    tpu.vector_store %arg6[%c0_18, %c0_19], %42 {strides = array<i32>} : memref<20x256xf32, #tpu.memory_space<vmem>>, vector<20x256xf32>,
    return
  }
  func.func @transform_0(%arg0: i32) -> (i32, i32) {
    %c0_i32 = arith.constant 0 : i32
    %c0_i32_0 = arith.constant 0 : i32
    return %arg0, %c0_i32 : i32, i32
  }
  func.func @transform_1(%arg0: i32) -> (i32, i32) {
    %c0_i32 = arith.constant 0 : i32
    %c0_i32_0 = arith.constant 0 : i32
    %c0_i32_1 = arith.constant 0 : i32
    return %c0_i32, %c0_i32_0 : i32, i32
  }
  func.func @transform_2(%arg0: i32) -> (i32, i32) {
    %c0_i32 = arith.constant 0 : i32
    %c0_i32_0 = arith.constant 0 : i32
    %c0_i32_1 = arith.constant 0 : i32
    return %c0_i32, %c0_i32_0 : i32, i32
  }
  func.func @transform_3(%arg0: i32) -> (i32, i32) {
    %c0_i32 = arith.constant 0 : i32
    %c0_i32_0 = arith.constant 0 : i32
    %c0_i32_1 = arith.constant 0 : i32
    return %c0_i32, %c0_i32_0 : i32, i32
  }
  func.func @transform_4(%arg0: i32) -> (i32, i32) {
    %c0_i32 = arith.constant 0 : i32
    %c0_i32_0 = arith.constant 0 : i32
    %c0_i32_1 = arith.constant 0 : i32
    return %c0_i32, %c0_i32_0 : i32, i32
  }
  func.func @transform_5(%arg0: i32) -> (i32, i32) {
    %c0_i32 = arith.constant 0 : i32
    %c0_i32_0 = arith.constant 0 : i32
    return %arg0, %c0_i32 : i32, i32
  }
}

module attributes {stable_mosaic.version = 11 : i64} {
  func.func @_linear_kernel(%arg0: i32, %arg1: memref<20x256xf32, #tpu.memory_space<vmem>>, %arg2: memref<256x64xf32, #tpu.memory_space<vmem>>, %arg3: memref<1x64xf32, #tpu.memory_space<vmem>>, %arg4: memref<1x256xf32, #tpu.memory_space<vmem>>, %arg5: memref<1x256xf32, #tpu.memory_space<vmem>>, %arg6: memref<20x64xf32, #tpu.memory_space<vmem>>) attributes {dimension_semantics = [#tpu.dimension_semantics<parallel>], iteration_bounds = array<i64: 1>, scalar_prefetch = 0 : i64, scratch_operands = 0 : i64, tpu.core_type = #tpu.core_type<tc>, window_params = [{transform_indices = @transform_0, window_bounds = array<i64: 20, 256>}, {pipeline_mode = #tpu.pipeline_mode<synchronous>, transform_indices = @transform_1, window_bounds = array<i64: 256, 64>}, {pipeline_mode = #tpu.pipeline_mode<synchronous>, transform_indices = @transform_2, window_bounds = array<i64: 1, 64>}, {pipeline_mode = #tpu.pipeline_mode<synchronous>, transform_indices = @transform_3, window_bounds = array<i64: 1, 256>}, {pipeline_mode = #tpu.pipeline_mode<synchronous>, transform_indices = @transform_4, window_bounds = array<i64: 1, 256>}, {transform_indices = @transform_5, window_bounds = array<i64: 20, 64>}]} {
    %c0 = arith.constant 0 : index
    %c0_0 = arith.constant 0 : index
    %0 = vector.load %arg1[%c0, %c0_0] : memref<20x256xf32, #tpu.memory_space<vmem>>, vector<20x256xf32>
    %c0_1 = arith.constant 0 : index
    %c0_2 = arith.constant 0 : index
    %1 = vector.load %arg2[%c0_1, %c0_2] : memref<256x64xf32, #tpu.memory_space<vmem>>, vector<256x64xf32>
    %cst = arith.constant dense<0.000000e+00> : vector<20x64xf32>
    %2 = tpu.matmul %0, %1, %cst {dimension_numbers = #tpu.dot_dimension_numbers<[1], [0], [0], [1], [0, 0, 1, 1], [], []>} : vector<20x256xf32>, vector<256x64xf32>, vector<20x64xf32> -> vector<20x64xf32>
    %c0_3 = arith.constant 0 : index
    %c0_4 = arith.constant 0 : index
    %3 = vector.load %arg3[%c0_3, %c0_4] : memref<1x64xf32, #tpu.memory_space<vmem>>, vector<1x64xf32>
    %4 = vector.broadcast %3 : vector<1x64xf32> to vector<20x64xf32>
    %5 = arith.addf %2, %4 : vector<20x64xf32>
    %c0_5 = arith.constant 0 : index
    %c0_6 = arith.constant 0 : index
    %6 = vector.load %arg6[%c0_5, %c0_6] : memref<20x64xf32, #tpu.memory_space<vmem>>, vector<20x64xf32>
    tpu.vector_store %arg6[%c0_5, %c0_6], %5 {strides = array<i32>} : memref<20x64xf32, #tpu.memory_space<vmem>>, vector<20x64xf32>,
    return
  }
  func.func @transform_0(%arg0: i32) -> (i32, i32) {
    %c0_i32 = arith.constant 0 : i32
    %c0_i32_0 = arith.constant 0 : i32
    return %arg0, %c0_i32 : i32, i32
  }
  func.func @transform_1(%arg0: i32) -> (i32, i32) {
    %c0_i32 = arith.constant 0 : i32
    %c0_i32_0 = arith.constant 0 : i32
    %c0_i32_1 = arith.constant 0 : i32
    return %c0_i32, %c0_i32_0 : i32, i32
  }
  func.func @transform_2(%arg0: i32) -> (i32, i32) {
    %c0_i32 = arith.constant 0 : i32
    %c0_i32_0 = arith.constant 0 : i32
    %c0_i32_1 = arith.constant 0 : i32
    return %c0_i32, %c0_i32_0 : i32, i32
  }
  func.func @transform_3(%arg0: i32) -> (i32, i32) {
    %c0_i32 = arith.constant 0 : i32
    %c0_i32_0 = arith.constant 0 : i32
    %c0_i32_1 = arith.constant 0 : i32
    return %c0_i32, %c0_i32_0 : i32, i32
  }
  func.func @transform_4(%arg0: i32) -> (i32, i32) {
    %c0_i32 = arith.constant 0 : i32
    %c0_i32_0 = arith.constant 0 : i32
    %c0_i32_1 = arith.constant 0 : i32
    return %c0_i32, %c0_i32_0 : i32, i32
  }
  func.func @transform_5(%arg0: i32) -> (i32, i32) {
    %c0_i32 = arith.constant 0 : i32
    %c0_i32_0 = arith.constant 0 : i32
    return %arg0, %c0_i32 : i32, i32
  }
}

module attributes {stable_mosaic.version = 11 : i64} {
  func.func @_enhance_kernel(%arg0: i32, %arg1: i32, %arg2: memref<1x3x256xf32, #tpu.memory_space<vmem>>, %arg3: memref<1x3x256xf32, #tpu.memory_space<vmem>>, %arg4: memref<1x3x256xf32, #tpu.memory_space<vmem>>, %arg5: memref<2x3x3xf32, #tpu.memory_space<smem>>, %arg6: memref<2x1xf32, #tpu.memory_space<smem>>, %arg7: memref<1x3x256xf32, #tpu.memory_space<vmem>>) attributes {dimension_semantics = [#tpu.dimension_semantics<parallel>, #tpu.dimension_semantics<parallel>], iteration_bounds = array<i64: 2, 1>, scalar_prefetch = 0 : i64, scratch_operands = 0 : i64, tpu.core_type = #tpu.core_type<tc>, window_params = [{transform_indices = @transform_0, window_bounds = array<i64: 1, 3, 256>}, {transform_indices = @transform_1, window_bounds = array<i64: 1, 3, 256>}, {transform_indices = @transform_2, window_bounds = array<i64: 1, 3, 256>}, {transform_indices = @transform_3, window_bounds = array<i64: 2, 3, 3>}, {transform_indices = @transform_4, window_bounds = array<i64: 2, 1>}, {transform_indices = @transform_5, window_bounds = array<i64: 1, 3, 256>}]} {
    %c0 = arith.constant 0 : index
    %c0_0 = arith.constant 0 : index
    %c0_1 = arith.constant 0 : index
    %0 = vector.load %arg2[%c0, %c0_0, %c0_1] : memref<1x3x256xf32, #tpu.memory_space<vmem>>, vector<1x3x256xf32>
    %1 = vector.shape_cast %0 : vector<1x3x256xf32> to vector<3x256xf32>
    %c0_2 = arith.constant 0 : index
    %c0_3 = arith.constant 0 : index
    %c0_4 = arith.constant 0 : index
    %2 = vector.load %arg3[%c0_2, %c0_3, %c0_4] : memref<1x3x256xf32, #tpu.memory_space<vmem>>, vector<1x3x256xf32>
    %3 = vector.shape_cast %2 : vector<1x3x256xf32> to vector<3x256xf32>
    %4 = arith.mulf %1, %3 : vector<3x256xf32>
    %c0_5 = arith.constant 0 : index
    %c0_6 = arith.constant 0 : index
    %c0_7 = arith.constant 0 : index
    %5 = vector.load %arg4[%c0_5, %c0_6, %c0_7] : memref<1x3x256xf32, #tpu.memory_space<vmem>>, vector<1x3x256xf32>
    %6 = vector.shape_cast %5 : vector<1x3x256xf32> to vector<3x256xf32>
    %7 = arith.addf %4, %6 : vector<3x256xf32>
    %8 = arith.index_cast %arg0 : i32 to index
    %c0_8 = arith.constant 0 : index
    %9 = memref.load %arg6[%8, %c0_8] : memref<2x1xf32, #tpu.memory_space<smem>>
    %10 = vector.extract_strided_slice %7 {offsets = [0, 0], sizes = [1, 256], strides = [1, 1]} : vector<3x256xf32> to vector<1x256xf32>
    %11 = vector.extract_strided_slice %7 {offsets = [1, 0], sizes = [1, 256], strides = [1, 1]} : vector<3x256xf32> to vector<1x256xf32>
    %12 = vector.extract_strided_slice %7 {offsets = [2, 0], sizes = [1, 256], strides = [1, 1]} : vector<3x256xf32> to vector<1x256xf32>
    %13 = arith.index_cast %arg0 : i32 to index
    %c0_9 = arith.constant 0 : index
    %c0_10 = arith.constant 0 : index
    %14 = memref.load %arg5[%13, %c0_9, %c0_10] : memref<2x3x3xf32, #tpu.memory_space<smem>>
    %15 = vector.broadcast %14 : f32 to vector<1x256xf32>
    %16 = arith.mulf %15, %10 : vector<1x256xf32>
    %17 = arith.index_cast %arg0 : i32 to index
    %c0_11 = arith.constant 0 : index
    %c1 = arith.constant 1 : index
    %18 = memref.load %arg5[%17, %c0_11, %c1] : memref<2x3x3xf32, #tpu.memory_space<smem>>
    %19 = vector.broadcast %18 : f32 to vector<1x256xf32>
    %20 = arith.mulf %19, %11 : vector<1x256xf32>
    %21 = arith.addf %16, %20 : vector<1x256xf32>
    %22 = arith.index_cast %arg0 : i32 to index
    %c0_12 = arith.constant 0 : index
    %c2 = arith.constant 2 : index
    %23 = memref.load %arg5[%22, %c0_12, %c2] : memref<2x3x3xf32, #tpu.memory_space<smem>>
    %24 = vector.broadcast %23 : f32 to vector<1x256xf32>
    %25 = arith.mulf %24, %12 : vector<1x256xf32>
    %26 = arith.addf %21, %25 : vector<1x256xf32>
    %cst = arith.constant 9.99999993E-9 : f32
    %cst_13 = arith.constant 1.000000e+00 : f32
    %27 = vector.broadcast %cst : f32 to vector<1x256xf32>
    %28 = arith.maximumf %27, %26 : vector<1x256xf32>
    %29 = vector.broadcast %cst_13 : f32 to vector<1x256xf32>
    %30 = arith.minimumf %29, %28 : vector<1x256xf32>
    %31 = math.log %30 : vector<1x256xf32>
    %32 = vector.broadcast %9 : f32 to vector<1x256xf32>
    %33 = arith.mulf %32, %31 : vector<1x256xf32>
    %34 = math.exp %33 : vector<1x256xf32>
    %c0_14 = arith.constant 0 : index
    %c0_15 = arith.constant 0 : index
    %c0_16 = arith.constant 0 : index
    %35 = vector.load %arg7[%c0_14, %c0_15, %c0_16] : memref<1x3x256xf32, #tpu.memory_space<vmem>>, vector<1x1x256xf32>
    %36 = vector.shape_cast %35 : vector<1x1x256xf32> to vector<1x256xf32>
    %37 = vector.shape_cast %34 : vector<1x256xf32> to vector<1x1x256xf32>
    tpu.vector_store %arg7[%c0_14, %c0_15, %c0_16], %37 {strides = array<i32>} : memref<1x3x256xf32, #tpu.memory_space<vmem>>, vector<1x1x256xf32>,
    %38 = arith.index_cast %arg0 : i32 to index
    %c1_17 = arith.constant 1 : index
    %c0_18 = arith.constant 0 : index
    %39 = memref.load %arg5[%38, %c1_17, %c0_18] : memref<2x3x3xf32, #tpu.memory_space<smem>>
    %40 = vector.broadcast %39 : f32 to vector<1x256xf32>
    %41 = arith.mulf %40, %10 : vector<1x256xf32>
    %42 = arith.index_cast %arg0 : i32 to index
    %c1_19 = arith.constant 1 : index
    %c1_20 = arith.constant 1 : index
    %43 = memref.load %arg5[%42, %c1_19, %c1_20] : memref<2x3x3xf32, #tpu.memory_space<smem>>
    %44 = vector.broadcast %43 : f32 to vector<1x256xf32>
    %45 = arith.mulf %44, %11 : vector<1x256xf32>
    %46 = arith.addf %41, %45 : vector<1x256xf32>
    %47 = arith.index_cast %arg0 : i32 to index
    %c1_21 = arith.constant 1 : index
    %c2_22 = arith.constant 2 : index
    %48 = memref.load %arg5[%47, %c1_21, %c2_22] : memref<2x3x3xf32, #tpu.memory_space<smem>>
    %49 = vector.broadcast %48 : f32 to vector<1x256xf32>
    %50 = arith.mulf %49, %12 : vector<1x256xf32>
    %51 = arith.addf %46, %50 : vector<1x256xf32>
    %cst_23 = arith.constant 9.99999993E-9 : f32
    %cst_24 = arith.constant 1.000000e+00 : f32
    %52 = vector.broadcast %cst_23 : f32 to vector<1x256xf32>
    %53 = arith.maximumf %52, %51 : vector<1x256xf32>
    %54 = vector.broadcast %cst_24 : f32 to vector<1x256xf32>
    %55 = arith.minimumf %54, %53 : vector<1x256xf32>
    %56 = math.log %55 : vector<1x256xf32>
    %57 = vector.broadcast %9 : f32 to vector<1x256xf32>
    %58 = arith.mulf %57, %56 : vector<1x256xf32>
    %59 = math.exp %58 : vector<1x256xf32>
    %c0_25 = arith.constant 0 : index
    %c1_26 = arith.constant 1 : index
    %c0_27 = arith.constant 0 : index
    %60 = vector.load %arg7[%c0_25, %c1_26, %c0_27] : memref<1x3x256xf32, #tpu.memory_space<vmem>>, vector<1x1x256xf32>
    %61 = vector.shape_cast %60 : vector<1x1x256xf32> to vector<1x256xf32>
    %62 = vector.shape_cast %59 : vector<1x256xf32> to vector<1x1x256xf32>
    tpu.vector_store %arg7[%c0_25, %c1_26, %c0_27], %62 {strides = array<i32>} : memref<1x3x256xf32, #tpu.memory_space<vmem>>, vector<1x1x256xf32>,
    %63 = arith.index_cast %arg0 : i32 to index
    %c2_28 = arith.constant 2 : index
    %c0_29 = arith.constant 0 : index
    %64 = memref.load %arg5[%63, %c2_28, %c0_29] : memref<2x3x3xf32, #tpu.memory_space<smem>>
    %65 = vector.broadcast %64 : f32 to vector<1x256xf32>
    %66 = arith.mulf %65, %10 : vector<1x256xf32>
    %67 = arith.index_cast %arg0 : i32 to index
    %c2_30 = arith.constant 2 : index
    %c1_31 = arith.constant 1 : index
    %68 = memref.load %arg5[%67, %c2_30, %c1_31] : memref<2x3x3xf32, #tpu.memory_space<smem>>
    %69 = vector.broadcast %68 : f32 to vector<1x256xf32>
    %70 = arith.mulf %69, %11 : vector<1x256xf32>
    %71 = arith.addf %66, %70 : vector<1x256xf32>
    %72 = arith.index_cast %arg0 : i32 to index
    %c2_32 = arith.constant 2 : index
    %c2_33 = arith.constant 2 : index
    %73 = memref.load %arg5[%72, %c2_32, %c2_33] : memref<2x3x3xf32, #tpu.memory_space<smem>>
    %74 = vector.broadcast %73 : f32 to vector<1x256xf32>
    %75 = arith.mulf %74, %12 : vector<1x256xf32>
    %76 = arith.addf %71, %75 : vector<1x256xf32>
    %cst_34 = arith.constant 9.99999993E-9 : f32
    %cst_35 = arith.constant 1.000000e+00 : f32
    %77 = vector.broadcast %cst_34 : f32 to vector<1x256xf32>
    %78 = arith.maximumf %77, %76 : vector<1x256xf32>
    %79 = vector.broadcast %cst_35 : f32 to vector<1x256xf32>
    %80 = arith.minimumf %79, %78 : vector<1x256xf32>
    %81 = math.log %80 : vector<1x256xf32>
    %82 = vector.broadcast %9 : f32 to vector<1x256xf32>
    %83 = arith.mulf %82, %81 : vector<1x256xf32>
    %84 = math.exp %83 : vector<1x256xf32>
    %c0_36 = arith.constant 0 : index
    %c2_37 = arith.constant 2 : index
    %c0_38 = arith.constant 0 : index
    %85 = vector.load %arg7[%c0_36, %c2_37, %c0_38] : memref<1x3x256xf32, #tpu.memory_space<vmem>>, vector<1x1x256xf32>
    %86 = vector.shape_cast %85 : vector<1x1x256xf32> to vector<1x256xf32>
    %87 = vector.shape_cast %84 : vector<1x256xf32> to vector<1x1x256xf32>
    tpu.vector_store %arg7[%c0_36, %c2_37, %c0_38], %87 {strides = array<i32>} : memref<1x3x256xf32, #tpu.memory_space<vmem>>, vector<1x1x256xf32>,
    return
  }
  func.func @transform_0(%arg0: i32, %arg1: i32) -> (i32, i32, i32) {
    %c0_i32 = arith.constant 0 : i32
    %c0_i32_0 = arith.constant 0 : i32
    return %arg0, %c0_i32, %arg1 : i32, i32, i32
  }
  func.func @transform_1(%arg0: i32, %arg1: i32) -> (i32, i32, i32) {
    %c0_i32 = arith.constant 0 : i32
    %c0_i32_0 = arith.constant 0 : i32
    return %arg0, %c0_i32, %arg1 : i32, i32, i32
  }
  func.func @transform_2(%arg0: i32, %arg1: i32) -> (i32, i32, i32) {
    %c0_i32 = arith.constant 0 : i32
    %c0_i32_0 = arith.constant 0 : i32
    return %arg0, %c0_i32, %arg1 : i32, i32, i32
  }
  func.func @transform_3(%arg0: i32, %arg1: i32) -> (i32, i32, i32) {
    %c0_i32 = arith.constant 0 : i32
    %c0_i32_0 = arith.constant 0 : i32
    %c0_i32_1 = arith.constant 0 : i32
    %c0_i32_2 = arith.constant 0 : i32
    return %c0_i32, %c0_i32_0, %c0_i32_1 : i32, i32, i32
  }
  func.func @transform_4(%arg0: i32, %arg1: i32) -> (i32, i32) {
    %c0_i32 = arith.constant 0 : i32
    %c0_i32_0 = arith.constant 0 : i32
    %c0_i32_1 = arith.constant 0 : i32
    return %c0_i32, %c0_i32_0 : i32, i32
  }
  func.func @transform_5(%arg0: i32, %arg1: i32) -> (i32, i32, i32) {
    %c0_i32 = arith.constant 0 : i32
    %c0_i32_0 = arith.constant 0 : i32
    return %arg0, %c0_i32, %arg1 : i32, i32, i32
  }
}

</mosaic_0001>

<bundles_post_ra>
// kernel: iat_forward.32
= control target key start
LH: loop header
LB: loop body
LE: loop exit
PB: predicated region body
PF: predicated region fallthrough
CT: control target
= control target key end

     0   :  { %s643_s18 = smov 0   ;;  %s645_s19 = smov 0   ;;  %s707_s0 = inlined_call_operand.vmem [shape: f32[2,16,256], index: 0, kind: input, shape index: {}]   ;;  %s708_s1 = inlined_call_operand.vmem [shape: f32[16,16], index: 1, kind: input, shape index: {}]   ;;  %s709_s2 = inlined_call_operand.vmem [shape: f32[16,1], index: 2, kind: input, shape index: {}]   ;;  %s710_s3 = inlined_call_operand.vmem [shape: f32[16,1], index: 3, kind: input, shape index: {}]   ;;  %s711_s4 = inlined_call_operand.vmem [shape: f32[16,1], index: 4, kind: input, shape index: {}]   ;;  %s712_s5 = inlined_call_operand.vmem [shape: f32[2,16,256], index: 5, kind: output, shape index: {}]  }
   0x1   :  { %s647_s20 = smov 0  }
   0x2 LB: > { %s27_s21 = sadd.s32 1, %s605_s19  ;;  %p535_p0 = scmp.ge.s32.totalorder %s609_s20, 1  ;;  %s609_s20 = sphi %s647_s20, %s15_s20   ;;  %s605_s19 = sphi %s645_s19, %s714_s19   ;;  %s601_s18 = sphi %s643_s18, %s713_s18  }
   0x3   : > { %p29_p1 = scmp.ge.s32.totalorder %s27_s21, 2  ;;  %p208_p2 = scmp.lt.s32.totalorder %s609_s20, 3 }
   0x5   : > { %s716_s21 = smov (%p29_p1, %s27_s21), 0  ;;  %p209_p3 = pnand %p535_p0, %p208_p2 }
   0x6   : > { %p245_p4 = scmp.lt.s32.totalorder (!%p209_p3), %s601_s18, 1 }
   0x7   : > { %212 = sbr.rel (%p209_p3) target bundleno = 279 (0x117), region = 40 }
   0xc   : > { %v271_v0 = vld [vmem:[%s711_s4 + $0x8] sm:$0xff]  ;;  %v611_v2 = vmov 0   ;;  %v270_v3 = vld [vmem:[%s711_s4] sm:$0xff]  ;;  %s718_s18 = smov (!%p245_p4, %s601_s18), 1  ;;  %v612_v5 = vmov 16.0   ;;  %vm387_vm7 = vcmask 130048  }
   0xd   : > { %v269_v1 = vld [vmem:[%s710_s3 + $0x8] sm:$0xff]  ;;  %579 = vset.pattern.permute.xlu1 %v611_v2  ;;  %578 = vset.pattern.permute.xlu0 %v611_v2  ;;  %v268_v4 = vld [vmem:[%s710_s3] sm:$0xff]  ;;  %s546_s30 = sshll.u32 %s718_s18, 5  ;;  %581 = vrcp.f32 %v612_v5 }
   0xe   : > { %366 = vperm.xlu1 %579, %v271_v0   ;;  %352 = vperm.xlu0 %578, %v269_v1   ;;  %s252_s8 = scalar_lea.vmem %s707_s0, %s546_s30  ;;  %s262_s23 = scalar_lea.vmem %s712_s5, %s546_s30 }
   0xf   : > { %580 = vset.pattern.permute.xlu2 %v611_v2  ;;  %v264_v6 = vld [vmem:[%s252_s8] sm:$0xff]  ;;  %v265_v7 = vld [vmem:[%s252_s8 + $0x8] sm:$0xff]  ;;  %v266_v8 = vld [vmem:[%s252_s8 + $0x10] sm:$0xff] }
  0x10   : > { %v267_v9 = vld [vmem:[%s252_s8 + $0x18] sm:$0xff]  ;;  %v272_v10 = vadd.f32 %v266_v8, %v264_v6  ;;  %v375_v2 = vld [vmem:[%s709_s2] sm:$0xff] }
  0x11   : > { %v279_v11 = vadd.f32 %v267_v9, %v265_v7  ;;  %379 = vperm.xlu2 %580, %v375_v2  }
  0x12   : > { %v273_v12 = vrot.slane %v272_v10, 4 }
  0x13   : > { %v280_v13 = vrot.slane %v279_v11, 4  ;;  %v582_v14 = vpop.eup %581 }
  0x14   : > { %v274_v15 = vadd.f32 %v273_v12, %v272_v10  ;;  %v287_v16 = vmul.f32 16.0, %v582_v14  ;;  %vm291_vm0 = vweird.f32 %v582_v14 }
  0x15   : > { %v281_v17 = vadd.f32 %v280_v13, %v279_v11 }
  0x16   : > { %361 = vperm.xlu1 %579, %v270_v3   ;;  %347 = vperm.xlu0 %578, %v268_v4   ;;  %v275_v18 = vrot.slane %v274_v15, 2  ;;  %v288_v19 = vsub.f32 1.0, %v287_v16 }
  0x17   : > { %v282_v20 = vrot.slane %v281_v17, 2 }
  0x18   : > { %v276_v21 = vadd.f32 %v275_v18, %v274_v15  ;;  %v289_v22 = vmul.f32 %v582_v14, %v288_v19 }
  0x19   : > { %v283_v23 = vadd.f32 %v282_v20, %v281_v17 }
  0x1a   : > { %v277_v24 = vrot.slane %v276_v21, 1  ;;  %v290_v25 = vadd.f32 %v582_v14, %v289_v22 }
  0x1b   : > { %v284_v26 = vrot.slane %v283_v23, 1 }
  0x1c   : > { %v278_v27 = vadd.f32 %v277_v24, %v276_v21  ;;  %v292_v28 = vsel %vm291_vm0, %v582_v14, %v290_v25 }
  0x1d   : > { %v285_v29 = vadd.f32 %v284_v26, %v283_v23  ;;  %v373_v26 = vld [vmem:[%s708_s1] sm:$0xff] }
  0x1e   : > { %v293_v30 = vmul.f32 %v292_v28, %v278_v27  ;;  %v374_v27 = vld [vmem:[%s708_s1 + $0x8] sm:$0xff] }
  0x1f   : > { %v294_v31 = vmul.f32 %v292_v28, %v285_v29 }
  0x20   : > { %v295_v32 = vsub.f32 %v264_v6, %v293_v30  ;;  %v297_v33 = vsub.f32 %v266_v8, %v293_v30 }
  0x21   : > { %v296_v34 = vsub.f32 %v265_v7, %v294_v31  ;;  %v298_v35 = vsub.f32 %v267_v9, %v294_v31  ;;  %v376_v7 = vld [vmem:[%s709_s2 + $0x8] sm:$0xff] }
  0x22   : > { %v299_v36 = vmul.f32 %v295_v32, %v295_v32  ;;  %v301_v37 = vmul.f32 %v297_v33, %v297_v33  ;;  %384 = vperm.xlu2 %580, %v376_v7  }
  0x23   : > { %v300_v38 = vmul.f32 %v296_v34, %v296_v34  ;;  %v302_v39 = vmul.f32 %v298_v35, %v298_v35 }
  0x24   : > { %v303_v40 = vadd.f32 %v301_v37, %v299_v36 }
  0x25   : > { %v310_v41 = vadd.f32 %v302_v39, %v300_v38 }
  0x26   : > { %v304_v42 = vrot.slane %v303_v40, 4 }
  0x27   : > { %v311_v43 = vrot.slane %v310_v41, 4 }
  0x28   : > { %v305_v44 = vadd.f32 %v304_v42, %v303_v40 }
  0x29   : > { %v312_v45 = vadd.f32 %v311_v43, %v310_v41 }
  0x2a   : > { %v306_v46 = vrot.slane %v305_v44, 2 }
  0x2b   : > { %v313_v47 = vrot.slane %v312_v45, 2 }
  0x2c   : > { %v307_v48 = vadd.f32 %v306_v46, %v305_v44 }
  0x2d   : > { %v314_v49 = vadd.f32 %v313_v47, %v312_v45 }
  0x2e   : > { %v308_v50 = vrot.slane %v307_v48, 1 }
  0x2f   : > { %v315_v51 = vrot.slane %v314_v49, 1 }
  0x30   : > { %v309_v52 = vadd.f32 %v308_v50, %v307_v48 }
  0x31   : > { %v316_v53 = vadd.f32 %v315_v51, %v314_v49 }
  0x32   : > { %v317_v54 = vmul.f32 %v309_v52, %v292_v28 }
  0x33   : > { %v318_v55 = vmul.f32 %v316_v53, %v292_v28 }
  0x34   : > { %v319_v56 = vadd.f32 1e-06, %v317_v54 }
  0x35   : > { %v320_v57 = vadd.f32 1e-06, %v318_v55 }
  0x36   : > { %583 = vrsqrt.f32 %v319_v56  ;;  %vm327_vm1 = vweird.f32 %v319_v56 }
  0x37   : > { %585 = vrsqrt.f32 %v320_v57  ;;  %vm337_vm3 = vweird.f32 %v320_v57 }
  0x3c   : > { %v584_v58 = vpop.eup %583 }
  0x3d   : > { %v586_v59 = vpop.eup %585  ;;  %v322_v60 = vmul.f32 %v584_v58, %v319_v56  ;;  %vm328_vm2 = vweird.f32 %v584_v58 }
  0x3e   : > { %v332_v61 = vmul.f32 %v586_v59, %v320_v57  ;;  %vm338_vm4 = vweird.f32 %v586_v59  ;;  %vm329_vm5 = vmor %vm327_vm1, %vm328_vm2 }
  0x3f   : > { %v323_v62 = vmul.f32 %v584_v58, %v322_v60  ;;  %vm339_vm6 = vmor %vm337_vm3, %vm338_vm4 }
  0x40   : > { %v333_v63 = vmul.f32 %v586_v59, %v332_v61 }
  0x41   : > { %v324_v0 = vmul.f32 0.5, %v323_v62 }
  0x42   : > { %v334_v1 = vmul.f32 0.5, %v333_v63 }
  0x43   : > { %v325_v3 = vsub.f32 1.5, %v324_v0 }
  0x44   : > { %v335_v4 = vsub.f32 1.5, %v334_v1 }
  0x45   : > { %v326_v5 = vmul.f32 %v584_v58, %v325_v3 }
  0x46   : > { %v336_v6 = vmul.f32 %v586_v59, %v335_v4 }
  0x47   : > { %v330_v8 = vsel %vm329_vm5, %v584_v58, %v326_v5 }
  0x48   : > { %v340_v9 = vsel %vm339_vm6, %v586_v59, %v336_v6  ;;  %v343_v10 = vmul.f32 %v330_v8, %v297_v33  ;;  %v341_v18 = vmul.f32 %v330_v8, %v295_v32 }
  0x49   : > { %v344_v11 = vmul.f32 %v340_v9, %v298_v35  ;;  %v342_v19 = vmul.f32 %v340_v9, %v296_v34 }
  0x6b   : > { %v380_v28 = vpop.permute.xlu2 %379 }
  0x7c   : > { %v385_v33 = vpop.permute.xlu2 %384 }
  0x80   : > { %v367_v12 = vpop.permute.xlu1 %366  ;;  %v353_v13 = vpop.permute.xlu0 %352 }
  0x81   : > { %v357_v14 = vmul.f32 %v353_v13, %v343_v10  ;;  %v358_v15 = vmul.f32 %v353_v13, %v344_v11 }
  0x83   : > { %v371_v16 = vadd.f32 %v367_v12, %v357_v14  ;;  %v372_v17 = vadd.f32 %v367_v12, %v358_v15 }
  0x85   : > { %408 = vmatpush.msra.mxu0 %v371_v16  ;;  %548 = vmatpush.msra.mxu2 %v371_v16 }
  0x86   : > { %431 = vmatpush.msra.mxu1 %v372_v17  ;;  %550 = vmatpush.msra.mxu3 %v372_v17 }
  0x88   : > { %v348_v20 = vpop.permute.xlu0 %347  ;;  %v362_v23 = vpop.permute.xlu1 %361 }
  0x89   : > { %v355_v21 = vmul.f32 %v348_v20, %v341_v18  ;;  %v356_v22 = vmul.f32 %v348_v20, %v342_v19 }
  0x8b   : > { %v369_v24 = vadd.f32 %v362_v23, %v355_v21  ;;  %v370_v25 = vadd.f32 %v362_v23, %v356_v22 }
  0x8d   : > { %409 = vmatpush.msra.mxu0 %v369_v24  ;;  %549 = vmatpush.msra.mxu2 %v369_v24 }
  0x8e   : > { %432 = vmatpush.msra.mxu1 %v370_v25  ;;  %551 = vmatpush.msra.mxu3 %v370_v25 }
  0x8f   : > { %540 = vmatmul.msk.f32.vlgmr.msra.gmra.mxu0 %vm387_vm7, %v373_v26  ;;  %541 = vmatmul.msk.f32.vlgmr.msra.gmra.mxu2 %vm387_vm7, %v374_v27 }
  0x90   : > { %542 = vmatmul.msk.f32.vlgmr.msra.gmra.mxu1 %vm387_vm7, %v373_v26  ;;  %543 = vmatmul.msk.f32.vlgmr.msra.gmra.mxu3 %vm387_vm7, %v374_v27 }
 0x10c   : > { %v411_v29 = vpop.f32.mrf.mxu0 }
 0x10d   : > { %v412_v30 = vadd.f32 %v411_v29, %v380_v28  ;;  %v434_v31 = vpop.f32.mrf.mxu1 }
 0x10e   : > { %v435_v32 = vadd.f32 %v434_v31, %v380_v28 }
 0x10f   : > { %440 = vst [vmem:[%s262_s23] sm:$0xff] %v412_v30 }
 0x110   : > { %441 = vst [vmem:[%s262_s23 + $0x8] sm:$0xff] %v435_v32 }
 0x112   : > { %v414_v34 = vpop.f32.mrf.mxu2 }
 0x113   : > { %v415_v35 = vadd.f32 %v414_v34, %v385_v33  ;;  %v437_v36 = vpop.f32.mrf.mxu3 }
 0x114   : > { %v438_v37 = vadd.f32 %v437_v36, %v385_v33 }
 0x115   : > { %442 = vst [vmem:[%s262_s23 + $0x10] sm:$0xff] %v415_v35 }
 0x116   : > { %443 = vst [vmem:[%s262_s23 + $0x18] sm:$0xff] %v438_v37 }
 0x117 PF: > { %s15_s20 = sadd.s32 1, %s609_s20   ;;  %s713_s18 = smov %s605_s19 }
 0x118   : > { %p12_p5 = scmp.ge.s32.totalorder %s15_s20, 4   ;;  %s714_s19 = smov %s716_s21 }
 0x11a   :  { %14 = sbr.rel (!%p12_p5) target bundleno = 2 (0x2), region = 70 }

// kernel: iat_forward.33
= control target key start
LH: loop header
LB: loop body
LE: loop exit
PB: predicated region body
PF: predicated region fallthrough
CT: control target
= control target key end

     0   :  { %s610_s18 = smov 0   ;;  %s612_s19 = smov 0   ;;  %s669_s0 = inlined_call_operand.vmem [shape: f32[2,16,256], index: 0, kind: input, shape index: {}]   ;;  %s670_s1 = inlined_call_operand.vmem [shape: f32[2,16,256], index: 1, kind: input, shape index: {}]   ;;  %s671_s2 = inlined_call_operand.vmem [shape: f32[16,16], index: 2, kind: input, shape index: {}]   ;;  %s672_s3 = inlined_call_operand.vmem [shape: f32[16,1], index: 3, kind: input, shape index: {}]   ;;  %s673_s4 = inlined_call_operand.vmem [shape: f32[16,1], index: 4, kind: input, shape index: {}]   ;;  %s674_s5 = inlined_call_operand.vmem [shape: f32[2,16,256], index: 5, kind: output, shape index: {}]  }
   0x1   :  { %s614_s20 = smov 0  }
   0x2 LB: > { %s27_s21 = sadd.s32 1, %s573_s19  ;;  %p508_p0 = scmp.ge.s32.totalorder %s577_s20, 1  ;;  %s577_s20 = sphi %s614_s20, %s15_s20   ;;  %s573_s19 = sphi %s612_s19, %s676_s19   ;;  %s569_s18 = sphi %s610_s18, %s675_s18  }
   0x3   : > { %p29_p1 = scmp.ge.s32.totalorder %s27_s21, 2  ;;  %p225_p2 = scmp.lt.s32.totalorder %s577_s20, 3 }
   0x5   : > { %s678_s21 = smov (%p29_p1, %s27_s21), 0  ;;  %p226_p3 = pnand %p508_p0, %p225_p2 }
   0x6   : > { %p271_p4 = scmp.lt.s32.totalorder (!%p226_p3), %s569_s18, 1 }
   0x7   : > { %229 = sbr.rel (%p226_p3) target bundleno = 160 (0xa0), region = 40 }
   0xc   : > { %v306_v0 = vld [vmem:[%s672_s3] sm:$0xff]  ;;  %v579_v1 = vmov 0   ;;  %s680_s18 = smov (!%p271_p4, %s569_s18), 1  ;;  %vm318_vm0 = vcmask 130048   ;;  %v301_v8 = vld [vmem:[%s671_s2 + $0x8] sm:$0xff] }
   0xd   : > { %553 = vset.pattern.permute.xlu0 %v579_v1  ;;  %554 = vset.pattern.permute.xlu1 %v579_v1  ;;  %v375_v2 = vld [vmem:[%s673_s4] sm:$0xff]  ;;  %s634_s26 = sshll.u32 %s680_s18, 5  ;;  %v307_v9 = vld [vmem:[%s672_s3 + $0x8] sm:$0xff] }
   0xe   : > { %310 = vperm.xlu0 %553, %v306_v0   ;;  %379 = vperm.xlu1 %554, %v375_v2   ;;  %s288_s29 = scalar_lea.vmem %s670_s1, %s634_s26  ;;  %v300_v7 = vld [vmem:[%s671_s2] sm:$0xff]  ;;  %v376_v10 = vld [vmem:[%s673_s4 + $0x8] sm:$0xff]  ;;  %s278_s15 = scalar_lea.vmem %s669_s0, %s634_s26 }
   0xf   : > { %v304_v3 = vld [vmem:[%s288_s29 + $0x10] sm:$0xff]  ;;  %v305_v4 = vld [vmem:[%s288_s29 + $0x18] sm:$0xff]  ;;  %v302_v5 = vld [vmem:[%s288_s29] sm:$0xff]  ;;  %s298_s18 = scalar_lea.vmem %s674_s5, %s634_s26 }
  0x10   : > { %339 = vmatpush.msra.mxu0 %v304_v3  ;;  %524 = vmatpush.msra.mxu2 %v304_v3  ;;  %v303_v6 = vld [vmem:[%s288_s29 + $0x8] sm:$0xff]  ;;  %v371_v16 = vld [vmem:[%s278_s15] sm:$0xff]  ;;  %v373_v28 = vld [vmem:[%s278_s15 + $0x10] sm:$0xff] }
  0x11   : > { %362 = vmatpush.msra.mxu1 %v305_v4  ;;  %526 = vmatpush.msra.mxu3 %v305_v4  ;;  %v372_v19 = vld [vmem:[%s278_s15 + $0x8] sm:$0xff]  ;;  %v374_v31 = vld [vmem:[%s278_s15 + $0x18] sm:$0xff] }
  0x12   : > { %340 = vmatpush.msra.mxu0 %v302_v5  ;;  %525 = vmatpush.msra.mxu2 %v302_v5 }
  0x13   : > { %363 = vmatpush.msra.mxu1 %v303_v6  ;;  %527 = vmatpush.msra.mxu3 %v303_v6 }
  0x14   : > { %515 = vmatmul.msk.f32.vlgmr.msra.gmra.mxu0 %vm318_vm0, %v300_v7  ;;  %516 = vmatmul.msk.f32.vlgmr.msra.gmra.mxu2 %vm318_vm0, %v301_v8 }
  0x15   : > { %517 = vmatmul.msk.f32.vlgmr.msra.gmra.mxu1 %vm318_vm0, %v300_v7  ;;  %518 = vmatmul.msk.f32.vlgmr.msra.gmra.mxu3 %vm318_vm0, %v301_v8 }
  0x16   : > { %315 = vperm.xlu0 %553, %v307_v9   ;;  %384 = vperm.xlu1 %554, %v376_v10  }
  0x80   : > { %v311_v11 = vpop.permute.xlu0 %310  ;;  %v380_v12 = vpop.permute.xlu1 %379 }
  0x88   : > { %v316_v22 = vpop.permute.xlu0 %315  ;;  %v385_v27 = vpop.permute.xlu1 %384 }
  0x91   : > { %v342_v13 = vpop.f32.mrf.mxu0 }
  0x92   : > { %v343_v14 = vadd.f32 %v342_v13, %v311_v11  ;;  %v365_v15 = vpop.f32.mrf.mxu1 }
  0x93   : > { %v366_v17 = vadd.f32 %v365_v15, %v311_v11 }
  0x94   : > { %v387_v18 = vmul.f32 %v380_v12, %v343_v14 }
  0x95   : > { %v388_v20 = vmul.f32 %v380_v12, %v366_v17 }
  0x96   : > { %v391_v21 = vadd.f32 %v387_v18, %v371_v16 }
  0x97   : > { %v392_v23 = vadd.f32 %v388_v20, %v372_v19  ;;  %v345_v24 = vpop.f32.mrf.mxu2 }
  0x98   : > { %395 = vst [vmem:[%s298_s18] sm:$0xff] %v391_v21  ;;  %v346_v25 = vadd.f32 %v345_v24, %v316_v22  ;;  %v368_v26 = vpop.f32.mrf.mxu3 }
  0x99   : > { %396 = vst [vmem:[%s298_s18 + $0x8] sm:$0xff] %v392_v23  ;;  %v369_v29 = vadd.f32 %v368_v26, %v316_v22 }
  0x9a   : > { %v389_v30 = vmul.f32 %v385_v27, %v346_v25 }
  0x9b   : > { %v390_v32 = vmul.f32 %v385_v27, %v369_v29 }
  0x9c   : > { %v393_v33 = vadd.f32 %v389_v30, %v373_v28 }
  0x9d   : > { %v394_v34 = vadd.f32 %v390_v32, %v374_v31 }
  0x9e   : > { %397 = vst [vmem:[%s298_s18 + $0x10] sm:$0xff] %v393_v33 }
  0x9f   : > { %398 = vst [vmem:[%s298_s18 + $0x18] sm:$0xff] %v394_v34 }
  0xa0 PF: > { %s15_s20 = sadd.s32 1, %s577_s20   ;;  %s675_s18 = smov %s573_s19 }
  0xa1   : > { %p12_p5 = scmp.ge.s32.totalorder %s15_s20, 4   ;;  %s676_s19 = smov %s678_s21 }
  0xa3   :  { %14 = sbr.rel (!%p12_p5) target bundleno = 2 (0x2), region = 73 }

// kernel: iat_forward.34
= control target key start
LH: loop header
LB: loop body
LE: loop exit
PB: predicated region body
PF: predicated region fallthrough
CT: control target
= control target key end

     0   :  { %s1114_s27 = smov 0   ;;  %s1116_s28 = smov 0   ;;  %s1378_s0 = inlined_call_operand.vmem [shape: f32[2,16,256], index: 0, kind: input, shape index: {}]   ;;  %s1379_s1 = inlined_call_operand.vmem [shape: f32[16,1], index: 1, kind: input, shape index: {}]   ;;  %s1380_s2 = inlined_call_operand.vmem [shape: f32[16,1], index: 2, kind: input, shape index: {}]   ;;  %s1381_s3 = inlined_call_operand.vmem [shape: f32[64,16], index: 3, kind: input, shape index: {}]   ;;  %s1382_s4 = inlined_call_operand.vmem [shape: f32[64,1], index: 4, kind: input, shape index: {}]   ;;  %s1383_s5 = inlined_call_operand.vmem [shape: f32[16,64], index: 5, kind: input, shape index: {}]   ;;  %s1384_s6 = inlined_call_operand.vmem [shape: f32[16,1], index: 6, kind: input, shape index: {}]   ;;  %s1385_s7 = inlined_call_operand.vmem [shape: f32[16,1], index: 7, kind: input, shape index: {}]   ;;  %s1386_s8 = inlined_call_operand.vmem [shape: f32[2,16,256], index: 8, kind: output, shape index: {}]  }
   0x1   :  { %s1118_s29 = smov 0  }
   0x2 LB: > { %s30_s30 = sadd.s32 1, %s1061_s28  ;;  %p943_p0 = scmp.ge.s32.totalorder %s1065_s29, 1  ;;  %s1065_s29 = sphi %s1118_s29, %s18_s29   ;;  %s1061_s28 = sphi %s1116_s28, %s1388_s28   ;;  %s1057_s27 = sphi %s1114_s27, %s1387_s27  }
   0x3   : > { %p32_p1 = scmp.ge.s32.totalorder %s30_s30, 2  ;;  %p283_p2 = scmp.lt.s32.totalorder %s1065_s29, 3 }
   0x5   : > { %s1390_s30 = smov (%p32_p1, %s30_s30), 0  ;;  %p284_p3 = pnand %p943_p0, %p283_p2 }
   0x6   : > { %p326_p4 = scmp.lt.s32.totalorder (!%p284_p3), %s1057_s27, 1 }
   0x7   : > { %287 = sbr.rel (%p284_p3) target bundleno = 490 (0x1ea), region = 52 }
   0xc   : > { %v352_v0 = vld [vmem:[%s1380_s2 + $0x8] sm:$0xff]  ;;  %v1067_v2 = vmov 0   ;;  %v351_v3 = vld [vmem:[%s1380_s2] sm:$0xff]  ;;  %s1392_s27 = smov (!%p326_p4, %s1057_s27), 1  ;;  %v464_v8 = vld [vmem:[%s1382_s4 + $0x10] sm:$0xff]  ;;  %v1068_v9 = vmov 16.0  }
   0xd   : > { %v350_v1 = vld [vmem:[%s1379_s1 + $0x8] sm:$0xff]  ;;  %1003 = vset.pattern.permute.xlu1 %v1067_v2  ;;  %1002 = vset.pattern.permute.xlu0 %v1067_v2  ;;  %v349_v4 = vld [vmem:[%s1379_s1] sm:$0xff]  ;;  %s970_s21 = sshll.u32 %s1392_s27, 5  ;;  %1005 = vrcp.f32 %v1068_v9  ;;  %vm510_vm7 = vcmask 130048   ;;  %vm775_vm8 = vcmask 523264  }
   0xe   : > { %447 = vperm.xlu1 %1003, %v352_v0   ;;  %433 = vperm.xlu0 %1002, %v350_v1   ;;  %v466_v5 = vld [vmem:[%s1382_s4 + $0x20] sm:$0xff]  ;;  %v467_v6 = vld [vmem:[%s1382_s4 + $0x28] sm:$0xff]  ;;  %s333_s10 = scalar_lea.vmem %s1378_s0, %s970_s21  ;;  %s343_s15 = scalar_lea.vmem %s1386_s8, %s970_s21 }
   0xf   : > { %1004 = vset.pattern.permute.xlu2 %v1067_v2  ;;  %v463_v7 = vld [vmem:[%s1382_s4 + $0x8] sm:$0xff]  ;;  %v1164_v10 = vld [vmem:[%s333_s10] sm:$0xff]  ;;  %v1168_v12 = vld [vmem:[%s333_s10 + $0x10] sm:$0xff] }
  0x10   : > { %v1166_v11 = vld [vmem:[%s333_s10 + $0x8] sm:$0xff]  ;;  %v1170_v13 = vld [vmem:[%s333_s10 + $0x18] sm:$0xff]  ;;  %v353_v14 = vadd.f32 %v1168_v12, %v1164_v10  ;;  %v763_v20 = vld [vmem:[%s1384_s6] sm:$0xff] }
  0x11   : > { %v360_v15 = vadd.f32 %v1170_v13, %v1166_v11  ;;  %v764_v19 = vld [vmem:[%s1384_s6 + $0x8] sm:$0xff] }
  0x12   : > { %v354_v16 = vrot.slane %v353_v14, 4  ;;  %v829_v33 = vld [vmem:[%s1385_s7 + $0x8] sm:$0xff] }
  0x13   : > { %v361_v17 = vrot.slane %v360_v15, 4  ;;  %v1006_v18 = vpop.eup %1005 }
  0x14   : > { %v355_v21 = vadd.f32 %v354_v16, %v353_v14  ;;  %v368_v22 = vmul.f32 16.0, %v1006_v18  ;;  %vm372_vm0 = vweird.f32 %v1006_v18 }
  0x15   : > { %v362_v23 = vadd.f32 %v361_v17, %v360_v15  ;;  %v469_v17 = vld [vmem:[%s1382_s4 + $0x38] sm:$0xff] }
  0x16   : > { %442 = vperm.xlu1 %1003, %v351_v3   ;;  %428 = vperm.xlu0 %1002, %v349_v4   ;;  %v356_v24 = vrot.slane %v355_v21, 2  ;;  %v369_v25 = vsub.f32 1.0, %v368_v22 }
  0x17   : > { %v363_v26 = vrot.slane %v362_v23, 2  ;;  %507 = vperm.xlu2 %1004, %v469_v17  }
  0x18   : > { %v357_v27 = vadd.f32 %v356_v24, %v355_v21  ;;  %v370_v28 = vmul.f32 %v1006_v18, %v369_v25  ;;  %v468_v24 = vld [vmem:[%s1382_s4 + $0x30] sm:$0xff] }
  0x19   : > { %v364_v29 = vadd.f32 %v363_v26, %v362_v23 }
  0x1a   : > { %v358_v30 = vrot.slane %v357_v27, 1  ;;  %v371_v31 = vadd.f32 %v1006_v18, %v370_v28 }
  0x1b   : > { %v365_v32 = vrot.slane %v364_v29, 1 }
  0x1c   : > { %v359_v34 = vadd.f32 %v358_v30, %v357_v27  ;;  %v373_v35 = vsel %vm372_vm0, %v1006_v18, %v371_v31 }
  0x1d   : > { %v366_v36 = vadd.f32 %v365_v32, %v364_v29  ;;  %v465_v32 = vld [vmem:[%s1382_s4 + $0x18] sm:$0xff] }
  0x1e   : > { %492 = vperm.xlu1 %1003, %v466_v5   ;;  %497 = vperm.xlu0 %1002, %v467_v6   ;;  %v374_v37 = vmul.f32 %v373_v35, %v359_v34 }
  0x1f   : > { %v375_v38 = vmul.f32 %v373_v35, %v366_v36  ;;  %502 = vperm.xlu2 %1004, %v468_v24  }
  0x20   : > { %v376_v39 = vsub.f32 %v1164_v10, %v374_v37  ;;  %v378_v40 = vsub.f32 %v1168_v12, %v374_v37 }
  0x21   : > { %v377_v41 = vsub.f32 %v1166_v11, %v375_v38  ;;  %v379_v42 = vsub.f32 %v1170_v13, %v375_v38  ;;  %v454_v38 = vld [vmem:[%s1381_s3] sm:$0xff] }
  0x22   : > { %v380_v43 = vmul.f32 %v376_v39, %v376_v39  ;;  %v382_v44 = vmul.f32 %v378_v40, %v378_v40 }
  0x23   : > { %v381_v45 = vmul.f32 %v377_v41, %v377_v41  ;;  %v383_v46 = vmul.f32 %v379_v42, %v379_v42 }
  0x24   : > { %v384_v47 = vadd.f32 %v382_v44, %v380_v43  ;;  %v461_v43 = vld [vmem:[%s1381_s3 + $0x38] sm:$0xff]  ;;  %v828_v44 = vld [vmem:[%s1385_s7] sm:$0xff] }
  0x25   : > { %v391_v48 = vadd.f32 %v383_v46, %v381_v45  ;;  %v456_v45 = vld [vmem:[%s1381_s3 + $0x10] sm:$0xff]  ;;  %v457_v46 = vld [vmem:[%s1381_s3 + $0x18] sm:$0xff] }
  0x26   : > { %477 = vperm.xlu1 %1003, %v463_v7   ;;  %482 = vperm.xlu0 %1002, %v464_v8   ;;  %v385_v49 = vrot.slane %v384_v47, 4 }
  0x27   : > { %v392_v50 = vrot.slane %v391_v48, 4  ;;  %487 = vperm.xlu2 %1004, %v465_v32  }
  0x28   : > { %v386_v51 = vadd.f32 %v385_v49, %v384_v47  ;;  %v458_v47 = vld [vmem:[%s1381_s3 + $0x20] sm:$0xff] }
  0x29   : > { %v393_v52 = vadd.f32 %v392_v50, %v391_v48 }
  0x2a   : > { %v387_v53 = vrot.slane %v386_v51, 2 }
  0x2b   : > { %v394_v54 = vrot.slane %v393_v52, 2 }
  0x2c   : > { %v388_v55 = vadd.f32 %v387_v53, %v386_v51 }
  0x2d   : > { %v395_v56 = vadd.f32 %v394_v54, %v393_v52 }
  0x2e   : > { %772 = vperm.xlu1 %1003, %v764_v19   ;;  %767 = vperm.xlu0 %1002, %v763_v20   ;;  %v389_v57 = vrot.slane %v388_v55, 1 }
  0x2f   : > { %v396_v58 = vrot.slane %v395_v56, 1 }
  0x30   : > { %v390_v59 = vadd.f32 %v389_v57, %v388_v55 }
  0x31   : > { %v397_v60 = vadd.f32 %v396_v58, %v395_v56 }
  0x32   : > { %v398_v61 = vmul.f32 %v390_v59, %v373_v35 }
  0x33   : > { %v399_v62 = vmul.f32 %v397_v60, %v373_v35 }
  0x34   : > { %v400_v63 = vadd.f32 1e-06, %v398_v61 }
  0x35   : > { %v401_v0 = vadd.f32 1e-06, %v399_v62 }
  0x36   : > { %837 = vperm.xlu0 %1002, %v829_v33   ;;  %1007 = vrsqrt.f32 %v400_v63  ;;  %vm408_vm1 = vweird.f32 %v400_v63 }
  0x37   : > { %1009 = vrsqrt.f32 %v401_v0  ;;  %vm418_vm3 = vweird.f32 %v401_v0 }
  0x3c   : > { %v1008_v1 = vpop.eup %1007 }
  0x3d   : > { %v1010_v2 = vpop.eup %1009  ;;  %v403_v3 = vmul.f32 %v1008_v1, %v400_v63  ;;  %vm409_vm2 = vweird.f32 %v1008_v1 }
  0x3e   : > { %v413_v4 = vmul.f32 %v1010_v2, %v401_v0  ;;  %vm419_vm4 = vweird.f32 %v1010_v2  ;;  %vm410_vm5 = vmor %vm408_vm1, %vm409_vm2 }
  0x3f   : > { %v404_v5 = vmul.f32 %v1008_v1, %v403_v3  ;;  %vm420_vm6 = vmor %vm418_vm3, %vm419_vm4 }
  0x40   : > { %v414_v6 = vmul.f32 %v1010_v2, %v413_v4 }
  0x41   : > { %v405_v7 = vmul.f32 0.5, %v404_v5 }
  0x42   : > { %v415_v8 = vmul.f32 0.5, %v414_v6 }
  0x43   : > { %v406_v9 = vsub.f32 1.5, %v405_v7 }
  0x44   : > { %v416_v14 = vsub.f32 1.5, %v415_v8 }
  0x45   : > { %v407_v15 = vmul.f32 %v1008_v1, %v406_v9 }
  0x46   : > { %v417_v16 = vmul.f32 %v1010_v2, %v416_v14 }
  0x47   : > { %v411_v18 = vsel %vm410_vm5, %v1008_v1, %v407_v15 }
  0x48   : > { %v421_v19 = vsel %vm420_vm6, %v1010_v2, %v417_v16  ;;  %v424_v20 = vmul.f32 %v411_v18, %v378_v40  ;;  %v422_v29 = vmul.f32 %v411_v18, %v376_v39  ;;  %v460_v39 = vld [vmem:[%s1381_s3 + $0x30] sm:$0xff]  ;;  %v459_v40 = vld [vmem:[%s1381_s3 + $0x28] sm:$0xff] }
  0x49   : > { %v425_v21 = vmul.f32 %v421_v19, %v379_v42  ;;  %v423_v30 = vmul.f32 %v421_v19, %v377_v41  ;;  %v462_v41 = vld [vmem:[%s1382_s4] sm:$0xff]  ;;  %v455_v42 = vld [vmem:[%s1381_s3 + $0x8] sm:$0xff] }
  0x4a   : > { %472 = vperm.xlu2 %1004, %v462_v41  }
  0x52   : > { %832 = vperm.xlu2 %1004, %v828_v44  }
  0x71   : > { %v508_v48 = vpop.permute.xlu2 %507 }
  0x79   : > { %v503_v49 = vpop.permute.xlu2 %502 }
  0x80   : > { %v448_v22 = vpop.permute.xlu1 %447  ;;  %v434_v23 = vpop.permute.xlu0 %433 }
  0x81   : > { %v438_v25 = vmul.f32 %v434_v23, %v424_v20  ;;  %v439_v26 = vmul.f32 %v434_v23, %v425_v21  ;;  %v488_v56 = vpop.permute.xlu2 %487 }
  0x83   : > { %v452_v27 = vadd.f32 %v448_v22, %v438_v25  ;;  %v453_v28 = vadd.f32 %v448_v22, %v439_v26 }
  0x85   : > { %549 = vmatpush.msra.mxu0 %v452_v27  ;;  %972 = vmatpush.msra.mxu2 %v452_v27 }
  0x86   : > { %590 = vmatpush.msra.mxu1 %v453_v28  ;;  %974 = vmatpush.msra.mxu3 %v453_v28 }
  0x88   : > { %v429_v31 = vpop.permute.xlu0 %428  ;;  %v443_v35 = vpop.permute.xlu1 %442 }
  0x89   : > { %v436_v33 = vmul.f32 %v429_v31, %v422_v29  ;;  %v437_v34 = vmul.f32 %v429_v31, %v423_v30 }
  0x8b   : > { %v450_v36 = vadd.f32 %v443_v35, %v436_v33  ;;  %v451_v37 = vadd.f32 %v443_v35, %v437_v34 }
  0x8d   : > { %550 = vmatpush.msra.mxu0 %v450_v36  ;;  %973 = vmatpush.msra.mxu2 %v450_v36 }
  0x8e   : > { %591 = vmatpush.msra.mxu1 %v451_v37  ;;  %975 = vmatpush.msra.mxu3 %v451_v37 }
  0x8f   : > { %948 = vmatmul.msk.f32.vlgmr.msra.gmra.mxu0 %vm510_vm7, %v454_v38  ;;  %954 = vmatmul.msk.f32.vlgmr.msra.gmra.mxu2 %vm510_vm7, %v460_v39 }
  0x90   : > { %956 = vmatmul.msk.f32.vlgmr.msra.gmra.mxu1 %vm510_vm7, %v454_v38  ;;  %961 = vmatmul.msk.f32.vlgmr.msra.gmra.mxu3 %vm510_vm7, %v459_v40  ;;  %v1244_v59 = vpop.permute.xlu0 %497  ;;  %v1249_v62 = vpop.permute.xlu1 %492 }
  0x97   : > { %949 = vmatmul.msk.f32.gmra.mxu0 %vm510_vm7, %v455_v42  ;;  %955 = vmatmul.msk.f32.gmra.mxu2 %vm510_vm7, %v461_v43 }
  0x98   : > { %957 = vmatmul.msk.f32.gmra.mxu1 %vm510_vm7, %v455_v42  ;;  %962 = vmatmul.msk.f32.gmra.mxu3 %vm510_vm7, %v460_v39  ;;  %v483_v17 = vpop.permute.xlu0 %482  ;;  %v478_v22 = vpop.permute.xlu1 %477 }
  0x9f   : > { %950 = vmatmul.msk.f32.gmra.mxu0 %vm510_vm7, %v456_v45 }
  0xa0   : > { %958 = vmatmul.msk.f32.gmra.mxu1 %vm510_vm7, %v456_v45  ;;  %963 = vmatmul.msk.f32.gmra.mxu3 %vm510_vm7, %v461_v43 }
  0xa4   : > { %v473_v14 = vpop.permute.xlu2 %472 }
  0xa7   : > { %951 = vmatmul.msk.f32.gmra.mxu0 %vm510_vm7, %v457_v46 }
  0xa8   : > { %959 = vmatmul.msk.f32.gmra.mxu1 %vm510_vm7, %v457_v46 }
  0xaf   : > { %952 = vmatmul.msk.f32.gmra.mxu0 %vm510_vm7, %v458_v47 }
  0xb0   : > { %960 = vmatmul.msk.f32.gmra.mxu1 %vm510_vm7, %v458_v47 }
  0xb7   : > { %953 = vmatmul.msk.f32.gmra.mxu0 %vm510_vm7, %v459_v40 }
 0x10c   : > { %v552_v50 = vpop.f32.mrf.mxu0 }
 0x10d   : > { %v593_v51 = vpop.f32.mrf.mxu1  ;;  %v1269_v35 = vadd.f32 %v552_v50, %v473_v14 }
 0x10e   : > { %v1259_v23 = vadd.f32 %v593_v51, %v473_v14 }
 0x10f   : > { %v633_v51 = vmul.f32 0.044715, %v1269_v35 }
 0x110   : > { %v634_v38 = vmul.f32 0.044715, %v1259_v23 }
 0x112   : > { %v570_v52 = vpop.f32.mrf.mxu2  ;;  %v650_v50 = vmul.f32 %v634_v38, %v1259_v23 }
 0x113   : > { %v571_v53 = vadd.f32 %v570_v52, %v503_v49  ;;  %v608_v54 = vpop.f32.mrf.mxu3 }
 0x114   : > { %v555_v55 = vpop.f32.mrf.mxu0  ;;  %v1247_v60 = vadd.f32 %v608_v54, %v1244_v59 }
 0x115   : > { %v596_v57 = vpop.f32.mrf.mxu1  ;;  %v645_v58 = vmul.f32 0.044715, %v571_v53  ;;  %v1275_v39 = vadd.f32 %v555_v55, %v478_v22  ;;  %v629_v54 = vmul.f32 0.5, %v571_v53 }
 0x116   : > { %v644_v3 = vmul.f32 0.044715, %v1247_v60  ;;  %v1262_v25 = vadd.f32 %v596_v57, %v478_v22 }
 0x117   : > { %v661_v61 = vmul.f32 %v645_v58, %v571_v53  ;;  %v635_v57 = vmul.f32 0.044715, %v1275_v39 }
 0x118   : > { %v660_v16 = vmul.f32 %v644_v3, %v1247_v60  ;;  %v636_v41 = vmul.f32 0.044715, %v1262_v25 }
 0x119   : > { %v677_v63 = vmul.f32 %v661_v61, %v571_v53 }
 0x11a   : > { %v573_v0 = vpop.f32.mrf.mxu2  ;;  %v676_v28 = vmul.f32 %v660_v16, %v1247_v60 }
 0x11b   : > { %v574_v1 = vadd.f32 %v573_v0, %v508_v48  ;;  %v611_v2 = vpop.f32.mrf.mxu3  ;;  %v693_v8 = vadd.f32 %v677_v63, %v571_v53 }
 0x11c   : > { %v1252_v4 = vadd.f32 %v611_v2, %v503_v49  ;;  %v558_v5 = vpop.f32.mrf.mxu0  ;;  %v692_v40 = vadd.f32 %v676_v28, %v1247_v60 }
 0x11d   : > { %v599_v6 = vpop.f32.mrf.mxu1  ;;  %v647_v7 = vmul.f32 0.044715, %v574_v1  ;;  %v709_v21 = vmul.f32 0.7978846, %v693_v8  ;;  %v1279_v42 = vadd.f32 %v558_v5, %v483_v17  ;;  %v631_v61 = vmul.f32 0.5, %v574_v1 }
 0x11e   : > { %v646_v9 = vmul.f32 0.044715, %v1252_v4  ;;  %v1257_v19 = vadd.f32 %v599_v6, %v483_v17  ;;  %v708_v55 = vmul.f32 0.7978846, %v692_v40  ;;  %v649_v17 = vmul.f32 %v633_v51, %v1269_v35 }
 0x11f   : > { %v663_v15 = vmul.f32 %v647_v7, %v574_v1  ;;  %1011 = vtanh.f32 %v709_v21  ;;  %v637_v2 = vmul.f32 0.044715, %v1279_v42 }
 0x120   : > { %v662_v18 = vmul.f32 %v646_v9, %v1252_v4  ;;  %v638_v34 = vmul.f32 0.044715, %v1257_v19 }
 0x121   : > { %v679_v20 = vmul.f32 %v663_v15, %v574_v1  ;;  %v666_v15 = vmul.f32 %v650_v50, %v1259_v23 }
 0x122   : > { %v678_v24 = vmul.f32 %v662_v18, %v1252_v4  ;;  %v654_v47 = vmul.f32 %v638_v34, %v1257_v19 }
 0x123   : > { %v614_v26 = vpop.f32.mrf.mxu3  ;;  %v695_v27 = vadd.f32 %v679_v20, %v574_v1  ;;  %v682_v38 = vadd.f32 %v666_v15, %v1259_v23 }
 0x124   : > { %v1265_v29 = vadd.f32 %v614_v26, %v508_v48  ;;  %v561_v30 = vpop.f32.mrf.mxu0  ;;  %v694_v33 = vadd.f32 %v678_v24, %v1252_v4  ;;  %v670_v7 = vmul.f32 %v654_v47, %v1257_v19  ;;  %v651_v26 = vmul.f32 %v635_v57, %v1275_v39 }
 0x125   : > { %v602_v31 = vpop.f32.mrf.mxu1  ;;  %v711_v32 = vmul.f32 0.7978846, %v695_v27  ;;  %v1281_v43 = vadd.f32 %v561_v30, %v488_v56  ;;  %v1012_v52 = vpop.eup %1011  ;;  %v653_v30 = vmul.f32 %v637_v2, %v1279_v42 }
 0x126   : > { %v1271_v36 = vadd.f32 %v602_v31, %v488_v56  ;;  %v648_v37 = vmul.f32 0.044715, %v1265_v29  ;;  %v710_v46 = vmul.f32 0.7978846, %v694_v33  ;;  %v652_v56 = vmul.f32 %v636_v41, %v1262_v25 }
 0x127   : > { %1013 = vtanh.f32 %v711_v32  ;;  %v639_v0 = vmul.f32 0.044715, %v1281_v43  ;;  %v741_v9 = vadd.f32 1.0, %v1012_v52  ;;  %v686_v28 = vadd.f32 %v670_v7, %v1257_v19 }
 0x128   : > { %v664_v44 = vmul.f32 %v648_v37, %v1265_v29  ;;  %v640_v45 = vmul.f32 0.044715, %v1271_v36  ;;  %1015 = vtanh.f32 %v710_v46  ;;  %v668_v20 = vmul.f32 %v652_v56, %v1262_v25 }
 0x129   : > { %1017 = vtanh.f32 %v708_v55  ;;  %v655_v21 = vmul.f32 %v639_v0, %v1281_v43  ;;  %v757_v27 = vmul.f32 %v741_v9, %v629_v54  ;;  %v665_v41 = vmul.f32 %v649_v17, %v1269_v35 }
 0x12a   : > { %v680_v48 = vmul.f32 %v664_v44, %v1265_v29  ;;  %v656_v49 = vmul.f32 %v640_v45, %v1271_v36  ;;  %v684_v37 = vadd.f32 %v668_v20, %v1262_v25  ;;  %v632_v50 = vmul.f32 0.5, %v1265_v29 }
 0x12b   : > { %v671_v40 = vmul.f32 %v655_v21, %v1281_v43  ;;  %v702_v52 = vmul.f32 0.7978846, %v686_v28  ;;  %v669_v54 = vmul.f32 %v653_v30, %v1279_v42  ;;  %v681_v21 = vadd.f32 %v665_v41, %v1269_v35 }
 0x12c   : > { %v564_v58 = vpop.f32.mrf.mxu0  ;;  %v696_v63 = vadd.f32 %v680_v48, %v1265_v29  ;;  %v672_v53 = vmul.f32 %v656_v49, %v1271_v36  ;;  %v667_v48 = vmul.f32 %v651_v26, %v1275_v39 }
 0x12d   : > { %v1014_v3 = vpop.eup %1013  ;;  %v1296_v5 = vadd.f32 %v564_v58, %v1249_v62  ;;  %v605_v6 = vpop.f32.mrf.mxu1  ;;  %v630_v58 = vmul.f32 0.5, %v1252_v4  ;;  %v687_v0 = vadd.f32 %v671_v40, %v1281_v43  ;;  %v685_v7 = vadd.f32 %v669_v54, %v1279_v42 }
 0x12e   : > { %v1301_v8 = vadd.f32 %v605_v6, %v1249_v62  ;;  %v743_v1 = vadd.f32 1.0, %v1014_v3  ;;  %v712_v14 = vmul.f32 0.7978846, %v696_v63  ;;  %v688_v62 = vadd.f32 %v672_v53, %v1271_v36  ;;  %v1016_v31 = vpop.eup %1015 }
 0x12f   : > { %v641_v16 = vmul.f32 0.044715, %v1296_v5  ;;  %v1018_v44 = vpop.eup %1017  ;;  %v742_v51 = vadd.f32 1.0, %v1016_v31  ;;  %v700_v63 = vmul.f32 0.7978846, %v684_v37  ;;  %v628_v6 = vmul.f32 0.5, %v1247_v60 }
 0x130   : > { %v759_v18 = vmul.f32 %v743_v1, %v631_v61  ;;  %1019 = vtanh.f32 %v712_v14  ;;  %v642_v22 = vmul.f32 0.044715, %v1301_v8  ;;  %v704_v47 = vmul.f32 0.7978846, %v688_v62 }
 0x131   : > { %v657_v24 = vmul.f32 %v641_v16, %v1296_v5  ;;  %v740_v61 = vadd.f32 1.0, %v1018_v44  ;;  %v698_v53 = vmul.f32 0.7978846, %v682_v38  ;;  %v758_v1 = vmul.f32 %v742_v51, %v630_v58 }
 0x132   : > { %790 = vmatpush.msrb.mxu2 %v759_v18  ;;  %v658_v32 = vmul.f32 %v642_v22, %v1301_v8  ;;  %1021 = vtanh.f32 %v704_v47  ;;  %v703_v14 = vmul.f32 0.7978846, %v687_v0  ;;  %v683_v17 = vadd.f32 %v667_v48, %v1275_v39 }
 0x133   : > { %v673_v33 = vmul.f32 %v657_v24, %v1296_v5  ;;  %1023 = vtanh.f32 %v702_v52  ;;  %v756_v15 = vmul.f32 %v740_v61, %v628_v6  ;;  %v701_v20 = vmul.f32 0.7978846, %v685_v7  ;;  %v762_v7 = vld [vmem:[%s1383_s5 + $0x8] sm:$0xff] }
 0x134   : > { %v567_v34 = vpop.f32.mrf.mxu0  ;;  %791 = vmatpush.msrb.mxu2 %v757_v27  ;;  %v674_v46 = vmul.f32 %v658_v32, %v1301_v8  ;;  %v699_v24 = vmul.f32 0.7978846, %v683_v17  ;;  %v626_v26 = vmul.f32 0.5, %v1301_v8  ;;  %v697_v31 = vmul.f32 0.7978846, %v681_v21 }
 0x135   : > { %v1321_v45 = vadd.f32 %v567_v34, %v1244_v59  ;;  %v689_v59 = vadd.f32 %v673_v33, %v1296_v5  ;;  %v624_v34 = vmul.f32 0.5, %v1271_v36  ;;  %v622_v44 = vmul.f32 0.5, %v1257_v19 }
 0x136   : > { %v1020_v49 = vpop.eup %1019  ;;  %v690_v56 = vadd.f32 %v674_v46, %v1301_v8  ;;  %v620_v8 = vmul.f32 0.5, %v1262_v25  ;;  %v618_v54 = vmul.f32 0.5, %v1259_v23  ;;  %v625_v19 = vmul.f32 0.5, %v1296_v5  ;;  %v761_v25 = vld [vmem:[%s1383_s5] sm:$0xff] }
 0x137   : > { %v744_v55 = vadd.f32 1.0, %v1020_v49  ;;  %v643_v57 = vmul.f32 0.044715, %v1321_v45  ;;  %v705_v9 = vmul.f32 0.7978846, %v689_v59  ;;  %v623_v61 = vmul.f32 0.5, %v1281_v43 }
 0x138   : > { %v706_v3 = vmul.f32 0.7978846, %v690_v56  ;;  %v1022_v60 = vpop.eup %1021  ;;  %v621_v5 = vmul.f32 0.5, %v1279_v42  ;;  %v617_v43 = vmul.f32 0.5, %v1269_v35 }
 0x139   : > { %v760_v2 = vmul.f32 %v744_v55, %v632_v50  ;;  %v659_v29 = vmul.f32 %v643_v57, %v1321_v45  ;;  %v1024_v22 = vpop.eup %1023  ;;  %v736_v28 = vadd.f32 1.0, %v1022_v60  ;;  %v627_v50 = vmul.f32 0.5, %v1321_v45 }
 0x13a   : > { %1025 = vtanh.f32 %v706_v3  ;;  %v734_v37 = vadd.f32 1.0, %v1024_v22 }
 0x13b   : > { %813 = vmatpush.msrb.mxu3 %v760_v2  ;;  %v675_v4 = vmul.f32 %v659_v29, %v1321_v45  ;;  %1027 = vtanh.f32 %v700_v63  ;;  %v752_v41 = vmul.f32 %v736_v28, %v624_v34  ;;  %v619_v29 = vmul.f32 0.5, %v1275_v39  ;;  %v768_v39 = vpop.permute.xlu0 %767 }
 0x13c   : > { %1029 = vtanh.f32 %v698_v53  ;;  %v750_v49 = vmul.f32 %v734_v37, %v622_v44 }
 0x13d   : > { %814 = vmatpush.msrb.mxu3 %v758_v1  ;;  %v691_v16 = vadd.f32 %v675_v4, %v1321_v45  ;;  %1031 = vtanh.f32 %v705_v9  ;;  %v833_v9 = vpop.permute.xlu2 %832 }
 0x13e   : > { %1033 = vtanh.f32 %v703_v14 }
 0x13f   : > { %815 = vmatpush.msrb.mxu3 %v756_v15  ;;  %v707_v18 = vmul.f32 0.7978846, %v691_v16  ;;  %v773_v15 = vpop.permute.xlu1 %772 }
 0x140   : > { %v1026_v62 = vpop.eup %1025 }
 0x141   : > { %1035 = vtanh.f32 %v707_v18  ;;  %v738_v27 = vadd.f32 1.0, %v1026_v62  ;;  %v1028_v30 = vpop.eup %1027 }
 0x142   : > { %1037 = vtanh.f32 %v701_v20  ;;  %v1030_v32 = vpop.eup %1029  ;;  %v732_v46 = vadd.f32 1.0, %v1028_v30 }
 0x143   : > { %v754_v33 = vmul.f32 %v738_v27, %v626_v26  ;;  %v1032_v38 = vpop.eup %1031  ;;  %1039 = vtanh.f32 %v699_v24  ;;  %v730_v48 = vadd.f32 1.0, %v1030_v32  ;;  %v838_v20 = vpop.permute.xlu0 %837 }
 0x144   : > { %v1034_v40 = vpop.eup %1033  ;;  %1041 = vtanh.f32 %v697_v31  ;;  %v737_v36 = vadd.f32 1.0, %v1032_v38  ;;  %v748_v55 = vmul.f32 %v732_v46, %v620_v8 }
 0x145   : > { %816 = vmatpush.msrb.mxu3 %v754_v33  ;;  %v735_v57 = vadd.f32 1.0, %v1034_v40  ;;  %v746_v58 = vmul.f32 %v730_v48, %v618_v54 }
 0x146   : > { %v753_v45 = vmul.f32 %v737_v36, %v625_v19 }
 0x147   : > { %v1036_v47 = vpop.eup %1035  ;;  %817 = vmatpush.msrb.mxu3 %v752_v41  ;;  %v751_v0 = vmul.f32 %v735_v57, %v623_v61 }
 0x148   : > { %v739_v51 = vadd.f32 1.0, %v1036_v47  ;;  %v1038_v52 = vpop.eup %1037 }
 0x149   : > { %818 = vmatpush.msrb.mxu3 %v750_v49  ;;  %v1040_v59 = vpop.eup %1039  ;;  %v733_v63 = vadd.f32 1.0, %v1038_v52 }
 0x14a   : > { %v755_v56 = vmul.f32 %v739_v51, %v627_v50  ;;  %v1042_v23 = vpop.eup %1041  ;;  %v731_v2 = vadd.f32 1.0, %v1040_v59 }
 0x14b   : > { %819 = vmatpush.msrb.mxu3 %v748_v55  ;;  %v749_v3 = vmul.f32 %v733_v63, %v621_v5  ;;  %v729_v6 = vadd.f32 1.0, %v1042_v23 }
 0x14c   : > { %792 = vmatpush.msrb.mxu2 %v755_v56  ;;  %v747_v53 = vmul.f32 %v731_v2, %v619_v29 }
 0x14d   : > { %820 = vmatpush.msrb.mxu3 %v746_v58  ;;  %v745_v1 = vmul.f32 %v729_v6, %v617_v43 }
 0x14e   : > { %793 = vmatpush.msrb.mxu2 %v753_v45  ;;  %966 = vmatmul.msk.f32.vlgmr.msrb.gmra.mxu3 %vm775_vm8, %v761_v25 }
 0x150   : > { %794 = vmatpush.msrb.mxu2 %v751_v0 }
 0x152   : > { %795 = vmatpush.msrb.mxu2 %v749_v3 }
 0x154   : > { %796 = vmatpush.msrb.mxu2 %v747_v53 }
 0x156   : > { %797 = vmatpush.msrb.mxu2 %v745_v1  ;;  %967 = vmatmul.msk.f32.gmra.mxu3 %vm775_vm8, %v762_v7 }
 0x157   : > { %964 = vmatmul.msk.f32.vlgmr.msrb.gmra.mxu2 %vm775_vm8, %v761_v25 }
 0x15f   : > { %965 = vmatmul.msk.f32.gmra.mxu2 %vm775_vm8, %v762_v7 }
 0x1d1   : > { %v822_v42 = vpop.f32.mrf.mxu3 }
 0x1d2   : > { %v823_v4 = vadd.f32 %v822_v42, %v768_v39 }
 0x1d4   : > { %v841_v14 = vmul.f32 %v833_v9, %v823_v4 }
 0x1d6   : > { %v845_v35 = vadd.f32 %v841_v14, %v1166_v11 }
 0x1d8   : > { %849 = vst [vmem:[%s343_s15 + $0x8] sm:$0xff] %v845_v35 }
 0x1d9   : > { %v825_v16 = vpop.f32.mrf.mxu3 }
 0x1da   : > { %v799_v17 = vpop.f32.mrf.mxu2  ;;  %v826_v60 = vadd.f32 %v825_v16, %v773_v15 }
 0x1db   : > { %v800_v18 = vadd.f32 %v799_v17, %v768_v39 }
 0x1dc   : > { %v843_v21 = vmul.f32 %v838_v20, %v826_v60 }
 0x1dd   : > { %v840_v22 = vmul.f32 %v833_v9, %v800_v18 }
 0x1de   : > { %v847_v62 = vadd.f32 %v843_v21, %v1170_v13 }
 0x1df   : > { %v844_v24 = vadd.f32 %v840_v22, %v1164_v10 }
 0x1e0   : > { %851 = vst [vmem:[%s343_s15 + $0x18] sm:$0xff] %v847_v62 }
 0x1e1   : > { %848 = vst [vmem:[%s343_s15] sm:$0xff] %v844_v24 }
 0x1e2   : > { %v802_v26 = vpop.f32.mrf.mxu2 }
 0x1e3   : > { %v803_v27 = vadd.f32 %v802_v26, %v773_v15 }
 0x1e5   : > { %v842_v28 = vmul.f32 %v838_v20, %v803_v27 }
 0x1e7   : > { %v846_v11 = vadd.f32 %v842_v28, %v1168_v12 }
 0x1e9   : > { %850 = vst [vmem:[%s343_s15 + $0x10] sm:$0xff] %v846_v11 }
 0x1ea PF: > { %s18_s29 = sadd.s32 1, %s1065_s29   ;;  %s1387_s27 = smov %s1061_s28 }
 0x1eb   : > { %p15_p5 = scmp.ge.s32.totalorder %s18_s29, 4   ;;  %s1388_s28 = smov %s1390_s30 }
 0x1ed   :  { %17 = sbr.rel (!%p15_p5) target bundleno = 2 (0x2), region = 82 }

// kernel: iat_forward.41
= control target key start
LH: loop header
LB: loop body
LE: loop exit
PB: predicated region body
PF: predicated region fallthrough
CT: control target
= control target key end

     0   :  { %vm24_vm0 = vcmask 523264   ;;  %v239_v8 = vmov 64.0   ;;  %s369_s0 = inlined_call_operand.vmem [shape: f32[32,64], index: 0, kind: input, shape index: {}]   ;;  %s370_s3 = inlined_call_operand.vmem [shape: f32[1,64], index: 3, kind: input, shape index: {}]   ;;  %s371_s4 = inlined_call_operand.vmem [shape: f32[1,64], index: 4, kind: input, shape index: {}]   ;;  %s372_s2 = inlined_call_operand.vmem [shape: f32[1,128], index: 2, kind: input, shape index: {}]   ;;  %s373_s1 = inlined_call_operand.vmem [shape: f32[64,128], index: 1, kind: input, shape index: {}]   ;;  %s374_s5 = inlined_call_operand.vmem [shape: f32[32,128], index: 5, kind: output, shape index: {}]  }
   0x1   :  { %v22_v0 = vld [vmem:[%s369_s0 + $0x10] sm:$0xff]  ;;  %v20_v1 = vld [vmem:[%s369_s0] sm:$0xff]  ;;  %v23_v4 = vld [vmem:[%s369_s0 + $0x18] sm:$0xff]  ;;  %229 = vrcp.f32 %v239_v8 }
   0x2   :  { %v31_v2 = vsel %vm24_vm0, %v22_v0, 0.0  ;;  %v25_v3 = vsel %vm24_vm0, %v20_v1, 0.0  ;;  %v21_v5 = vld [vmem:[%s369_s0 + $0x8] sm:$0xff]  ;;  %v34_v6 = vsel %vm24_vm0, %v23_v4, 0.0  ;;  %v143_v35 = vld [vmem:[%s373_s1 + $0x38] sm:$0xff]  ;;  %v142_v36 = vld [vmem:[%s373_s1 + $0x30] sm:$0xff] }
   0x3   :  { %32 = vadd.xlane.f32.xlu0 %v31_v2  ;;  %26 = vadd.xlane.f32.xlu1 %v25_v3  ;;  %v28_v7 = vsel %vm24_vm0, %v21_v5, 0.0  ;;  %v141_v37 = vld [vmem:[%s373_s1 + $0x28] sm:$0xff]  ;;  %v140_v38 = vld [vmem:[%s373_s1 + $0x20] sm:$0xff]  ;;  %v139_v39 = vld [vmem:[%s373_s1 + $0x18] sm:$0xff] }
   0x4   :  { %168 = vmatpush.msra.mxu0 %v143_v35  ;;  %202 = vmatpush.msra.mxu2 %v143_v35  ;;  %v138_v40 = vld [vmem:[%s373_s1 + $0x10] sm:$0xff]  ;;  %v137_v41 = vld [vmem:[%s373_s1 + $0x8] sm:$0xff]  ;;  %v136_v42 = vld [vmem:[%s373_s1] sm:$0xff] }
   0x5   :  { %201 = vmatpush.msra.mxu1 %v143_v35  ;;  %203 = vmatpush.msra.mxu3 %v143_v35  ;;  %v228_v35 = vld [vmem:[%s372_s2] ss:$0 sm:$0xff] }
   0x6   :  { %169 = vmatpush.msra.mxu0 %v142_v36  ;;  %205 = vmatpush.msra.mxu2 %v142_v36 }
   0x7   :  { %v230_v9 = vpop.eup %229  ;;  %204 = vmatpush.msra.mxu1 %v142_v36  ;;  %206 = vmatpush.msra.mxu3 %v142_v36 }
   0x8   :  { %v38_v10 = vmul.f32 64.0, %v230_v9  ;;  %vm42_vm1 = vweird.f32 %v230_v9  ;;  %170 = vmatpush.msra.mxu0 %v141_v37  ;;  %208 = vmatpush.msra.mxu2 %v141_v37 }
   0x9   :  { %207 = vmatpush.msra.mxu1 %v141_v37  ;;  %209 = vmatpush.msra.mxu3 %v141_v37 }
   0xa   :  { %v39_v11 = vsub.f32 1.0, %v38_v10  ;;  %171 = vmatpush.msra.mxu0 %v140_v38  ;;  %211 = vmatpush.msra.mxu2 %v140_v38 }
   0xb   :  { %35 = vadd.xlane.f32.xlu0 %v34_v6  ;;  %29 = vadd.xlane.f32.xlu1 %v28_v7  ;;  %v226_v7 = vld [vmem:[%s370_s3] ss:$0 sm:$0xff] }
   0xc   :  { %v40_v12 = vmul.f32 %v230_v9, %v39_v11  ;;  %210 = vmatpush.msra.mxu1 %v140_v38  ;;  %212 = vmatpush.msra.mxu3 %v140_v38 }
   0xd   :  { %172 = vmatpush.msra.mxu0 %v139_v39  ;;  %214 = vmatpush.msra.mxu2 %v139_v39 }
   0xe   :  { %v41_v13 = vadd.f32 %v230_v9, %v40_v12  ;;  %213 = vmatpush.msra.mxu1 %v139_v39  ;;  %215 = vmatpush.msra.mxu3 %v139_v39  ;;  %v227_v12 = vld [vmem:[%s371_s4] ss:$0 sm:$0xff] }
   0xf   :  { %173 = vmatpush.msra.mxu0 %v138_v40  ;;  %217 = vmatpush.msra.mxu2 %v138_v40 }
  0x10   :  { %v286_v14 = vsel %vm42_vm1, %v230_v9, %v41_v13  ;;  %216 = vmatpush.msra.mxu1 %v138_v40  ;;  %218 = vmatpush.msra.mxu3 %v138_v40 }
  0x11   :  { %174 = vmatpush.msra.mxu0 %v137_v41  ;;  %220 = vmatpush.msra.mxu2 %v137_v41 }
  0x12   :  { %219 = vmatpush.msra.mxu1 %v137_v41  ;;  %221 = vmatpush.msra.mxu3 %v137_v41 }
  0x13   :  { %175 = vmatpush.msra.mxu0 %v136_v42  ;;  %223 = vmatpush.msra.mxu2 %v136_v42 }
  0x14   :  { %222 = vmatpush.msra.mxu1 %v136_v42  ;;  %224 = vmatpush.msra.mxu3 %v136_v42 }
  0x76   :  { %v33_v15 = vpop.xlane.xlu0 %32  ;;  %v27_v16 = vpop.xlane.xlu1 %26 }
  0x77   :  { %v46_v17 = vmul.f32 %v286_v14, %v33_v15  ;;  %v44_v18 = vmul.f32 %v286_v14, %v27_v16 }
  0x79   :  { %v290_v19 = vsub.f32 %v22_v0, %v46_v17  ;;  %v292_v20 = vsub.f32 %v20_v1, %v44_v18 }
  0x7b   :  { %v54_v21 = vmul.f32 %v290_v19, %v290_v19  ;;  %v52_v22 = vmul.f32 %v292_v20, %v292_v20 }
  0x7d   :  { %v62_v23 = vsel %vm24_vm0, %v54_v21, 0.0  ;;  %v56_v24 = vsel %vm24_vm0, %v52_v22, 0.0 }
  0x7e   :  { %63 = vadd.xlane.f32.xlu2 %v62_v23  ;;  %v36_v25 = vpop.xlane.xlu0 %35  ;;  %57 = vadd.xlane.f32.xlu0 %v56_v24  ;;  %v30_v26 = vpop.xlane.xlu1 %29 }
  0x7f   :  { %v47_v27 = vmul.f32 %v286_v14, %v36_v25  ;;  %v45_v28 = vmul.f32 %v286_v14, %v30_v26 }
  0x81   :  { %v302_v29 = vsub.f32 %v23_v4, %v47_v27  ;;  %v304_v30 = vsub.f32 %v21_v5, %v45_v28 }
  0x83   :  { %v55_v31 = vmul.f32 %v302_v29, %v302_v29  ;;  %v53_v32 = vmul.f32 %v304_v30, %v304_v30 }
  0x85   :  { %v65_v33 = vsel %vm24_vm0, %v55_v31, 0.0  ;;  %v59_v34 = vsel %vm24_vm0, %v53_v32, 0.0 }
  0x86   :  { %66 = vadd.xlane.f32.xlu2 %v65_v33  ;;  %60 = vadd.xlane.f32.xlu1 %v59_v34 }
  0xf1   :  { %v64_v43 = vpop.xlane.xlu2 %63  ;;  %v58_v44 = vpop.xlane.xlu0 %57 }
  0xf2   :  { %v70_v45 = vmul.f32 %v64_v43, %v286_v14  ;;  %v68_v46 = vmul.f32 %v58_v44, %v286_v14 }
  0xf4   :  { %v74_v47 = vadd.f32 1e-05, %v70_v45  ;;  %v72_v48 = vadd.f32 1e-05, %v68_v46 }
  0xf6   :  { %231 = vrsqrt.f32 %v74_v47  ;;  %vm82_vm3 = vweird.f32 %v72_v48  ;;  %vm102_vm5 = vweird.f32 %v74_v47 }
  0xf7   :  { %233 = vrsqrt.f32 %v72_v48 }
  0xf9   :  { %v67_v49 = vpop.xlane.xlu2 %66  ;;  %v61_v50 = vpop.xlane.xlu1 %60 }
  0xfa   :  { %v71_v51 = vmul.f32 %v67_v49, %v286_v14  ;;  %v69_v52 = vmul.f32 %v61_v50, %v286_v14 }
  0xfc   :  { %v232_v53 = vpop.eup %231  ;;  %v75_v54 = vadd.f32 1e-05, %v71_v51  ;;  %v73_v55 = vadd.f32 1e-05, %v69_v52 }
  0xfd   :  { %v234_v56 = vpop.eup %233  ;;  %v97_v57 = vmul.f32 %v232_v53, %v74_v47  ;;  %vm103_vm2 = vweird.f32 %v232_v53 }
  0xfe   :  { %v77_v58 = vmul.f32 %v234_v56, %v72_v48  ;;  %235 = vrsqrt.f32 %v75_v54  ;;  %vm83_vm4 = vweird.f32 %v234_v56  ;;  %vm104_vm6 = vmor %vm102_vm5, %vm103_vm2  ;;  %vm92_vm9 = vweird.f32 %v73_v55 }
  0xff   :  { %v98_v59 = vmul.f32 %v232_v53, %v97_v57  ;;  %237 = vrsqrt.f32 %v73_v55  ;;  %vm84_vm7 = vmor %vm82_vm3, %vm83_vm4  ;;  %vm112_vm11 = vweird.f32 %v75_v54 }
 0x100   :  { %v78_v60 = vmul.f32 %v234_v56, %v77_v58 }
 0x101   :  { %v99_v61 = vmul.f32 0.5, %v98_v59 }
 0x102   :  { %v79_v62 = vmul.f32 0.5, %v78_v60 }
 0x103   :  { %v100_v63 = vsub.f32 1.5, %v99_v61 }
 0x104   :  { %v236_v0 = vpop.eup %235  ;;  %v80_v1 = vsub.f32 1.5, %v79_v62 }
 0x105   :  { %v238_v2 = vpop.eup %237  ;;  %v101_v3 = vmul.f32 %v232_v53, %v100_v63  ;;  %v107_v4 = vmul.f32 %v236_v0, %v75_v54  ;;  %vm113_vm8 = vweird.f32 %v236_v0 }
 0x106   :  { %v81_v5 = vmul.f32 %v234_v56, %v80_v1  ;;  %v87_v6 = vmul.f32 %v238_v2, %v73_v55  ;;  %vm93_vm10 = vweird.f32 %v238_v2  ;;  %vm114_vm12 = vmor %vm112_vm11, %vm113_vm8 }
 0x107   :  { %v105_v8 = vsel %vm104_vm6, %v232_v53, %v101_v3  ;;  %v108_v9 = vmul.f32 %v236_v0, %v107_v4  ;;  %vm94_vm13 = vmor %vm92_vm9, %vm93_vm10 }
 0x108   :  { %v85_v10 = vsel %vm84_vm7, %v234_v56, %v81_v5  ;;  %v88_v11 = vmul.f32 %v238_v2, %v87_v6  ;;  %v118_v13 = vmul.f32 %v105_v8, %v290_v19 }
 0x109   :  { %v109_v14 = vmul.f32 0.5, %v108_v9  ;;  %v116_v15 = vmul.f32 %v85_v10, %v292_v20 }
 0x10a   :  { %v89_v16 = vmul.f32 0.5, %v88_v11  ;;  %v126_v17 = vmul.f32 %v226_v7, %v118_v13 }
 0x10b   :  { %v110_v18 = vsub.f32 1.5, %v109_v14  ;;  %v124_v21 = vmul.f32 %v226_v7, %v116_v15 }
 0x10c   :  { %v90_v22 = vsub.f32 1.5, %v89_v16  ;;  %v134_v23 = vadd.f32 %v227_v12, %v126_v17 }
 0x10d   :  { %v111_v24 = vmul.f32 %v236_v0, %v110_v18  ;;  %v132_v25 = vadd.f32 %v227_v12, %v124_v21 }
 0x10e   :  { %v91_v26 = vmul.f32 %v238_v2, %v90_v22  ;;  %199 = vmatmul.msk.f32.vlgmr.msra.gmra.mxu2 %vm24_vm0, %v134_v23 }
 0x10f   :  { %v115_v19 = vsel %vm114_vm12, %v236_v0, %v111_v24  ;;  %197 = vmatmul.msk.f32.vlgmr.msra.gmra.mxu0 %vm24_vm0, %v132_v25 }
 0x110   :  { %v95_v20 = vsel %vm94_vm13, %v238_v2, %v91_v26  ;;  %v119_v27 = vmul.f32 %v115_v19, %v302_v29 }
 0x111   :  { %v117_v28 = vmul.f32 %v95_v20, %v304_v30 }
 0x112   :  { %v127_v31 = vmul.f32 %v226_v7, %v119_v27 }
 0x113   :  { %v125_v32 = vmul.f32 %v226_v7, %v117_v28 }
 0x114   :  { %v135_v33 = vadd.f32 %v227_v12, %v127_v31 }
 0x115   :  { %v133_v34 = vadd.f32 %v227_v12, %v125_v32 }
 0x116   :  { %200 = vmatmul.msk.f32.vlgmr.msra.gmra.mxu3 %vm24_vm0, %v135_v33 }
 0x117   :  { %198 = vmatmul.msk.f32.vlgmr.msra.gmra.mxu1 %vm24_vm0, %v133_v34 }
 0x18c   :  { %v177_v36 = vpop.f32.mrf.mxu0 }
 0x18d   :  { %v178_v37 = vadd.f32 %v228_v35, %v177_v36 }
 0x18f   :  { %189 = vst [vmem:[%s374_s5] sm:$0xff] %v178_v37 }
 0x191   :  { %v183_v29 = vpop.f32.mrf.mxu2 }
 0x192   :  { %v184_v30 = vadd.f32 %v228_v35, %v183_v29 }
 0x194   :  { %191 = vst [vmem:[%s374_s5 + $0x10] sm:$0xff] %v184_v30  ;;  %v180_v38 = vpop.f32.mrf.mxu1 }
 0x195   :  { %v181_v39 = vadd.f32 %v228_v35, %v180_v38 }
 0x197   :  { %190 = vst [vmem:[%s374_s5 + $0x8] sm:$0xff] %v181_v39 }
 0x199   :  { %v186_v40 = vpop.f32.mrf.mxu3 }
 0x19a   :  { %v187_v41 = vadd.f32 %v228_v35, %v186_v40 }
 0x19c   :  { %192 = vst [vmem:[%s374_s5 + $0x18] sm:$0xff] %v187_v41 }

// kernel: iat_forward.42
= control target key start
LH: loop header
LB: loop body
LE: loop exit
PB: predicated region body
PF: predicated region fallthrough
CT: control target
= control target key end

     0   :  { %vm35_vm0 = vcmask 523264   ;;  %vm73_vm1 = vcmask 519168   ;;  %s179_s1 = inlined_call_operand.vmem [shape: f32[64,64], index: 1, kind: input, shape index: {}]   ;;  %s180_s3 = inlined_call_operand.vmem [shape: f32[1,64], index: 3, kind: input, shape index: {}]   ;;  %s181_s4 = inlined_call_operand.vmem [shape: f32[1,64], index: 4, kind: input, shape index: {}]   ;;  %s182_s2 = inlined_call_operand.vmem [shape: f32[1,64], index: 2, kind: input, shape index: {}]   ;;  %s183_s0 = inlined_call_operand.vmem [shape: f32[20,64], index: 0, kind: input, shape index: {}]   ;;  %s184_s5 = inlined_call_operand.vmem [shape: f32[20,64], index: 5, kind: output, shape index: {}]  }
   0x1   :  { %v30_v0 = vld [vmem:[%s179_s1 + $0x38] sm:$0xff]  ;;  %v29_v1 = vld [vmem:[%s179_s1 + $0x30] sm:$0xff]  ;;  %v28_v2 = vld [vmem:[%s179_s1 + $0x28] sm:$0xff] }
   0x2   :  { %83 = vmatpush.msra.mxu2 %v30_v0  ;;  %53 = vmatpush.msra.mxu0 %v30_v0  ;;  %v27_v3 = vld [vmem:[%s179_s1 + $0x20] sm:$0xff]  ;;  %v26_v4 = vld [vmem:[%s179_s1 + $0x18] sm:$0xff]  ;;  %v25_v5 = vld [vmem:[%s179_s1 + $0x10] sm:$0xff] }
   0x3   :  { %82 = vmatpush.msra.mxu1 %v30_v0  ;;  %v24_v6 = vld [vmem:[%s179_s1 + $0x8] sm:$0xff]  ;;  %v23_v7 = vld [vmem:[%s179_s1] sm:$0xff]  ;;  %v22_v8 = vld [vmem:[%s183_s0 + $0x10] sm:$0xf] }
   0x4   :  { %85 = vmatpush.msra.mxu2 %v29_v1  ;;  %54 = vmatpush.msra.mxu0 %v29_v1  ;;  %v20_v9 = vld [vmem:[%s183_s0] sm:$0xff]  ;;  %v21_v10 = vld [vmem:[%s183_s0 + $0x8] sm:$0xff] }
   0x5   :  { %84 = vmatpush.msra.mxu1 %v29_v1  ;;  %v98_v11 = vld [vmem:[%s182_s2] ss:$0 sm:$0xff] }
   0x6   :  { %87 = vmatpush.msra.mxu2 %v28_v2  ;;  %55 = vmatpush.msra.mxu0 %v28_v2 }
   0x7   :  { %86 = vmatpush.msra.mxu1 %v28_v2 }
   0x8   :  { %89 = vmatpush.msra.mxu2 %v27_v3  ;;  %56 = vmatpush.msra.mxu0 %v27_v3 }
   0x9   :  { %88 = vmatpush.msra.mxu1 %v27_v3 }
   0xa   :  { %91 = vmatpush.msra.mxu2 %v26_v4  ;;  %57 = vmatpush.msra.mxu0 %v26_v4 }
   0xb   :  { %90 = vmatpush.msra.mxu1 %v26_v4 }
   0xc   :  { %93 = vmatpush.msra.mxu2 %v25_v5  ;;  %58 = vmatpush.msra.mxu0 %v25_v5 }
   0xd   :  { %92 = vmatpush.msra.mxu1 %v25_v5 }
   0xe   :  { %95 = vmatpush.msra.mxu2 %v24_v6  ;;  %59 = vmatpush.msra.mxu0 %v24_v6 }
   0xf   :  { %94 = vmatpush.msra.mxu1 %v24_v6 }
  0x10   :  { %97 = vmatpush.msra.mxu2 %v23_v7  ;;  %60 = vmatpush.msra.mxu0 %v23_v7 }
  0x11   :  { %81 = vmatmul.msk.f32.vlgmr.msra.gmra.mxu2 %vm35_vm0, %v22_v8  ;;  %96 = vmatpush.msra.mxu1 %v23_v7 }
  0x12   :  { %79 = vmatmul.msk.f32.vlgmr.msra.gmra.mxu0 %vm35_vm0, %v20_v9  ;;  %80 = vmatmul.msk.f32.vlgmr.msra.gmra.mxu1 %vm35_vm0, %v21_v10 }
  0x8f   :  { %v62_v12 = vpop.f32.mrf.mxu0  ;;  %v65_v13 = vpop.f32.mrf.mxu1 }
  0x90   :  { %v63_v14 = vadd.f32 %v98_v11, %v62_v12  ;;  %v66_v15 = vadd.f32 %v98_v11, %v65_v13 }
  0x92   :  { %71 = vst.msk [vmem:[%s184_s5] sm:$0xff] %vm35_vm0, %v63_v14 }
  0x93   :  { %72 = vst.msk [vmem:[%s184_s5 + $0x8] sm:$0xff] %vm35_vm0, %v66_v15 }
  0x94   :  { %v68_v16 = vpop.f32.mrf.mxu2 }
  0x95   :  { %v69_v17 = vadd.f32 %v98_v11, %v68_v16 }
  0x97   :  { %74 = vst.msk [vmem:[%s184_s5 + $0x10] sm:$0xf] %vm73_vm1, %v69_v17 }

// kernel: iat_forward.43
= control target key start
LH: loop header
LB: loop body
LE: loop exit
PB: predicated region body
PF: predicated region fallthrough
CT: control target
= control target key end

     0   :  { %vm23_vm0 = vcmask 523264   ;;  %vm30_vm1 = vcmask 519168   ;;  %v304_v6 = vmov 64.0   ;;  %s454_s0 = inlined_call_operand.vmem [shape: f32[20,64], index: 0, kind: input, shape index: {}]   ;;  %s455_s3 = inlined_call_operand.vmem [shape: f32[1,64], index: 3, kind: input, shape index: {}]   ;;  %s456_s4 = inlined_call_operand.vmem [shape: f32[1,64], index: 4, kind: input, shape index: {}]   ;;  %s457_s1 = inlined_call_operand.vmem [shape: f32[64,256], index: 1, kind: input, shape index: {}]   ;;  %s458_s2 = inlined_call_operand.vmem [shape: f32[1,256], index: 2, kind: input, shape index: {}]   ;;  %s459_s5 = inlined_call_operand.vmem [shape: f32[20,256], index: 5, kind: output, shape index: {}]  }
   0x1   :  { %v21_v0 = vld [vmem:[%s454_s0 + $0x8] sm:$0xff]  ;;  %v20_v1 = vld [vmem:[%s454_s0] sm:$0xff]  ;;  %v22_v4 = vld [vmem:[%s454_s0 + $0x10] sm:$0xf]  ;;  %284 = vrcp.f32 %v304_v6 }
   0x2   :  { %v27_v2 = vsel %vm23_vm0, %v21_v0, 0.0  ;;  %v24_v3 = vsel %vm23_vm0, %v20_v1, 0.0  ;;  %v31_v5 = vsel %vm30_vm1, %v22_v4, 0.0  ;;  %v126_v28 = vld [vmem:[%s457_s1 + $0x70] sm:$0xff]  ;;  %v127_v29 = vld [vmem:[%s457_s1 + $0x78] sm:$0xff]  ;;  %v124_v30 = vld [vmem:[%s457_s1 + $0x60] sm:$0xff] }
   0x3   :  { %28 = vadd.xlane.f32.xlu0 %v27_v2  ;;  %25 = vadd.xlane.f32.xlu1 %v24_v3  ;;  %v125_v31 = vld [vmem:[%s457_s1 + $0x68] sm:$0xff]  ;;  %v122_v32 = vld [vmem:[%s457_s1 + $0x50] sm:$0xff]  ;;  %v123_v33 = vld [vmem:[%s457_s1 + $0x58] sm:$0xff] }
   0x4   :  { %265 = vmatpush.msra.mxu2 %v126_v28  ;;  %273 = vmatpush.msra.mxu3 %v127_v29  ;;  %v120_v34 = vld [vmem:[%s457_s1 + $0x40] sm:$0xff]  ;;  %v121_v35 = vld [vmem:[%s457_s1 + $0x48] sm:$0xff]  ;;  %v118_v36 = vld [vmem:[%s457_s1 + $0x30] sm:$0xff] }
   0x5   :  { %151 = vmatpush.msra.mxu0 %v126_v28  ;;  %177 = vmatpush.msra.mxu1 %v127_v29  ;;  %v119_v37 = vld [vmem:[%s457_s1 + $0x38] sm:$0xff]  ;;  %v116_v38 = vld [vmem:[%s457_s1 + $0x20] sm:$0xff]  ;;  %v117_v39 = vld [vmem:[%s457_s1 + $0x28] sm:$0xff] }
   0x6   :  { %266 = vmatpush.msra.mxu2 %v124_v30  ;;  %274 = vmatpush.msra.mxu3 %v125_v31  ;;  %v114_v40 = vld [vmem:[%s457_s1 + $0x10] sm:$0xff]  ;;  %v115_v41 = vld [vmem:[%s457_s1 + $0x18] sm:$0xff]  ;;  %v112_v42 = vld [vmem:[%s457_s1] sm:$0xff] }
   0x7   :  { %v285_v7 = vpop.eup %284  ;;  %152 = vmatpush.msra.mxu0 %v124_v30  ;;  %178 = vmatpush.msra.mxu1 %v125_v31  ;;  %v113_v43 = vld [vmem:[%s457_s1 + $0x8] sm:$0xff]  ;;  %v282_v61 = vld [vmem:[%s455_s3] ss:$0 sm:$0xff] }
   0x8   :  { %v35_v8 = vmul.f32 64.0, %v285_v7  ;;  %vm39_vm2 = vweird.f32 %v285_v7  ;;  %267 = vmatpush.msra.mxu2 %v122_v32  ;;  %275 = vmatpush.msra.mxu3 %v123_v33 }
   0x9   :  { %153 = vmatpush.msra.mxu0 %v122_v32  ;;  %179 = vmatpush.msra.mxu1 %v123_v33 }
   0xa   :  { %v36_v9 = vsub.f32 1.0, %v35_v8  ;;  %268 = vmatpush.msra.mxu2 %v120_v34  ;;  %276 = vmatpush.msra.mxu3 %v121_v35 }
   0xb   :  { %32 = vadd.xlane.f32.xlu0 %v31_v5  ;;  %154 = vmatpush.msra.mxu0 %v120_v34 }
   0xc   :  { %v37_v10 = vmul.f32 %v285_v7, %v36_v9  ;;  %180 = vmatpush.msra.mxu1 %v121_v35  ;;  %269 = vmatpush.msra.mxu2 %v118_v36 }
   0xd   :  { %277 = vmatpush.msra.mxu3 %v119_v37  ;;  %155 = vmatpush.msra.mxu0 %v118_v36 }
   0xe   :  { %v38_v11 = vadd.f32 %v285_v7, %v37_v10  ;;  %181 = vmatpush.msra.mxu1 %v119_v37  ;;  %270 = vmatpush.msra.mxu2 %v116_v38 }
   0xf   :  { %278 = vmatpush.msra.mxu3 %v117_v39  ;;  %156 = vmatpush.msra.mxu0 %v116_v38 }
  0x10   :  { %v347_v12 = vsel %vm39_vm2, %v285_v7, %v38_v11  ;;  %182 = vmatpush.msra.mxu1 %v117_v39  ;;  %271 = vmatpush.msra.mxu2 %v114_v40 }
  0x11   :  { %279 = vmatpush.msra.mxu3 %v115_v41  ;;  %157 = vmatpush.msra.mxu0 %v114_v40 }
  0x12   :  { %183 = vmatpush.msra.mxu1 %v115_v41  ;;  %272 = vmatpush.msra.mxu2 %v112_v42 }
  0x13   :  { %280 = vmatpush.msra.mxu3 %v113_v43  ;;  %158 = vmatpush.msra.mxu0 %v112_v42 }
  0x14   :  { %184 = vmatpush.msra.mxu1 %v113_v43 }
  0x76   :  { %v29_v13 = vpop.xlane.xlu0 %28  ;;  %v26_v17 = vpop.xlane.xlu1 %25 }
  0x77   :  { %v42_v14 = vmul.f32 %v347_v12, %v29_v13  ;;  %v41_v21 = vmul.f32 %v347_v12, %v26_v17 }
  0x79   :  { %v350_v15 = vsub.f32 %v21_v0, %v42_v14  ;;  %v361_v24 = vsub.f32 %v20_v1, %v41_v21  ;;  %v283_v1 = vld [vmem:[%s456_s4] ss:$0 sm:$0xff] }
  0x7a   :  { %v128_v21 = vld [vmem:[%s458_s2] sm:$0x3] }
  0x7b   :  { %v48_v16 = vmul.f32 %v350_v15, %v350_v15  ;;  %v47_v26 = vmul.f32 %v361_v24, %v361_v24 }
  0x7d   :  { %v53_v18 = vsel %vm23_vm0, %v48_v16, 0.0  ;;  %v50_v27 = vsel %vm23_vm0, %v47_v26, 0.0 }
  0x7e   :  { %v33_v19 = vpop.xlane.xlu0 %32  ;;  %54 = vadd.xlane.f32.xlu1 %v53_v18 }
  0x7f   :  { %v43_v20 = vmul.f32 %v347_v12, %v33_v19 }
  0x81   :  { %v357_v22 = vsub.f32 %v22_v4, %v43_v20 }
  0x83   :  { %v49_v23 = vmul.f32 %v357_v22, %v357_v22 }
  0x85   :  { %v56_v25 = vsel %vm30_vm1, %v49_v23, 0.0  ;;  %v131_v23 = vperm.slane %v128_v21, 1 }
  0x86   :  { %57 = vadd.xlane.f32.xlu2 %v56_v25 }
  0x8e   :  { %51 = vadd.xlane.f32.xlu2 %v50_v27 }
  0xf1   :  { %v55_v44 = vpop.xlane.xlu1 %54 }
  0xf2   :  { %v60_v45 = vmul.f32 %v55_v44, %v347_v12 }
  0xf4   :  { %v63_v46 = vadd.f32 1e-05, %v60_v45 }
  0xf6   :  { %286 = vrsqrt.f32 %v63_v46  ;;  %vm81_vm4 = vweird.f32 %v63_v46 }
  0xf9   :  { %v58_v47 = vpop.xlane.xlu2 %57 }
  0xfa   :  { %v61_v48 = vmul.f32 %v58_v47, %v347_v12 }
  0xfc   :  { %v287_v49 = vpop.eup %286  ;;  %v64_v50 = vadd.f32 1e-05, %v61_v48 }
  0xfd   :  { %v76_v51 = vmul.f32 %v287_v49, %v63_v46  ;;  %vm82_vm3 = vweird.f32 %v287_v49 }
  0xfe   :  { %288 = vrsqrt.f32 %v64_v50  ;;  %vm83_vm5 = vmor %vm81_vm4, %vm82_vm3  ;;  %vm91_vm7 = vweird.f32 %v64_v50 }
  0xff   :  { %v77_v52 = vmul.f32 %v287_v49, %v76_v51 }
 0x101   :  { %v78_v53 = vmul.f32 0.5, %v77_v52  ;;  %v52_v54 = vpop.xlane.xlu2 %51 }
 0x102   :  { %v59_v55 = vmul.f32 %v52_v54, %v347_v12 }
 0x103   :  { %v79_v56 = vsub.f32 1.5, %v78_v53 }
 0x104   :  { %v289_v57 = vpop.eup %288  ;;  %v62_v58 = vadd.f32 1e-05, %v59_v55 }
 0x105   :  { %v80_v59 = vmul.f32 %v287_v49, %v79_v56  ;;  %v86_v60 = vmul.f32 %v289_v57, %v64_v50  ;;  %vm92_vm6 = vweird.f32 %v289_v57 }
 0x106   :  { %290 = vrsqrt.f32 %v62_v58  ;;  %vm93_vm8 = vmor %vm91_vm7, %vm92_vm6  ;;  %vm71_vm10 = vweird.f32 %v62_v58 }
 0x107   :  { %v84_v62 = vsel %vm83_vm5, %v287_v49, %v80_v59  ;;  %v87_v63 = vmul.f32 %v289_v57, %v86_v60 }
 0x108   :  { %v96_v0 = vmul.f32 %v84_v62, %v350_v15 }
 0x109   :  { %v88_v2 = vmul.f32 0.5, %v87_v63 }
 0x10a   :  { %v103_v3 = vmul.f32 %v282_v61, %v96_v0 }
 0x10b   :  { %v89_v4 = vsub.f32 1.5, %v88_v2 }
 0x10c   :  { %v291_v5 = vpop.eup %290  ;;  %v110_v6 = vadd.f32 %v283_v1, %v103_v3 }
 0x10d   :  { %v90_v7 = vmul.f32 %v289_v57, %v89_v4  ;;  %v66_v8 = vmul.f32 %v291_v5, %v62_v58  ;;  %vm72_vm9 = vweird.f32 %v291_v5 }
 0x10e   :  { %260 = vmatmul.msk.f32.vlgmr.msra.gmra.mxu2 %vm23_vm0, %v110_v6  ;;  %263 = vmatmul.msk.f32.vlgmr.msra.gmra.mxu3 %vm23_vm0, %v110_v6  ;;  %vm73_vm11 = vmor %vm71_vm10, %vm72_vm9 }
 0x10f   :  { %v94_v9 = vsel %vm93_vm8, %v289_v57, %v90_v7  ;;  %v67_v10 = vmul.f32 %v291_v5, %v66_v8 }
 0x110   :  { %v97_v11 = vmul.f32 %v94_v9, %v357_v22  ;;  %v130_v22 = vperm.slane %v128_v21, 0 }
 0x111   :  { %v68_v12 = vmul.f32 0.5, %v67_v10 }
 0x112   :  { %v104_v13 = vmul.f32 %v282_v61, %v97_v11 }
 0x113   :  { %v69_v14 = vsub.f32 1.5, %v68_v12 }
 0x114   :  { %v111_v15 = vadd.f32 %v283_v1, %v104_v13 }
 0x115   :  { %v70_v16 = vmul.f32 %v291_v5, %v69_v14 }
 0x116   :  { %261 = vmatmul.msk.f32.gmra.mxu2 %vm23_vm0, %v111_v15  ;;  %264 = vmatmul.msk.f32.gmra.mxu3 %vm23_vm0, %v111_v15 }
 0x117   :  { %v74_v17 = vsel %vm73_vm11, %v291_v5, %v70_v16 }
 0x118   :  { %v95_v18 = vmul.f32 %v74_v17, %v361_v24 }
 0x11a   :  { %v102_v19 = vmul.f32 %v282_v61, %v95_v18 }
 0x11c   :  { %v109_v20 = vadd.f32 %v283_v1, %v102_v19 }
 0x11e   :  { %259 = vmatmul.msk.f32.vlgmr.msra.gmra.mxu0 %vm23_vm0, %v109_v20  ;;  %262 = vmatmul.msk.f32.vlgmr.msra.gmra.mxu1 %vm23_vm0, %v109_v20 }
 0x191   :  { %v163_v25 = vpop.f32.mrf.mxu2  ;;  %v189_v26 = vpop.f32.mrf.mxu3 }
 0x192   :  { %v164_v27 = vadd.f32 %v163_v25, %v130_v22  ;;  %v190_v28 = vadd.f32 %v189_v26, %v131_v23 }
 0x194   :  { %v203_v29 = vmul.f32 0.044715, %v164_v27  ;;  %v204_v30 = vmul.f32 0.044715, %v190_v28  ;;  %v197_v62 = vmul.f32 0.5, %v164_v27  ;;  %v198_v2 = vmul.f32 0.5, %v190_v28 }
 0x196   :  { %v209_v31 = vmul.f32 %v203_v29, %v164_v27  ;;  %v210_v24 = vmul.f32 %v204_v30, %v190_v28 }
 0x198   :  { %v215_v32 = vmul.f32 %v209_v31, %v164_v27  ;;  %v216_v33 = vmul.f32 %v210_v24, %v190_v28 }
 0x199   :  { %v166_v34 = vpop.f32.mrf.mxu2  ;;  %v192_v35 = vpop.f32.mrf.mxu3 }
 0x19a   :  { %v221_v36 = vadd.f32 %v215_v32, %v164_v27  ;;  %v222_v37 = vadd.f32 %v216_v33, %v190_v28  ;;  %v167_v38 = vadd.f32 %v166_v34, %v130_v22  ;;  %v193_v39 = vadd.f32 %v192_v35, %v131_v23 }
 0x19b   :  { %v160_v40 = vpop.f32.mrf.mxu0  ;;  %v186_v41 = vpop.f32.mrf.mxu1 }
 0x19c   :  { %v227_v42 = vmul.f32 0.7978846, %v221_v36  ;;  %v228_v43 = vmul.f32 0.7978846, %v222_v37  ;;  %v205_v44 = vmul.f32 0.044715, %v167_v38  ;;  %v161_v46 = vadd.f32 %v160_v40, %v130_v22 }
 0x19d   :  { %v206_v45 = vmul.f32 0.044715, %v193_v39  ;;  %v187_v47 = vadd.f32 %v186_v41, %v131_v23  ;;  %v199_v12 = vmul.f32 0.5, %v167_v38  ;;  %v200_v14 = vmul.f32 0.5, %v193_v39 }
 0x19e   :  { %292 = vtanh.f32 %v227_v42  ;;  %v211_v48 = vmul.f32 %v205_v44, %v167_v38  ;;  %v201_v50 = vmul.f32 0.044715, %v161_v46  ;;  %v195_v20 = vmul.f32 0.5, %v161_v46 }
 0x19f   :  { %294 = vtanh.f32 %v228_v43  ;;  %v212_v49 = vmul.f32 %v206_v45, %v193_v39  ;;  %v202_v51 = vmul.f32 0.044715, %v187_v47  ;;  %v196_v22 = vmul.f32 0.5, %v187_v47 }
 0x1a0   :  { %v217_v52 = vmul.f32 %v211_v48, %v167_v38  ;;  %v207_v54 = vmul.f32 %v201_v50, %v161_v46 }
 0x1a1   :  { %v218_v53 = vmul.f32 %v212_v49, %v193_v39  ;;  %v208_v55 = vmul.f32 %v202_v51, %v187_v47 }
 0x1a2   :  { %v223_v56 = vadd.f32 %v217_v52, %v167_v38  ;;  %v213_v59 = vmul.f32 %v207_v54, %v161_v46 }
 0x1a3   :  { %v224_v57 = vadd.f32 %v218_v53, %v193_v39  ;;  %v214_v60 = vmul.f32 %v208_v55, %v187_v47 }
 0x1a4   :  { %v293_v58 = vpop.eup %292  ;;  %v229_v0 = vmul.f32 0.7978846, %v223_v56  ;;  %v219_v4 = vadd.f32 %v213_v59, %v161_v46 }
 0x1a5   :  { %v295_v61 = vpop.eup %294  ;;  %v239_v63 = vadd.f32 1.0, %v293_v58  ;;  %v230_v1 = vmul.f32 0.7978846, %v224_v57  ;;  %v220_v5 = vadd.f32 %v214_v60, %v187_v47 }
 0x1a6   :  { %v240_v3 = vadd.f32 1.0, %v295_v61  ;;  %296 = vtanh.f32 %v229_v0  ;;  %v225_v8 = vmul.f32 0.7978846, %v219_v4 }
 0x1a7   :  { %v245_v6 = vmul.f32 %v239_v63, %v197_v62  ;;  %298 = vtanh.f32 %v230_v1  ;;  %v226_v9 = vmul.f32 0.7978846, %v220_v5 }
 0x1a8   :  { %v246_v7 = vmul.f32 %v240_v3, %v198_v2  ;;  %300 = vtanh.f32 %v225_v8 }
 0x1a9   :  { %251 = vst [vmem:[%s459_s5 + $0x10] sm:$0xff] %v245_v6  ;;  %302 = vtanh.f32 %v226_v9 }
 0x1aa   :  { %252 = vst [vmem:[%s459_s5 + $0x18] sm:$0xff] %v246_v7 }
 0x1ac   :  { %v297_v10 = vpop.eup %296 }
 0x1ad   :  { %v299_v11 = vpop.eup %298  ;;  %v241_v13 = vadd.f32 1.0, %v297_v10 }
 0x1ae   :  { %v242_v15 = vadd.f32 1.0, %v299_v11  ;;  %v301_v16 = vpop.eup %300 }
 0x1af   :  { %v247_v17 = vmul.f32 %v241_v13, %v199_v12  ;;  %v303_v18 = vpop.eup %302  ;;  %v237_v21 = vadd.f32 1.0, %v301_v16 }
 0x1b0   :  { %v248_v19 = vmul.f32 %v242_v15, %v200_v14  ;;  %v238_v23 = vadd.f32 1.0, %v303_v18 }
 0x1b1   :  { %253 = vst [vmem:[%s459_s5 + $0x20] sm:$0xf] %v247_v17  ;;  %v243_v25 = vmul.f32 %v237_v21, %v195_v20 }
 0x1b2   :  { %254 = vst [vmem:[%s459_s5 + $0x28] sm:$0xf] %v248_v19  ;;  %v244_v26 = vmul.f32 %v238_v23, %v196_v22 }
 0x1b3   :  { %249 = vst [vmem:[%s459_s5] sm:$0xff] %v243_v25 }
 0x1b4   :  { %250 = vst [vmem:[%s459_s5 + $0x8] sm:$0xff] %v244_v26 }

// kernel: iat_forward.44
= control target key start
LH: loop header
LB: loop body
LE: loop exit
PB: predicated region body
PF: predicated region fallthrough
CT: control target
= control target key end

     0   :  { %vm114_vm0 = vcmask 523264   ;;  %vm117_vm1 = vcmask 519168   ;;  %s312_s1 = inlined_call_operand.vmem [shape: f32[256,64], index: 1, kind: input, shape index: {}]   ;;  %s313_s3 = inlined_call_operand.vmem [shape: f32[1,256], index: 3, kind: input, shape index: {}]   ;;  %s314_s4 = inlined_call_operand.vmem [shape: f32[1,256], index: 4, kind: input, shape index: {}]   ;;  %s315_s2 = inlined_call_operand.vmem [shape: f32[1,64], index: 2, kind: input, shape index: {}]   ;;  %s316_s0 = inlined_call_operand.vmem [shape: f32[20,256], index: 0, kind: input, shape index: {}]   ;;  %s317_s5 = inlined_call_operand.vmem [shape: f32[20,64], index: 5, kind: output, shape index: {}]  }
   0x1   :  { %v41_v0 = vld [vmem:[%s312_s1 + $0x78] sm:$0xff]  ;;  %v40_v1 = vld [vmem:[%s312_s1 + $0x70] sm:$0xff]  ;;  %v39_v4 = vld [vmem:[%s312_s1 + $0x68] sm:$0xff] }
   0x2   :  { %v57_v2 = vld [vmem:[%s312_s1 + $0xf8] sm:$0xff]  ;;  %123 = vmatpush.msra.mxu2 %v41_v0  ;;  %v56_v3 = vld [vmem:[%s312_s1 + $0xf0] sm:$0xff]  ;;  %v55_v5 = vld [vmem:[%s312_s1 + $0xe8] sm:$0xff]  ;;  %62 = vmatpush.msra.mxu0 %v41_v0 }
   0x3   :  { %139 = vmatpush.msra.mxu3 %v57_v2  ;;  %88 = vmatpush.msra.mxu1 %v57_v2  ;;  %v38_v6 = vld [vmem:[%s312_s1 + $0x60] sm:$0xff]  ;;  %v37_v8 = vld [vmem:[%s312_s1 + $0x58] sm:$0xff]  ;;  %v36_v10 = vld [vmem:[%s312_s1 + $0x50] sm:$0xff] }
   0x4   :  { %124 = vmatpush.msra.mxu2 %v40_v1  ;;  %v54_v7 = vld [vmem:[%s312_s1 + $0xe0] sm:$0xff]  ;;  %63 = vmatpush.msra.mxu0 %v40_v1  ;;  %v53_v9 = vld [vmem:[%s312_s1 + $0xd8] sm:$0xff]  ;;  %v52_v11 = vld [vmem:[%s312_s1 + $0xd0] sm:$0xff] }
   0x5   :  { %140 = vmatpush.msra.mxu3 %v56_v3  ;;  %89 = vmatpush.msra.mxu1 %v56_v3  ;;  %v35_v12 = vld [vmem:[%s312_s1 + $0x48] sm:$0xff]  ;;  %v34_v14 = vld [vmem:[%s312_s1 + $0x40] sm:$0xff]  ;;  %v33_v16 = vld [vmem:[%s312_s1 + $0x38] sm:$0xff] }
   0x6   :  { %125 = vmatpush.msra.mxu2 %v39_v4  ;;  %64 = vmatpush.msra.mxu0 %v39_v4  ;;  %v51_v13 = vld [vmem:[%s312_s1 + $0xc8] sm:$0xff]  ;;  %v50_v15 = vld [vmem:[%s312_s1 + $0xc0] sm:$0xff]  ;;  %v49_v17 = vld [vmem:[%s312_s1 + $0xb8] sm:$0xff] }
   0x7   :  { %141 = vmatpush.msra.mxu3 %v55_v5  ;;  %90 = vmatpush.msra.mxu1 %v55_v5  ;;  %v32_v18 = vld [vmem:[%s312_s1 + $0x30] sm:$0xff]  ;;  %v31_v20 = vld [vmem:[%s312_s1 + $0x28] sm:$0xff]  ;;  %v30_v22 = vld [vmem:[%s312_s1 + $0x20] sm:$0xff] }
   0x8   :  { %126 = vmatpush.msra.mxu2 %v38_v6  ;;  %65 = vmatpush.msra.mxu0 %v38_v6  ;;  %v48_v19 = vld [vmem:[%s312_s1 + $0xb0] sm:$0xff]  ;;  %v47_v21 = vld [vmem:[%s312_s1 + $0xa8] sm:$0xff]  ;;  %v46_v23 = vld [vmem:[%s312_s1 + $0xa0] sm:$0xff] }
   0x9   :  { %142 = vmatpush.msra.mxu3 %v54_v7  ;;  %91 = vmatpush.msra.mxu1 %v54_v7  ;;  %v29_v24 = vld [vmem:[%s312_s1 + $0x18] sm:$0xff]  ;;  %v28_v26 = vld [vmem:[%s312_s1 + $0x10] sm:$0xff]  ;;  %v27_v28 = vld [vmem:[%s312_s1 + $0x8] sm:$0xff] }
   0xa   :  { %127 = vmatpush.msra.mxu2 %v37_v8  ;;  %66 = vmatpush.msra.mxu0 %v37_v8  ;;  %v45_v25 = vld [vmem:[%s312_s1 + $0x98] sm:$0xff]  ;;  %v44_v27 = vld [vmem:[%s312_s1 + $0x90] sm:$0xff]  ;;  %v43_v29 = vld [vmem:[%s312_s1 + $0x88] sm:$0xff] }
   0xb   :  { %143 = vmatpush.msra.mxu3 %v53_v9  ;;  %92 = vmatpush.msra.mxu1 %v53_v9  ;;  %v26_v30 = vld [vmem:[%s312_s1] sm:$0xff]  ;;  %v22_v32 = vld [vmem:[%s316_s0 + $0x10] sm:$0xff]  ;;  %v23_v33 = vld [vmem:[%s316_s0 + $0x18] sm:$0xff] }
   0xc   :  { %128 = vmatpush.msra.mxu2 %v36_v10  ;;  %67 = vmatpush.msra.mxu0 %v36_v10  ;;  %v42_v31 = vld [vmem:[%s312_s1 + $0x80] sm:$0xff]  ;;  %v21_v35 = vld [vmem:[%s316_s0 + $0x8] sm:$0xff] }
   0xd   :  { %144 = vmatpush.msra.mxu3 %v52_v11  ;;  %93 = vmatpush.msra.mxu1 %v52_v11  ;;  %v20_v34 = vld [vmem:[%s316_s0] sm:$0xff]  ;;  %v25_v37 = vld [vmem:[%s316_s0 + $0x28] sm:$0xf] }
   0xe   :  { %129 = vmatpush.msra.mxu2 %v35_v12  ;;  %68 = vmatpush.msra.mxu0 %v35_v12  ;;  %v24_v36 = vld [vmem:[%s316_s0 + $0x20] sm:$0xf] }
   0xf   :  { %145 = vmatpush.msra.mxu3 %v51_v13  ;;  %94 = vmatpush.msra.mxu1 %v51_v13  ;;  %v155_v38 = vld [vmem:[%s315_s2] ss:$0 sm:$0xff] }
  0x10   :  { %130 = vmatpush.msra.mxu2 %v34_v14  ;;  %69 = vmatpush.msra.mxu0 %v34_v14 }
  0x11   :  { %146 = vmatpush.msra.mxu3 %v50_v15  ;;  %95 = vmatpush.msra.mxu1 %v50_v15 }
  0x12   :  { %131 = vmatpush.msra.mxu2 %v33_v16  ;;  %70 = vmatpush.msra.mxu0 %v33_v16 }
  0x13   :  { %147 = vmatpush.msra.mxu3 %v49_v17  ;;  %96 = vmatpush.msra.mxu1 %v49_v17 }
  0x14   :  { %132 = vmatpush.msra.mxu2 %v32_v18  ;;  %71 = vmatpush.msra.mxu0 %v32_v18 }
  0x15   :  { %148 = vmatpush.msra.mxu3 %v48_v19  ;;  %97 = vmatpush.msra.mxu1 %v48_v19 }
  0x16   :  { %133 = vmatpush.msra.mxu2 %v31_v20  ;;  %72 = vmatpush.msra.mxu0 %v31_v20 }
  0x17   :  { %149 = vmatpush.msra.mxu3 %v47_v21  ;;  %98 = vmatpush.msra.mxu1 %v47_v21 }
  0x18   :  { %134 = vmatpush.msra.mxu2 %v30_v22  ;;  %73 = vmatpush.msra.mxu0 %v30_v22 }
  0x19   :  { %150 = vmatpush.msra.mxu3 %v46_v23  ;;  %99 = vmatpush.msra.mxu1 %v46_v23 }
  0x1a   :  { %135 = vmatpush.msra.mxu2 %v29_v24  ;;  %74 = vmatpush.msra.mxu0 %v29_v24 }
  0x1b   :  { %151 = vmatpush.msra.mxu3 %v45_v25  ;;  %100 = vmatpush.msra.mxu1 %v45_v25 }
  0x1c   :  { %136 = vmatpush.msra.mxu2 %v28_v26  ;;  %75 = vmatpush.msra.mxu0 %v28_v26 }
  0x1d   :  { %152 = vmatpush.msra.mxu3 %v44_v27  ;;  %101 = vmatpush.msra.mxu1 %v44_v27 }
  0x1e   :  { %137 = vmatpush.msra.mxu2 %v27_v28  ;;  %76 = vmatpush.msra.mxu0 %v27_v28 }
  0x1f   :  { %153 = vmatpush.msra.mxu3 %v43_v29  ;;  %102 = vmatpush.msra.mxu1 %v43_v29 }
  0x20   :  { %138 = vmatpush.msra.mxu2 %v26_v30  ;;  %77 = vmatpush.msra.mxu0 %v26_v30 }
  0x21   :  { %154 = vmatpush.msra.mxu3 %v42_v31  ;;  %81 = vmatmul.f32.vlgmr.msra.gmra.mxu2 %v22_v32 }
  0x22   :  { %107 = vmatmul.f32.vlgmr.msra.gmra.mxu3 %v23_v33  ;;  %103 = vmatpush.msra.mxu1 %v42_v31 }
  0x23   :  { %78 = vmatmul.f32.vlgmr.msra.gmra.mxu0 %v20_v34  ;;  %104 = vmatmul.f32.vlgmr.msra.gmra.mxu1 %v21_v35 }
  0x29   :  { %84 = vmatmul.f32.gmra.mxu2 %v24_v36 }
  0x2a   :  { %110 = vmatmul.f32.gmra.mxu3 %v25_v37 }
  0xa0   :  { %v79_v39 = vpop.f32.mrf.mxu0  ;;  %v105_v40 = vpop.f32.mrf.mxu1 }
  0xa1   :  { %v80_v41 = vadd.f32 %v155_v38, %v79_v39 }
  0xa3   :  { %v106_v42 = vadd.f32 %v105_v40, %v80_v41 }
  0xa4   :  { %v82_v43 = vpop.f32.mrf.mxu2 }
  0xa5   :  { %v108_v44 = vpop.f32.mrf.mxu3  ;;  %v83_v45 = vadd.f32 %v155_v38, %v82_v43  ;;  %115 = vst.msk [vmem:[%s317_s5] sm:$0xff] %vm114_vm0, %v106_v42 }
  0xa7   :  { %v109_v46 = vadd.f32 %v108_v44, %v83_v45 }
  0xa9   :  { %116 = vst.msk [vmem:[%s317_s5 + $0x8] sm:$0xff] %vm114_vm0, %v109_v46 }
  0xac   :  { %v85_v47 = vpop.f32.mrf.mxu2 }
  0xad   :  { %v111_v48 = vpop.f32.mrf.mxu3  ;;  %v86_v49 = vadd.f32 %v155_v38, %v85_v47 }
  0xaf   :  { %v112_v50 = vadd.f32 %v111_v48, %v86_v49 }
  0xb1   :  { %118 = vst.msk [vmem:[%s317_s5 + $0x10] sm:$0xf] %vm117_vm1, %v112_v50 }

// kernel: iat_forward.45
= control target key start
LH: loop header
LB: loop body
LE: loop exit
PB: predicated region body
PF: predicated region fallthrough
CT: control target
= control target key end

     0   :  { %10 = vsyncpa [#allocation3], 0  ;;  %s908_s0 = inlined_call_operand.vmem [shape: f32[2,3,256], index: 0, kind: input, shape index: {}]   ;;  %s909_s1 = inlined_call_operand.vmem [shape: f32[2,3,256], index: 1, kind: input, shape index: {}]   ;;  %s910_s2 = inlined_call_operand.vmem [shape: f32[2,3,256], index: 2, kind: input, shape index: {}]   ;;  %s911_s3 = inlined_call_operand.vmem [shape: f32[2,3,3], index: 3, kind: input, shape index: {}]   ;;  %s912_s4 = inlined_call_operand.vmem [shape: f32[2,1], index: 4, kind: input, shape index: {}]   ;;  %s913_s5 = inlined_call_operand.vmem [shape: f32[2,3,256], index: 5, kind: output, shape index: {}]  }
   0x1   :  { %11 = vsyncpa [#allocation5], 0  ;;  %s828_s18 = smov 0   ;;  %s830_s19 = smov 0  }
   0x2   :  { %s832_s20 = smov 0  }
   0x3 LB: > { %s630_s21 = sadd.s32 4294967295, %s792_s20   ;;  %s29_s22 = sadd.s32 1, %s788_s19  ;;  %s792_s20 = sphi %s832_s20, %s17_s20   ;;  %s788_s19 = sphi %s830_s19, %s917_s19   ;;  %s784_s18 = sphi %s828_s18, %s916_s18  }
   0x4   : > { %p31_p0 = scmp.ge.s32.totalorder %s29_s22, 2  ;;  %p632_p1 = scmp.ge.s32.totalorder %s792_s20, 1 }
   0x5   : > { %p188_p2 = scmp.lt.s32.totalorder %s792_s20, 3  ;;  %p853_p4 = scmp.eq.s32.totalorder %s630_s21, 0 }
   0x6   : > { %s919_s22 = smov (%p31_p0, %s29_s22), 0  ;;  %s199_s27 = sshll.u32 %s911_s3, 4  ;;  %s200_s27 = int_to_ptr.vmem [resolvable:$true] %s199_s27 }
   0x7   : > { %p849_p3 = pnand %p632_p1, %p188_p2  ;;  %s212_s30 = sshll.u32 %s912_s4, 4  ;;  %s213_s30 = int_to_ptr.vmem [resolvable:$true] %s212_s30 }
   0x8   : > { %s794_s6 = smov [#allocation2]   ;;  %s795_s7 = smov 64  }
   0x9   : > { %p681_p5 = pneg %p849_p3  ;;  %s796_s8 = smov 4  }
   0xa   : > { %s797_s9 = smov [#allocation4]   ;;  %264 = sbr.rel (%p849_p3) target bundleno = 74 (0x4a), region = 40 }
   0xb   : > { %p682_p6 = pnand %p853_p4, %p681_p5 }
   0xd   : > { %684 = dma.vmem_to_smem (!%p682_p6), %s200_s27, 128, %s794_s6, [#allocation3], %s795_s7, %s795_s7, %s796_s8  }
   0xe   : > { %687 = dma.vmem_to_smem (!%p682_p6), %s213_s30, 32, %s797_s9, [#allocation5]  }
   0xf   : > { %775 = dma.done.wait (%p853_p4), [#allocation3], 128  }
  0x10   : > { %777 = vsyncadd (%p853_p4), [#allocation3], 4294967168 }
  0x11   : > { %779 = dma.done.wait (%p853_p4), [#allocation5], 32  }
  0x12   : > { %781 = vsyncadd (%p853_p4), [#allocation5], 4294967264 }
  0x13   : > { %276 = sfence }
  0x14   : > { %p326_p7 = scmp.lt.s32.totalorder %s784_s18, 1  ;;  %s666_s10 = sshll.u32 %s784_s18, 9  ;;  %v408_v52 = vlaneseq  ;;  %vm405_vm0 = vcmask 1040384  }
  0x15   : > { %s374_s12 = sld [smem:[#allocation2 + %s666_s10]]  ;;  %s377_s13 = sadd.s32 1, %s666_s10 }
  0x16   : > { %s327_s11 = scalar_select %p326_p7, %s784_s18, 1  ;;  %vm410_vm1 = vcmp.lt.s32.totalorder %v408_v52, 256 }
  0x17   : > { %s378_s15 = sld [smem:[#allocation2 + %s377_s13]]  ;;  %s386_s29 = sadd.s32 2, %s666_s10 }
  0x18   : > { %s880_s14 = sshll.u32 %s327_s11, 3  ;;  %s668_s30 = sadd.s32 128, %s666_s10 }
  0x19   : > { %s333_s21 = scalar_lea.vmem %s908_s0, %s880_s14  ;;  %s343_s25 = scalar_lea.vmem %s909_s1, %s880_s14 }
  0x1a   : > { %s353_s28 = scalar_lea.vmem %s910_s2, %s880_s14  ;;  %v365_v0 = vld [vmem:[%s333_s21] sm:$0x77]  ;;  %s387_s6 = sld [smem:[#allocation2 + %s386_s29]] }
  0x1b   : > { %v366_v1 = vld [vmem:[%s343_s25] sm:$0x77]  ;;  %s418_s7 = sadd.s32 1, %s668_s30  ;;  %v375_v5 = vstv %s374_s12  ;;  %s415_s8 = sld [smem:[#allocation2 + %s668_s30]] }
  0x1c   : > { %v367_v2 = vmul.f32 %v366_v1, %v365_v0  ;;  %v368_v3 = vld [vmem:[%s353_s28] sm:$0x77]  ;;  %s427_s9 = sadd.s32 2, %s668_s30  ;;  %s419_s11 = sld [smem:[#allocation2 + %s418_s7]] }
  0x1d   : > { %v379_v6 = vstv %s378_s15  ;;  %s670_s13 = sadd.s32 256, %s666_s10  ;;  %s428_s16 = sld [smem:[#allocation2 + %s427_s9]] }
  0x1e   : > { %v369_v4 = vadd.f32 %v368_v3, %v367_v2  ;;  %s454_s17 = sadd.s32 1, %s670_s13  ;;  %s451_s23 = sld [smem:[#allocation2 + %s670_s13]] }
  0x1f   : > { %s463_s21 = sadd.s32 2, %s670_s13  ;;  %s455_s24 = sld [smem:[#allocation2 + %s454_s17]] }
  0x20   : > { %v376_v7 = vmul.f32 %v375_v5, %v369_v4  ;;  %v380_v8 = vmul.f32 %v379_v6, %v369_v4  ;;  %v388_v10 = vstv %s387_s6  ;;  %s464_s25 = sld [smem:[#allocation2 + %s463_s21]]  ;;  %s647_s10 = sshll.u32 %s784_s18, 7 }
  0x21   : > { %v389_v12 = vmul.f32 %v388_v10, %v369_v4  ;;  %v416_v13 = vstv %s415_s8  ;;  %s371_s12 = sld [smem:[#allocation4 + %s647_s10]]  ;;  %s363_s26 = scalar_lea.vmem %s913_s5, %s880_s14 }
  0x22   : > { %v650_v9 = vrot.slane %v380_v8, 9  ;;  %v420_v14 = vstv %s419_s11  ;;  %v417_v16 = vmul.f32 %v416_v13, %v369_v4 }
  0x23   : > { %v651_v15 = vrot.slane %v389_v12, 10  ;;  %v421_v17 = vmul.f32 %v420_v14, %v369_v4  ;;  %v429_v18 = vstv %s428_s16 }
  0x24   : > { %v385_v11 = vadd.f32 %v650_v9, %v376_v7  ;;  %v430_v19 = vmul.f32 %v429_v18, %v369_v4  ;;  %v452_v20 = vstv %s451_s23 }
  0x25   : > { %v653_v22 = vrot.slane %v421_v17, 9  ;;  %v456_v23 = vstv %s455_s24  ;;  %v453_v25 = vmul.f32 %v452_v20, %v369_v4 }
  0x26   : > { %v394_v21 = vadd.f32 %v651_v15, %v385_v11  ;;  %v654_v24 = vrot.slane %v430_v19, 10  ;;  %v457_v26 = vmul.f32 %v456_v23, %v369_v4  ;;  %v465_v27 = vstv %s464_s25 }
  0x27   : > { %v426_v29 = vadd.f32 %v653_v22, %v417_v16  ;;  %v466_v30 = vmul.f32 %v465_v27, %v369_v4  ;;  %v399_v42 = vstv %s371_s12 }
  0x28   : > { %v395_v28 = vmax.f32 %v394_v21, 1e-08  ;;  %v657_v31 = vrot.slane %v457_v26, 9 }
  0x29   : > { %v435_v33 = vadd.f32 %v654_v24, %v426_v29  ;;  %v658_v34 = vrot.slane %v466_v30, 10 }
  0x2a   : > { %v396_v32 = vmin.f32 %v395_v28, 1.0  ;;  %v462_v35 = vadd.f32 %v657_v31, %v453_v25 }
  0x2b   : > { %v436_v36 = vmax.f32 %v435_v33, 1e-08 }
  0x2c   : > { %720 = vlog2.f32 %v396_v32  ;;  %v471_v37 = vadd.f32 %v658_v34, %v462_v35 }
  0x2d   : > { %v437_v38 = vmin.f32 %v436_v36, 1.0 }
  0x2e   : > { %v472_v39 = vmax.f32 %v471_v37, 1e-08 }
  0x2f   : > { %722 = vlog2.f32 %v437_v38 }
  0x30   : > { %v473_v40 = vmin.f32 %v472_v39, 1.0 }
  0x32   : > { %v721_v41 = vpop.eup %720  ;;  %724 = vlog2.f32 %v473_v40 }
  0x33   : > { %v398_v43 = vmul.f32 0.6931472, %v721_v41 }
  0x35   : > { %v400_v44 = vmul.f32 %v399_v42, %v398_v43  ;;  %v723_v45 = vpop.eup %722 }
  0x36   : > { %v439_v47 = vmul.f32 0.6931472, %v723_v45 }
  0x37   : > { %v401_v46 = vmul.f32 1.442695, %v400_v44 }
  0x38   : > { %v725_v48 = vpop.eup %724  ;;  %v440_v49 = vmul.f32 %v439_v47, %v399_v42 }
  0x39   : > { %726 = vpow2.f32 %v401_v46  ;;  %v475_v50 = vmul.f32 0.6931472, %v725_v48 }
  0x3a   : > { %v441_v51 = vmul.f32 1.442695, %v440_v49 }
  0x3b   : > { %v476_v53 = vmul.f32 %v475_v50, %v399_v42 }
  0x3c   : > { %728 = vpow2.f32 %v441_v51 }
  0x3d   : > { %v477_v54 = vmul.f32 1.442695, %v476_v53 }
  0x3f   : > { %v727_v55 = vpop.eup %726  ;;  %730 = vpow2.f32 %v477_v54 }
  0x40   : > { %v404_v56 = vrot.slane %v727_v55, 3 }
  0x42   : > { %v406_v57 = vsel %vm405_vm0, %v727_v55, %v404_v56  ;;  %v729_v58 = vpop.eup %728 }
  0x43   : > { %412 = vst.msk [vmem:[%s363_s26] ss:$4 sm:$0x3] %vm410_vm1, %v406_v57  ;;  %v444_v59 = vrot.slane %v729_v58, 3 }
  0x45   : > { %v731_v60 = vpop.eup %730  ;;  %v445_v61 = vsel %vm405_vm0, %v729_v58, %v444_v59 }
  0x46   : > { %655 = vst.msk [vmem:[%s363_s26 + $0x1] ss:$4 sm:$0x3] %vm410_vm1, %v445_v61  ;;  %v480_v62 = vrot.slane %v731_v60, 3 }
  0x48   : > { %v481_v63 = vsel %vm405_vm0, %v731_v60, %v480_v62 }
  0x49   : > { %659 = vst.msk [vmem:[%s363_s26 + $0x2] ss:$4 sm:$0x3] %vm410_vm1, %v481_v63 }
  0x4a PF: > { %s17_s20 = sadd.s32 1, %s792_s20   ;;  %s916_s18 = smov %s788_s19 }
  0x4b   : > { %p14_p8 = scmp.ge.s32.totalorder %s17_s20, 4   ;;  %s917_s19 = smov %s919_s22 }
  0x4d   :  { %16 = sbr.rel (!%p14_p8) target bundleno = 3 (0x3), region = 87 }
  0x52   :  { %515 = vsyncpa [#allocation3], 1 }
  0x53   :  { %517 = vsyncpa [#allocation3 + $0x1], 1 }
  0x54   :  { %518 = vsyncpa [#allocation5], 1 }

</bundles_post_ra>
